<compile_context>
chip_gen: v7x
topology: tpu7x:2x2x1
jax: 0.10.0
libtpu: 0.0.40
codegen_flags: <defaults>
</compile_context>

<pallas_src>
import functools

import jax
import jax.numpy as jnp
from jax.experimental import pallas as pl
from jax.experimental.pallas import tpu as pltpu

BN_EPS = 1e-5


def fused_relation_kernel(
    xp_ref,                                   # (B*(H1+2)*(W1+2), C0) bf16  zero-padded NHWC rows
    w1_ref, g1_ref, bt1_ref,                  # conv1 weight (9*C0, C1) bf16, BN gamma/beta (1, C1)
    w2_ref, g2_ref, bt2_ref,                  # conv2 weight (9*C1, C1) bf16, BN gamma/beta (1, C1)
    wfc1_ref, bfc1_ref, wfc2_ref, bfc2_ref,   # fc head (f32)
    o_ref,                                    # (B, 1) output
    acc1_ref, a1_ref, p2_ref, a2_ref, feat_ref,   # VMEM scratch
    *, B, H1, W1, C0, C1,
):
    H2, W2 = H1 // 2, W1 // 2
    H3, W3 = H2 // 2, W2 // 2
    HP1, WP1 = H1 + 2, W1 + 2
    HP2, WP2 = H2 + 2, W2 + 2
    # Row count that covers every valid conv-output row for the largest tap shift (2*WP + 2).
    N1 = B * HP1 * WP1 - 2 * WP1 - 2
    N2 = B * HP2 * WP2 - 2 * WP2 - 2

    # ---------------- layer1: 3x3 conv as 9 tap-shifted MXU matmuls (no im2col slab) ----------
    # acc1[r] = sum_t xp[r + dy*WP1 + dx] @ W1[t];  valid output (b,h,w) lives at row
    # b*HP1*WP1 + h*WP1 + w.  Conv bias omitted: training-mode BN subtracts the batch mean,
    # so a per-channel constant bias cancels exactly.
    for t in range(9):
        dy, dx = divmod(t, 3)
        s = dy * WP1 + dx
        part = jnp.dot(xp_ref[pl.ds(s, N1), :], w1_ref[pl.ds(t * C0, C0), :],
                       preferred_element_type=jnp.float32)
        if t == 0:
            acc1_ref[...] = part
        else:
            acc1_ref[...] += part

    # Extract valid rows once (B*H1 aligned (W1, C1) row-block copies), then BN + ReLU.
    for b in range(B):
        for h in range(H1):
            a1_ref[pl.ds((b * H1 + h) * W1, W1), :] = \
                acc1_ref[pl.ds(b * HP1 * WP1 + h * WP1, W1), :]
    inv_n1 = 1.0 / (B * H1 * W1)
    y1 = a1_ref[...]
    mu1 = jnp.sum(y1, axis=0, keepdims=True) * inv_n1
    c1 = y1 - mu1
    var1 = jnp.sum(c1 * c1, axis=0, keepdims=True) * inv_n1          # centered two-pass variance
    a1_ref[...] = jnp.maximum(c1 * jax.lax.rsqrt(var1 + BN_EPS) * g1_ref[...] + bt1_ref[...], 0.0)

    # ---------------- maxpool1 2x2 -> zero-padded layer2 input (vectorized, whole rows) --------
    p2_ref[...] = jnp.zeros_like(p2_ref)          # tiny padded buffer; interior overwritten below
    for b in range(B):
        for ho in range(H2):
            r0 = (b * H1 + 2 * ho) * W1
            e0 = a1_ref[pl.ds(r0, W2, stride=2), :]            # h=2ho,  even w
            o0 = a1_ref[pl.ds(r0 + 1, W2, stride=2), :]        # h=2ho,  odd  w
            e1 = a1_ref[pl.ds(r0 + W1, W2, stride=2), :]       # h=2ho+1, even w
            o1 = a1_ref[pl.ds(r0 + W1 + 1, W2, stride=2), :]   # h=2ho+1, odd  w
            mp = jnp.maximum(jnp.maximum(e0, o0), jnp.maximum(e1, o1))       # (W2, C1)
            p2_ref[pl.ds(b * HP2 * WP2 + (ho + 1) * WP2 + 1, W2), :] = mp

    # ---------------- layer2: 3x3 conv as 9 tap-shifted matmuls ---------------------------------
    acc2 = None
    for t in range(9):
        dy, dx = divmod(t, 3)
        s = dy * WP2 + dx
        part = jnp.dot(p2_ref[pl.ds(s, N2), :].astype(jnp.bfloat16),
                       w2_ref[pl.ds(t * C1, C1), :],
                       preferred_element_type=jnp.float32)
        acc2 = part if acc2 is None else acc2 + part

    for b in range(B):
        for h in range(H2):
            src = b * HP2 * WP2 + h * WP2
            a2_ref[pl.ds((b * H2 + h) * W2, W2), :] = acc2[src:src + W2, :]
    inv_n2 = 1.0 / (B * H2 * W2)
    y2 = a2_ref[...]
    mu2 = jnp.sum(y2, axis=0, keepdims=True) * inv_n2
    c2 = y2 - mu2
    var2 = jnp.sum(c2 * c2, axis=0, keepdims=True) * inv_n2
    a2_ref[...] = jnp.maximum(c2 * jax.lax.rsqrt(var2 + BN_EPS) * g2_ref[...] + bt2_ref[...], 0.0)

    # ---------------- maxpool2 2x2 -> (B, H3*W3*C1) feature rows --------------------------------
    for b in range(B):
        for ho in range(H3):
            r0 = (b * H2 + 2 * ho) * W2
            e0 = a2_ref[pl.ds(r0, W3, stride=2), :]
            o0 = a2_ref[pl.ds(r0 + 1, W3, stride=2), :]
            e1 = a2_ref[pl.ds(r0 + W2, W3, stride=2), :]
            o1 = a2_ref[pl.ds(r0 + W2 + 1, W3, stride=2), :]
            mp = jnp.maximum(jnp.maximum(e0, o0), jnp.maximum(e1, o1))       # (W3, C1)
            for wo in range(W3):
                feat_ref[pl.ds(b, 1), pl.ds((ho * W3 + wo) * C1, C1)] = mp[wo:wo + 1, :]

    # ---------------- fc1 + ReLU (single matmul), fc2 + sigmoid ---------------------------------
    feat = feat_ref[...]                                               # (B, H3*W3*C1)
    hid = jnp.dot(feat, wfc1_ref[...], preferred_element_type=jnp.float32) + bfc1_ref[...]
    hid = jnp.maximum(hid, 0.0)                                        # F.relu(fc1(x))
    z = jnp.sum(hid * wfc2_ref[...], axis=-1, keepdims=True) + bfc2_ref[...]
    o_ref[...] = 1.0 / (1.0 + jnp.exp(-z))                             # torch.sigmoid(fc2(x))


def relation_network_forward(x_nchw, params):
    B, C0, H1, W1 = x_nchw.shape
    C1 = params["w1"].shape[-1]
    H2, W2 = H1 // 2, W1 // 2
    H3, W3 = H2 // 2, W2 // 2
    hid = params["bfc1"].shape[0]
    HP1, WP1 = H1 + 2, W1 + 2
    HP2, WP2 = H2 + 2, W2 + 2
    N1 = B * HP1 * WP1 - 2 * WP1 - 2

    # NCHW -> NHWC, zero-pad spatially once, flatten rows, cast to bf16 (halves input DMA;
    # MXU accumulation stays f32 inside the kernel).
    x_nhwc = jnp.transpose(x_nchw, (0, 2, 3, 1)).astype(jnp.float32)
    xp2d = jnp.pad(x_nhwc, ((0, 0), (1, 1), (1, 1), (0, 0))).astype(jnp.bfloat16).reshape(
        B * HP1 * WP1, C0)

    # Conv weights as (9*Cin, Cout) bf16, tap-major rows (ky, kx, cin).
    w1 = params["w1"].reshape(9 * C0, C1).astype(jnp.bfloat16)
    w2 = params["w2"].reshape(9 * C1, C1).astype(jnp.bfloat16)

    # fc1 weight rows are in torch (C, H, W) flatten order; permute once to (spatial, channel)
    # so the kernel's NHWC pooled features need no in-kernel transpose.
    wfc1 = params["wfc1"].reshape(C1, H3 * W3, hid).transpose(1, 0, 2).reshape(H3 * W3 * C1, hid)

    # NOTE: conv biases (params b1/b2) are intentionally NOT passed: training-mode BatchNorm
    # subtracts the per-channel batch mean, so the bias cancels exactly in the forward pass.
    ops = (
        xp2d,
        w1, params["g1"].reshape(1, C1), params["bt1"].reshape(1, C1),
        w2, params["g2"].reshape(1, C1), params["bt2"].reshape(1, C1),
        wfc1, params["bfc1"].reshape(1, hid), params["wfc2"].reshape(1, hid),
        params["bfc2"].reshape(1, 1),
    )

    kernel = functools.partial(fused_relation_kernel, B=B, H1=H1, W1=W1, C0=C0, C1=C1)
    return pl.pallas_call(
        kernel,
        out_shape=jax.ShapeDtypeStruct((B, 1), jnp.float32),
        grid=(1,),
        in_specs=[pl.BlockSpec(a.shape, lambda i, nd=a.ndim: (0,) * nd) for a in ops],
        out_specs=pl.BlockSpec((B, 1), lambda i: (0, 0)),
        scratch_shapes=[
            pltpu.VMEM((N1, C1), jnp.float32),              # conv1 shifted-matmul accumulator
            pltpu.VMEM((B * H1 * W1, C1), jnp.float32),     # conv1 activation (compact rows)
            pltpu.VMEM((B * HP2 * WP2, C1), jnp.float32),   # zero-padded pool1 output
            pltpu.VMEM((B * H2 * W2, C1), jnp.float32),     # conv2 activation (compact rows)
            pltpu.VMEM((B, H3 * W3 * C1), jnp.float32),     # pooled features (B, 256)
        ],
        # TODO(synk): grid=(1,) runs on one TensorCore; batch-statistic BN couples every sample,
        # so sharding B across a 'parallel' grid axis (v7x megacore) would need a cross-step
        # reduction. With eval-mode/running-stat BN this could be sharded freely.
        compiler_params=pltpu.CompilerParams(dimension_semantics=("arbitrary",)),
    )(*ops)


def init_params(key, input_size, hidden_size):
    ks = jax.random.split(key, 6)

    def u(k, shape, fan_in):
        bound = 1.0 / jnp.sqrt(jnp.float32(fan_in))
        return jax.random.uniform(k, shape, jnp.float32, -bound, bound)

    return {
        # conv1: torch (64, 128, 3, 3) -> kernel layout (3, 3, 128, 64)
        "w1": u(ks[0], (3, 3, 128, 64), 3 * 3 * 128),
        "b1": u(ks[1], (64,), 3 * 3 * 128),     # unused in forward: cancelled by batch-stat BN
        "g1": jnp.ones((64,), jnp.float32),
        "bt1": jnp.zeros((64,), jnp.float32),
        # conv2: torch (64, 64, 3, 3) -> (3, 3, 64, 64)
        "w2": u(ks[2], (3, 3, 64, 64), 3 * 3 * 64),
        "b2": u(ks[3], (64,), 3 * 3 * 64),      # unused in forward: cancelled by batch-stat BN
        "g2": jnp.ones((64,), jnp.float32),
        "bt2": jnp.zeros((64,), jnp.float32),
        # fc1: torch (hidden, input_size) -> stored transposed (input_size, hidden)
        "wfc1": u(ks[4], (input_size, hidden_size), input_size),
        "bfc1": jnp.zeros((hidden_size,), jnp.float32),
        # fc2: torch (1, hidden) -> stored transposed (hidden, 1)
        "wfc2": u(ks[5], (hidden_size, 1), hidden_size),
        "bfc2": jnp.zeros((1,), jnp.float32),
    }


if __name__ == "__main__":
    B, C, H, W = 2, 128, 8, 8                 # conv stack fixes Cin=128
    input_size = 64 * (H // 4) * (W // 4)     # 64 * 2 * 2 = 256 after two 2x2 pools
    hidden_size = 32

    key = jax.random.PRNGKey(0)
    kx, kp = jax.random.split(key)
    x = jax.random.normal(kx, (B, C, H, W), jnp.float32)
    params = init_params(kp, input_size, hidden_size)

    fwd = jax.jit(relation_network_forward)
    out = jax.block_until_ready(fwd(x, params))
    assert out.shape == (B, 1) and bool(jnp.all((out >= 0.0) & (out <= 1.0)))
    print("KERNEL_OK")
</pallas_src>

<mosaic_0001>
module attributes {stable_mosaic.version = 11 : i64} {
  func.func @fused_relation_kernel(%arg0: i32, %arg1: memref<200x128xbf16, #tpu.memory_space<vmem>>, %arg2: memref<1152x64xbf16, #tpu.memory_space<vmem>>, %arg3: memref<1x64xf32, #tpu.memory_space<vmem>>, %arg4: memref<1x64xf32, #tpu.memory_space<vmem>>, %arg5: memref<576x64xbf16, #tpu.memory_space<vmem>>, %arg6: memref<1x64xf32, #tpu.memory_space<vmem>>, %arg7: memref<1x64xf32, #tpu.memory_space<vmem>>, %arg8: memref<256x32xf32, #tpu.memory_space<vmem>>, %arg9: memref<1x32xf32, #tpu.memory_space<vmem>>, %arg10: memref<1x32xf32, #tpu.memory_space<vmem>>, %arg11: memref<1x1xf32, #tpu.memory_space<vmem>>, %arg12: memref<2x1xf32, #tpu.memory_space<vmem>>, %arg13: memref<178x64xf32, #tpu.memory_space<vmem>>, %arg14: memref<128x64xf32, #tpu.memory_space<vmem>>, %arg15: memref<72x64xf32, #tpu.memory_space<vmem>>, %arg16: memref<32x64xf32, #tpu.memory_space<vmem>>, %arg17: memref<2x256xf32, #tpu.memory_space<vmem>>) attributes {dimension_semantics = [#tpu.dimension_semantics<arbitrary>], iteration_bounds = array<i64: 1>, scalar_prefetch = 0 : i64, scratch_operands = 5 : i64, tpu.core_type = #tpu.core_type<tc>, window_params = [{pipeline_mode = #tpu.pipeline_mode<synchronous>, transform_indices = @transform_0, window_bounds = array<i64: 200, 128>}, {pipeline_mode = #tpu.pipeline_mode<synchronous>, transform_indices = @transform_1, window_bounds = array<i64: 1152, 64>}, {pipeline_mode = #tpu.pipeline_mode<synchronous>, transform_indices = @transform_2, window_bounds = array<i64: 1, 64>}, {pipeline_mode = #tpu.pipeline_mode<synchronous>, transform_indices = @transform_3, window_bounds = array<i64: 1, 64>}, {pipeline_mode = #tpu.pipeline_mode<synchronous>, transform_indices = @transform_4, window_bounds = array<i64: 576, 64>}, {pipeline_mode = #tpu.pipeline_mode<synchronous>, transform_indices = @transform_5, window_bounds = array<i64: 1, 64>}, {pipeline_mode = #tpu.pipeline_mode<synchronous>, transform_indices = @transform_6, window_bounds = array<i64: 1, 64>}, {pipeline_mode = #tpu.pipeline_mode<synchronous>, transform_indices = @transform_7, window_bounds = array<i64: 256, 32>}, {pipeline_mode = #tpu.pipeline_mode<synchronous>, transform_indices = @transform_8, window_bounds = array<i64: 1, 32>}, {pipeline_mode = #tpu.pipeline_mode<synchronous>, transform_indices = @transform_9, window_bounds = array<i64: 1, 32>}, {pipeline_mode = #tpu.pipeline_mode<synchronous>, transform_indices = @transform_10, window_bounds = array<i64: 1, 1>}, {pipeline_mode = #tpu.pipeline_mode<synchronous>, transform_indices = @transform_11, window_bounds = array<i64: 2, 1>}]} {
    %c0 = arith.constant 0 : index
    %c0_0 = arith.constant 0 : index
    %0 = vector.load %arg1[%c0, %c0_0] : memref<200x128xbf16, #tpu.memory_space<vmem>>, vector<178x128xbf16>
    %c0_1 = arith.constant 0 : index
    %c0_2 = arith.constant 0 : index
    %1 = vector.load %arg2[%c0_1, %c0_2] : memref<1152x64xbf16, #tpu.memory_space<vmem>>, vector<128x64xbf16>
    %cst = arith.constant dense<0.000000e+00> : vector<178x64xf32>
    %2 = tpu.matmul %0, %1, %cst {dimension_numbers = #tpu.dot_dimension_numbers<[1], [0], [0], [1], [0, 0, 1, 1], [], []>} : vector<178x128xbf16>, vector<128x64xbf16>, vector<178x64xf32> -> vector<178x64xf32>
    %c0_3 = arith.constant 0 : index
    %c0_4 = arith.constant 0 : index
    %3 = vector.load %arg13[%c0_3, %c0_4] : memref<178x64xf32, #tpu.memory_space<vmem>>, vector<178x64xf32>
    tpu.vector_store %arg13[%c0_3, %c0_4], %2 {strides = array<i32>} : memref<178x64xf32, #tpu.memory_space<vmem>>, vector<178x64xf32>,
    %c1 = arith.constant 1 : index
    %c0_5 = arith.constant 0 : index
    %4 = vector.load %arg1[%c1, %c0_5] : memref<200x128xbf16, #tpu.memory_space<vmem>>, vector<178x128xbf16>
    %c128 = arith.constant 128 : index
    %c0_6 = arith.constant 0 : index
    %5 = vector.load %arg2[%c128, %c0_6] : memref<1152x64xbf16, #tpu.memory_space<vmem>>, vector<128x64xbf16>
    %cst_7 = arith.constant dense<0.000000e+00> : vector<178x64xf32>
    %6 = tpu.matmul %4, %5, %cst_7 {dimension_numbers = #tpu.dot_dimension_numbers<[1], [0], [0], [1], [0, 0, 1, 1], [], []>} : vector<178x128xbf16>, vector<128x64xbf16>, vector<178x64xf32> -> vector<178x64xf32>
    %c0_8 = arith.constant 0 : index
    %c0_9 = arith.constant 0 : index
    %7 = vector.load %arg13[%c0_8, %c0_9] : memref<178x64xf32, #tpu.memory_space<vmem>>, vector<178x64xf32>
    %8 = arith.addf %7, %6 : vector<178x64xf32>
    %c0_10 = arith.constant 0 : index
    %c0_11 = arith.constant 0 : index
    %9 = vector.load %arg13[%c0_10, %c0_11] : memref<178x64xf32, #tpu.memory_space<vmem>>, vector<178x64xf32>
    tpu.vector_store %arg13[%c0_10, %c0_11], %8 {strides = array<i32>} : memref<178x64xf32, #tpu.memory_space<vmem>>, vector<178x64xf32>,
    %c2 = arith.constant 2 : index
    %c0_12 = arith.constant 0 : index
    %10 = vector.load %arg1[%c2, %c0_12] : memref<200x128xbf16, #tpu.memory_space<vmem>>, vector<178x128xbf16>
    %c256 = arith.constant 256 : index
    %c0_13 = arith.constant 0 : index
    %11 = vector.load %arg2[%c256, %c0_13] : memref<1152x64xbf16, #tpu.memory_space<vmem>>, vector<128x64xbf16>
    %cst_14 = arith.constant dense<0.000000e+00> : vector<178x64xf32>
    %12 = tpu.matmul %10, %11, %cst_14 {dimension_numbers = #tpu.dot_dimension_numbers<[1], [0], [0], [1], [0, 0, 1, 1], [], []>} : vector<178x128xbf16>, vector<128x64xbf16>, vector<178x64xf32> -> vector<178x64xf32>
    %c0_15 = arith.constant 0 : index
    %c0_16 = arith.constant 0 : index
    %13 = vector.load %arg13[%c0_15, %c0_16] : memref<178x64xf32, #tpu.memory_space<vmem>>, vector<178x64xf32>
    %14 = arith.addf %13, %12 : vector<178x64xf32>
    %c0_17 = arith.constant 0 : index
    %c0_18 = arith.constant 0 : index
    %15 = vector.load %arg13[%c0_17, %c0_18] : memref<178x64xf32, #tpu.memory_space<vmem>>, vector<178x64xf32>
    tpu.vector_store %arg13[%c0_17, %c0_18], %14 {strides = array<i32>} : memref<178x64xf32, #tpu.memory_space<vmem>>, vector<178x64xf32>,
    %c10 = arith.constant 10 : index
    %c0_19 = arith.constant 0 : index
    %16 = vector.load %arg1[%c10, %c0_19] : memref<200x128xbf16, #tpu.memory_space<vmem>>, vector<178x128xbf16>
    %c384 = arith.constant 384 : index
    %c0_20 = arith.constant 0 : index
    %17 = vector.load %arg2[%c384, %c0_20] : memref<1152x64xbf16, #tpu.memory_space<vmem>>, vector<128x64xbf16>
    %cst_21 = arith.constant dense<0.000000e+00> : vector<178x64xf32>
    %18 = tpu.matmul %16, %17, %cst_21 {dimension_numbers = #tpu.dot_dimension_numbers<[1], [0], [0], [1], [0, 0, 1, 1], [], []>} : vector<178x128xbf16>, vector<128x64xbf16>, vector<178x64xf32> -> vector<178x64xf32>
    %c0_22 = arith.constant 0 : index
    %c0_23 = arith.constant 0 : index
    %19 = vector.load %arg13[%c0_22, %c0_23] : memref<178x64xf32, #tpu.memory_space<vmem>>, vector<178x64xf32>
    %20 = arith.addf %19, %18 : vector<178x64xf32>
    %c0_24 = arith.constant 0 : index
    %c0_25 = arith.constant 0 : index
    %21 = vector.load %arg13[%c0_24, %c0_25] : memref<178x64xf32, #tpu.memory_space<vmem>>, vector<178x64xf32>
    tpu.vector_store %arg13[%c0_24, %c0_25], %20 {strides = array<i32>} : memref<178x64xf32, #tpu.memory_space<vmem>>, vector<178x64xf32>,
    %c11 = arith.constant 11 : index
    %c0_26 = arith.constant 0 : index
    %22 = vector.load %arg1[%c11, %c0_26] : memref<200x128xbf16, #tpu.memory_space<vmem>>, vector<178x128xbf16>
    %c512 = arith.constant 512 : index
    %c0_27 = arith.constant 0 : index
    %23 = vector.load %arg2[%c512, %c0_27] : memref<1152x64xbf16, #tpu.memory_space<vmem>>, vector<128x64xbf16>
    %cst_28 = arith.constant dense<0.000000e+00> : vector<178x64xf32>
    %24 = tpu.matmul %22, %23, %cst_28 {dimension_numbers = #tpu.dot_dimension_numbers<[1], [0], [0], [1], [0, 0, 1, 1], [], []>} : vector<178x128xbf16>, vector<128x64xbf16>, vector<178x64xf32> -> vector<178x64xf32>
    %c0_29 = arith.constant 0 : index
    %c0_30 = arith.constant 0 : index
    %25 = vector.load %arg13[%c0_29, %c0_30] : memref<178x64xf32, #tpu.memory_space<vmem>>, vector<178x64xf32>
    %26 = arith.addf %25, %24 : vector<178x64xf32>
    %c0_31 = arith.constant 0 : index
    %c0_32 = arith.constant 0 : index
    %27 = vector.load %arg13[%c0_31, %c0_32] : memref<178x64xf32, #tpu.memory_space<vmem>>, vector<178x64xf32>
    tpu.vector_store %arg13[%c0_31, %c0_32], %26 {strides = array<i32>} : memref<178x64xf32, #tpu.memory_space<vmem>>, vector<178x64xf32>,
    %c12 = arith.constant 12 : index
    %c0_33 = arith.constant 0 : index
    %28 = vector.load %arg1[%c12, %c0_33] : memref<200x128xbf16, #tpu.memory_space<vmem>>, vector<178x128xbf16>
    %c640 = arith.constant 640 : index
    %c0_34 = arith.constant 0 : index
    %29 = vector.load %arg2[%c640, %c0_34] : memref<1152x64xbf16, #tpu.memory_space<vmem>>, vector<128x64xbf16>
    %cst_35 = arith.constant dense<0.000000e+00> : vector<178x64xf32>
    %30 = tpu.matmul %28, %29, %cst_35 {dimension_numbers = #tpu.dot_dimension_numbers<[1], [0], [0], [1], [0, 0, 1, 1], [], []>} : vector<178x128xbf16>, vector<128x64xbf16>, vector<178x64xf32> -> vector<178x64xf32>
    %c0_36 = arith.constant 0 : index
    %c0_37 = arith.constant 0 : index
    %31 = vector.load %arg13[%c0_36, %c0_37] : memref<178x64xf32, #tpu.memory_space<vmem>>, vector<178x64xf32>
    %32 = arith.addf %31, %30 : vector<178x64xf32>
    %c0_38 = arith.constant 0 : index
    %c0_39 = arith.constant 0 : index
    %33 = vector.load %arg13[%c0_38, %c0_39] : memref<178x64xf32, #tpu.memory_space<vmem>>, vector<178x64xf32>
    tpu.vector_store %arg13[%c0_38, %c0_39], %32 {strides = array<i32>} : memref<178x64xf32, #tpu.memory_space<vmem>>, vector<178x64xf32>,
    %c20 = arith.constant 20 : index
    %c0_40 = arith.constant 0 : index
    %34 = vector.load %arg1[%c20, %c0_40] : memref<200x128xbf16, #tpu.memory_space<vmem>>, vector<178x128xbf16>
    %c768 = arith.constant 768 : index
    %c0_41 = arith.constant 0 : index
    %35 = vector.load %arg2[%c768, %c0_41] : memref<1152x64xbf16, #tpu.memory_space<vmem>>, vector<128x64xbf16>
    %cst_42 = arith.constant dense<0.000000e+00> : vector<178x64xf32>
    %36 = tpu.matmul %34, %35, %cst_42 {dimension_numbers = #tpu.dot_dimension_numbers<[1], [0], [0], [1], [0, 0, 1, 1], [], []>} : vector<178x128xbf16>, vector<128x64xbf16>, vector<178x64xf32> -> vector<178x64xf32>
    %c0_43 = arith.constant 0 : index
    %c0_44 = arith.constant 0 : index
    %37 = vector.load %arg13[%c0_43, %c0_44] : memref<178x64xf32, #tpu.memory_space<vmem>>, vector<178x64xf32>
    %38 = arith.addf %37, %36 : vector<178x64xf32>
    %c0_45 = arith.constant 0 : index
    %c0_46 = arith.constant 0 : index
    %39 = vector.load %arg13[%c0_45, %c0_46] : memref<178x64xf32, #tpu.memory_space<vmem>>, vector<178x64xf32>
    tpu.vector_store %arg13[%c0_45, %c0_46], %38 {strides = array<i32>} : memref<178x64xf32, #tpu.memory_space<vmem>>, vector<178x64xf32>,
    %c21 = arith.constant 21 : index
    %c0_47 = arith.constant 0 : index
    %40 = vector.load %arg1[%c21, %c0_47] : memref<200x128xbf16, #tpu.memory_space<vmem>>, vector<178x128xbf16>
    %c896 = arith.constant 896 : index
    %c0_48 = arith.constant 0 : index
    %41 = vector.load %arg2[%c896, %c0_48] : memref<1152x64xbf16, #tpu.memory_space<vmem>>, vector<128x64xbf16>
    %cst_49 = arith.constant dense<0.000000e+00> : vector<178x64xf32>
    %42 = tpu.matmul %40, %41, %cst_49 {dimension_numbers = #tpu.dot_dimension_numbers<[1], [0], [0], [1], [0, 0, 1, 1], [], []>} : vector<178x128xbf16>, vector<128x64xbf16>, vector<178x64xf32> -> vector<178x64xf32>
    %c0_50 = arith.constant 0 : index
    %c0_51 = arith.constant 0 : index
    %43 = vector.load %arg13[%c0_50, %c0_51] : memref<178x64xf32, #tpu.memory_space<vmem>>, vector<178x64xf32>
    %44 = arith.addf %43, %42 : vector<178x64xf32>
    %c0_52 = arith.constant 0 : index
    %c0_53 = arith.constant 0 : index
    %45 = vector.load %arg13[%c0_52, %c0_53] : memref<178x64xf32, #tpu.memory_space<vmem>>, vector<178x64xf32>
    tpu.vector_store %arg13[%c0_52, %c0_53], %44 {strides = array<i32>} : memref<178x64xf32, #tpu.memory_space<vmem>>, vector<178x64xf32>,
    %c22 = arith.constant 22 : index
    %c0_54 = arith.constant 0 : index
    %46 = vector.load %arg1[%c22, %c0_54] : memref<200x128xbf16, #tpu.memory_space<vmem>>, vector<178x128xbf16>
    %c1024 = arith.constant 1024 : index
    %c0_55 = arith.constant 0 : index
    %47 = vector.load %arg2[%c1024, %c0_55] : memref<1152x64xbf16, #tpu.memory_space<vmem>>, vector<128x64xbf16>
    %cst_56 = arith.constant dense<0.000000e+00> : vector<178x64xf32>
    %48 = tpu.matmul %46, %47, %cst_56 {dimension_numbers = #tpu.dot_dimension_numbers<[1], [0], [0], [1], [0, 0, 1, 1], [], []>} : vector<178x128xbf16>, vector<128x64xbf16>, vector<178x64xf32> -> vector<178x64xf32>
    %c0_57 = arith.constant 0 : index
    %c0_58 = arith.constant 0 : index
    %49 = vector.load %arg13[%c0_57, %c0_58] : memref<178x64xf32, #tpu.memory_space<vmem>>, vector<178x64xf32>
    %50 = arith.addf %49, %48 : vector<178x64xf32>
    %c0_59 = arith.constant 0 : index
    %c0_60 = arith.constant 0 : index
    %51 = vector.load %arg13[%c0_59, %c0_60] : memref<178x64xf32, #tpu.memory_space<vmem>>, vector<178x64xf32>
    tpu.vector_store %arg13[%c0_59, %c0_60], %50 {strides = array<i32>} : memref<178x64xf32, #tpu.memory_space<vmem>>, vector<178x64xf32>,
    %c0_61 = arith.constant 0 : index
    %c0_62 = arith.constant 0 : index
    %52 = vector.load %arg13[%c0_61, %c0_62] : memref<178x64xf32, #tpu.memory_space<vmem>>, vector<8x64xf32>
    %c0_63 = arith.constant 0 : index
    %c0_64 = arith.constant 0 : index
    %53 = vector.load %arg14[%c0_63, %c0_64] : memref<128x64xf32, #tpu.memory_space<vmem>>, vector<8x64xf32>
    tpu.vector_store %arg14[%c0_63, %c0_64], %52 {strides = array<i32>} : memref<128x64xf32, #tpu.memory_space<vmem>>, vector<8x64xf32>,
    %c10_65 = arith.constant 10 : index
    %c0_66 = arith.constant 0 : index
    %54 = vector.load %arg13[%c10_65, %c0_66] : memref<178x64xf32, #tpu.memory_space<vmem>>, vector<8x64xf32>
    %c8 = arith.constant 8 : index
    %c0_67 = arith.constant 0 : index
    %55 = vector.load %arg14[%c8, %c0_67] : memref<128x64xf32, #tpu.memory_space<vmem>>, vector<8x64xf32>
    tpu.vector_store %arg14[%c8, %c0_67], %54 {strides = array<i32>} : memref<128x64xf32, #tpu.memory_space<vmem>>, vector<8x64xf32>,
    %c20_68 = arith.constant 20 : index
    %c0_69 = arith.constant 0 : index
    %56 = vector.load %arg13[%c20_68, %c0_69] : memref<178x64xf32, #tpu.memory_space<vmem>>, vector<8x64xf32>
    %c16 = arith.constant 16 : index
    %c0_70 = arith.constant 0 : index
    %57 = vector.load %arg14[%c16, %c0_70] : memref<128x64xf32, #tpu.memory_space<vmem>>, vector<8x64xf32>
    tpu.vector_store %arg14[%c16, %c0_70], %56 {strides = array<i32>} : memref<128x64xf32, #tpu.memory_space<vmem>>, vector<8x64xf32>,
    %c30 = arith.constant 30 : index
    %c0_71 = arith.constant 0 : index
    %58 = vector.load %arg13[%c30, %c0_71] : memref<178x64xf32, #tpu.memory_space<vmem>>, vector<8x64xf32>
    %c24 = arith.constant 24 : index
    %c0_72 = arith.constant 0 : index
    %59 = vector.load %arg14[%c24, %c0_72] : memref<128x64xf32, #tpu.memory_space<vmem>>, vector<8x64xf32>
    tpu.vector_store %arg14[%c24, %c0_72], %58 {strides = array<i32>} : memref<128x64xf32, #tpu.memory_space<vmem>>, vector<8x64xf32>,
    %c40 = arith.constant 40 : index
    %c0_73 = arith.constant 0 : index
    %60 = vector.load %arg13[%c40, %c0_73] : memref<178x64xf32, #tpu.memory_space<vmem>>, vector<8x64xf32>
    %c32 = arith.constant 32 : index
    %c0_74 = arith.constant 0 : index
    %61 = vector.load %arg14[%c32, %c0_74] : memref<128x64xf32, #tpu.memory_space<vmem>>, vector<8x64xf32>
    tpu.vector_store %arg14[%c32, %c0_74], %60 {strides = array<i32>} : memref<128x64xf32, #tpu.memory_space<vmem>>, vector<8x64xf32>,
    %c50 = arith.constant 50 : index
    %c0_75 = arith.constant 0 : index
    %62 = vector.load %arg13[%c50, %c0_75] : memref<178x64xf32, #tpu.memory_space<vmem>>, vector<8x64xf32>
    %c40_76 = arith.constant 40 : index
    %c0_77 = arith.constant 0 : index
    %63 = vector.load %arg14[%c40_76, %c0_77] : memref<128x64xf32, #tpu.memory_space<vmem>>, vector<8x64xf32>
    tpu.vector_store %arg14[%c40_76, %c0_77], %62 {strides = array<i32>} : memref<128x64xf32, #tpu.memory_space<vmem>>, vector<8x64xf32>,
    %c60 = arith.constant 60 : index
    %c0_78 = arith.constant 0 : index
    %64 = vector.load %arg13[%c60, %c0_78] : memref<178x64xf32, #tpu.memory_space<vmem>>, vector<8x64xf32>
    %c48 = arith.constant 48 : index
    %c0_79 = arith.constant 0 : index
    %65 = vector.load %arg14[%c48, %c0_79] : memref<128x64xf32, #tpu.memory_space<vmem>>, vector<8x64xf32>
    tpu.vector_store %arg14[%c48, %c0_79], %64 {strides = array<i32>} : memref<128x64xf32, #tpu.memory_space<vmem>>, vector<8x64xf32>,
    %c70 = arith.constant 70 : index
    %c0_80 = arith.constant 0 : index
    %66 = vector.load %arg13[%c70, %c0_80] : memref<178x64xf32, #tpu.memory_space<vmem>>, vector<8x64xf32>
    %c56 = arith.constant 56 : index
    %c0_81 = arith.constant 0 : index
    %67 = vector.load %arg14[%c56, %c0_81] : memref<128x64xf32, #tpu.memory_space<vmem>>, vector<8x64xf32>
    tpu.vector_store %arg14[%c56, %c0_81], %66 {strides = array<i32>} : memref<128x64xf32, #tpu.memory_space<vmem>>, vector<8x64xf32>,
    %c100 = arith.constant 100 : index
    %c0_82 = arith.constant 0 : index
    %68 = vector.load %arg13[%c100, %c0_82] : memref<178x64xf32, #tpu.memory_space<vmem>>, vector<8x64xf32>
    %c64 = arith.constant 64 : index
    %c0_83 = arith.constant 0 : index
    %69 = vector.load %arg14[%c64, %c0_83] : memref<128x64xf32, #tpu.memory_space<vmem>>, vector<8x64xf32>
    tpu.vector_store %arg14[%c64, %c0_83], %68 {strides = array<i32>} : memref<128x64xf32, #tpu.memory_space<vmem>>, vector<8x64xf32>,
    %c110 = arith.constant 110 : index
    %c0_84 = arith.constant 0 : index
    %70 = vector.load %arg13[%c110, %c0_84] : memref<178x64xf32, #tpu.memory_space<vmem>>, vector<8x64xf32>
    %c72 = arith.constant 72 : index
    %c0_85 = arith.constant 0 : index
    %71 = vector.load %arg14[%c72, %c0_85] : memref<128x64xf32, #tpu.memory_space<vmem>>, vector<8x64xf32>
    tpu.vector_store %arg14[%c72, %c0_85], %70 {strides = array<i32>} : memref<128x64xf32, #tpu.memory_space<vmem>>, vector<8x64xf32>,
    %c120 = arith.constant 120 : index
    %c0_86 = arith.constant 0 : index
    %72 = vector.load %arg13[%c120, %c0_86] : memref<178x64xf32, #tpu.memory_space<vmem>>, vector<8x64xf32>
    %c80 = arith.constant 80 : index
    %c0_87 = arith.constant 0 : index
    %73 = vector.load %arg14[%c80, %c0_87] : memref<128x64xf32, #tpu.memory_space<vmem>>, vector<8x64xf32>
    tpu.vector_store %arg14[%c80, %c0_87], %72 {strides = array<i32>} : memref<128x64xf32, #tpu.memory_space<vmem>>, vector<8x64xf32>,
    %c130 = arith.constant 130 : index
    %c0_88 = arith.constant 0 : index
    %74 = vector.load %arg13[%c130, %c0_88] : memref<178x64xf32, #tpu.memory_space<vmem>>, vector<8x64xf32>
    %c88 = arith.constant 88 : index
    %c0_89 = arith.constant 0 : index
    %75 = vector.load %arg14[%c88, %c0_89] : memref<128x64xf32, #tpu.memory_space<vmem>>, vector<8x64xf32>
    tpu.vector_store %arg14[%c88, %c0_89], %74 {strides = array<i32>} : memref<128x64xf32, #tpu.memory_space<vmem>>, vector<8x64xf32>,
    %c140 = arith.constant 140 : index
    %c0_90 = arith.constant 0 : index
    %76 = vector.load %arg13[%c140, %c0_90] : memref<178x64xf32, #tpu.memory_space<vmem>>, vector<8x64xf32>
    %c96 = arith.constant 96 : index
    %c0_91 = arith.constant 0 : index
    %77 = vector.load %arg14[%c96, %c0_91] : memref<128x64xf32, #tpu.memory_space<vmem>>, vector<8x64xf32>
    tpu.vector_store %arg14[%c96, %c0_91], %76 {strides = array<i32>} : memref<128x64xf32, #tpu.memory_space<vmem>>, vector<8x64xf32>,
    %c150 = arith.constant 150 : index
    %c0_92 = arith.constant 0 : index
    %78 = vector.load %arg13[%c150, %c0_92] : memref<178x64xf32, #tpu.memory_space<vmem>>, vector<8x64xf32>
    %c104 = arith.constant 104 : index
    %c0_93 = arith.constant 0 : index
    %79 = vector.load %arg14[%c104, %c0_93] : memref<128x64xf32, #tpu.memory_space<vmem>>, vector<8x64xf32>
    tpu.vector_store %arg14[%c104, %c0_93], %78 {strides = array<i32>} : memref<128x64xf32, #tpu.memory_space<vmem>>, vector<8x64xf32>,
    %c160 = arith.constant 160 : index
    %c0_94 = arith.constant 0 : index
    %80 = vector.load %arg13[%c160, %c0_94] : memref<178x64xf32, #tpu.memory_space<vmem>>, vector<8x64xf32>
    %c112 = arith.constant 112 : index
    %c0_95 = arith.constant 0 : index
    %81 = vector.load %arg14[%c112, %c0_95] : memref<128x64xf32, #tpu.memory_space<vmem>>, vector<8x64xf32>
    tpu.vector_store %arg14[%c112, %c0_95], %80 {strides = array<i32>} : memref<128x64xf32, #tpu.memory_space<vmem>>, vector<8x64xf32>,
    %c170 = arith.constant 170 : index
    %c0_96 = arith.constant 0 : index
    %82 = vector.load %arg13[%c170, %c0_96] : memref<178x64xf32, #tpu.memory_space<vmem>>, vector<8x64xf32>
    %c120_97 = arith.constant 120 : index
    %c0_98 = arith.constant 0 : index
    %83 = vector.load %arg14[%c120_97, %c0_98] : memref<128x64xf32, #tpu.memory_space<vmem>>, vector<8x64xf32>
    tpu.vector_store %arg14[%c120_97, %c0_98], %82 {strides = array<i32>} : memref<128x64xf32, #tpu.memory_space<vmem>>, vector<8x64xf32>,
    %c0_99 = arith.constant 0 : index
    %c0_100 = arith.constant 0 : index
    %84 = vector.load %arg14[%c0_99, %c0_100] : memref<128x64xf32, #tpu.memory_space<vmem>>, vector<128x64xf32>
    %cst_101 = arith.constant dense<0.000000e+00> : vector<64xf32>
    %85 = vector.multi_reduction <add>, %84, %cst_101 [0] : vector<128x64xf32> to vector<64xf32>
    %86 = vector.shape_cast %85 : vector<64xf32> to vector<1x64xf32>
    %cst_102 = arith.constant 7.812500e-03 : f32
    %87 = vector.broadcast %cst_102 : f32 to vector<1x64xf32>
    %88 = arith.mulf %86, %87 : vector<1x64xf32>
    %89 = vector.broadcast %88 : vector<1x64xf32> to vector<128x64xf32>
    %90 = arith.subf %84, %89 : vector<128x64xf32>
    %91 = arith.mulf %90, %90 : vector<128x64xf32>
    %cst_103 = arith.constant dense<0.000000e+00> : vector<64xf32>
    %92 = vector.multi_reduction <add>, %91, %cst_103 [0] : vector<128x64xf32> to vector<64xf32>
    %93 = vector.shape_cast %92 : vector<64xf32> to vector<1x64xf32>
    %cst_104 = arith.constant 7.812500e-03 : f32
    %94 = vector.broadcast %cst_104 : f32 to vector<1x64xf32>
    %95 = arith.mulf %93, %94 : vector<1x64xf32>
    %cst_105 = arith.constant 9.99999974E-6 : f32
    %96 = vector.broadcast %cst_105 : f32 to vector<1x64xf32>
    %97 = arith.addf %95, %96 : vector<1x64xf32>
    %98 = math.rsqrt %97 : vector<1x64xf32>
    %99 = vector.broadcast %98 : vector<1x64xf32> to vector<128x64xf32>
    %100 = arith.mulf %90, %99 : vector<128x64xf32>
    %c0_106 = arith.constant 0 : index
    %c0_107 = arith.constant 0 : index
    %101 = vector.load %arg3[%c0_106, %c0_107] : memref<1x64xf32, #tpu.memory_space<vmem>>, vector<1x64xf32>
    %102 = vector.broadcast %101 : vector<1x64xf32> to vector<128x64xf32>
    %103 = arith.mulf %100, %102 : vector<128x64xf32>
    %c0_108 = arith.constant 0 : index
    %c0_109 = arith.constant 0 : index
    %104 = vector.load %arg4[%c0_108, %c0_109] : memref<1x64xf32, #tpu.memory_space<vmem>>, vector<1x64xf32>
    %105 = vector.broadcast %104 : vector<1x64xf32> to vector<128x64xf32>
    %106 = arith.addf %103, %105 : vector<128x64xf32>
    %cst_110 = arith.constant 0.000000e+00 : f32
    %107 = vector.broadcast %cst_110 : f32 to vector<128x64xf32>
    %108 = arith.maximumf %106, %107 : vector<128x64xf32>
    %c0_111 = arith.constant 0 : index
    %c0_112 = arith.constant 0 : index
    %109 = vector.load %arg14[%c0_111, %c0_112] : memref<128x64xf32, #tpu.memory_space<vmem>>, vector<128x64xf32>
    tpu.vector_store %arg14[%c0_111, %c0_112], %108 {strides = array<i32>} : memref<128x64xf32, #tpu.memory_space<vmem>>, vector<128x64xf32>,
    %cst_113 = arith.constant 0.000000e+00 : f32
    %110 = vector.broadcast %cst_113 : f32 to vector<72x64xf32>
    %c0_114 = arith.constant 0 : index
    %c0_115 = arith.constant 0 : index
    %111 = vector.load %arg15[%c0_114, %c0_115] : memref<72x64xf32, #tpu.memory_space<vmem>>, vector<72x64xf32>
    tpu.vector_store %arg15[%c0_114, %c0_115], %110 {strides = array<i32>} : memref<72x64xf32, #tpu.memory_space<vmem>>, vector<72x64xf32>,
    %c0_116 = arith.constant 0 : index
    %c0_117 = arith.constant 0 : index
    %112 = tpu.strided_load %arg14[%c0_116, %c0_117] {strides = array<i32: 2, 1>} : memref<128x64xf32, #tpu.memory_space<vmem>>, vector<4x64xf32>
    %c1_118 = arith.constant 1 : index
    %c0_119 = arith.constant 0 : index
    %113 = tpu.strided_load %arg14[%c1_118, %c0_119] {strides = array<i32: 2, 1>} : memref<128x64xf32, #tpu.memory_space<vmem>>, vector<4x64xf32>
    %c8_120 = arith.constant 8 : index
    %c0_121 = arith.constant 0 : index
    %114 = tpu.strided_load %arg14[%c8_120, %c0_121] {strides = array<i32: 2, 1>} : memref<128x64xf32, #tpu.memory_space<vmem>>, vector<4x64xf32>
    %c9 = arith.constant 9 : index
    %c0_122 = arith.constant 0 : index
    %115 = tpu.strided_load %arg14[%c9, %c0_122] {strides = array<i32: 2, 1>} : memref<128x64xf32, #tpu.memory_space<vmem>>, vector<4x64xf32>
    %116 = arith.maximumf %112, %113 : vector<4x64xf32>
    %117 = arith.maximumf %114, %115 : vector<4x64xf32>
    %118 = arith.maximumf %116, %117 : vector<4x64xf32>
    %c7 = arith.constant 7 : index
    %c0_123 = arith.constant 0 : index
    %119 = vector.load %arg15[%c7, %c0_123] : memref<72x64xf32, #tpu.memory_space<vmem>>, vector<4x64xf32>
    tpu.vector_store %arg15[%c7, %c0_123], %118 {strides = array<i32>} : memref<72x64xf32, #tpu.memory_space<vmem>>, vector<4x64xf32>,
    %c16_124 = arith.constant 16 : index
    %c0_125 = arith.constant 0 : index
    %120 = tpu.strided_load %arg14[%c16_124, %c0_125] {strides = array<i32: 2, 1>} : memref<128x64xf32, #tpu.memory_space<vmem>>, vector<4x64xf32>
    %c17 = arith.constant 17 : index
    %c0_126 = arith.constant 0 : index
    %121 = tpu.strided_load %arg14[%c17, %c0_126] {strides = array<i32: 2, 1>} : memref<128x64xf32, #tpu.memory_space<vmem>>, vector<4x64xf32>
    %c24_127 = arith.constant 24 : index
    %c0_128 = arith.constant 0 : index
    %122 = tpu.strided_load %arg14[%c24_127, %c0_128] {strides = array<i32: 2, 1>} : memref<128x64xf32, #tpu.memory_space<vmem>>, vector<4x64xf32>
    %c25 = arith.constant 25 : index
    %c0_129 = arith.constant 0 : index
    %123 = tpu.strided_load %arg14[%c25, %c0_129] {strides = array<i32: 2, 1>} : memref<128x64xf32, #tpu.memory_space<vmem>>, vector<4x64xf32>
    %124 = arith.maximumf %120, %121 : vector<4x64xf32>
    %125 = arith.maximumf %122, %123 : vector<4x64xf32>
    %126 = arith.maximumf %124, %125 : vector<4x64xf32>
    %c13 = arith.constant 13 : index
    %c0_130 = arith.constant 0 : index
    %127 = vector.load %arg15[%c13, %c0_130] : memref<72x64xf32, #tpu.memory_space<vmem>>, vector<4x64xf32>
    tpu.vector_store %arg15[%c13, %c0_130], %126 {strides = array<i32>} : memref<72x64xf32, #tpu.memory_space<vmem>>, vector<4x64xf32>,
    %c32_131 = arith.constant 32 : index
    %c0_132 = arith.constant 0 : index
    %128 = tpu.strided_load %arg14[%c32_131, %c0_132] {strides = array<i32: 2, 1>} : memref<128x64xf32, #tpu.memory_space<vmem>>, vector<4x64xf32>
    %c33 = arith.constant 33 : index
    %c0_133 = arith.constant 0 : index
    %129 = tpu.strided_load %arg14[%c33, %c0_133] {strides = array<i32: 2, 1>} : memref<128x64xf32, #tpu.memory_space<vmem>>, vector<4x64xf32>
    %c40_134 = arith.constant 40 : index
    %c0_135 = arith.constant 0 : index
    %130 = tpu.strided_load %arg14[%c40_134, %c0_135] {strides = array<i32: 2, 1>} : memref<128x64xf32, #tpu.memory_space<vmem>>, vector<4x64xf32>
    %c41 = arith.constant 41 : index
    %c0_136 = arith.constant 0 : index
    %131 = tpu.strided_load %arg14[%c41, %c0_136] {strides = array<i32: 2, 1>} : memref<128x64xf32, #tpu.memory_space<vmem>>, vector<4x64xf32>
    %132 = arith.maximumf %128, %129 : vector<4x64xf32>
    %133 = arith.maximumf %130, %131 : vector<4x64xf32>
    %134 = arith.maximumf %132, %133 : vector<4x64xf32>
    %c19 = arith.constant 19 : index
    %c0_137 = arith.constant 0 : index
    %135 = vector.load %arg15[%c19, %c0_137] : memref<72x64xf32, #tpu.memory_space<vmem>>, vector<4x64xf32>
    tpu.vector_store %arg15[%c19, %c0_137], %134 {strides = array<i32>} : memref<72x64xf32, #tpu.memory_space<vmem>>, vector<4x64xf32>,
    %c48_138 = arith.constant 48 : index
    %c0_139 = arith.constant 0 : index
    %136 = tpu.strided_load %arg14[%c48_138, %c0_139] {strides = array<i32: 2, 1>} : memref<128x64xf32, #tpu.memory_space<vmem>>, vector<4x64xf32>
    %c49 = arith.constant 49 : index
    %c0_140 = arith.constant 0 : index
    %137 = tpu.strided_load %arg14[%c49, %c0_140] {strides = array<i32: 2, 1>} : memref<128x64xf32, #tpu.memory_space<vmem>>, vector<4x64xf32>
    %c56_141 = arith.constant 56 : index
    %c0_142 = arith.constant 0 : index
    %138 = tpu.strided_load %arg14[%c56_141, %c0_142] {strides = array<i32: 2, 1>} : memref<128x64xf32, #tpu.memory_space<vmem>>, vector<4x64xf32>
    %c57 = arith.constant 57 : index
    %c0_143 = arith.constant 0 : index
    %139 = tpu.strided_load %arg14[%c57, %c0_143] {strides = array<i32: 2, 1>} : memref<128x64xf32, #tpu.memory_space<vmem>>, vector<4x64xf32>
    %140 = arith.maximumf %136, %137 : vector<4x64xf32>
    %141 = arith.maximumf %138, %139 : vector<4x64xf32>
    %142 = arith.maximumf %140, %141 : vector<4x64xf32>
    %c25_144 = arith.constant 25 : index
    %c0_145 = arith.constant 0 : index
    %143 = vector.load %arg15[%c25_144, %c0_145] : memref<72x64xf32, #tpu.memory_space<vmem>>, vector<4x64xf32>
    tpu.vector_store %arg15[%c25_144, %c0_145], %142 {strides = array<i32>} : memref<72x64xf32, #tpu.memory_space<vmem>>, vector<4x64xf32>,
    %c64_146 = arith.constant 64 : index
    %c0_147 = arith.constant 0 : index
    %144 = tpu.strided_load %arg14[%c64_146, %c0_147] {strides = array<i32: 2, 1>} : memref<128x64xf32, #tpu.memory_space<vmem>>, vector<4x64xf32>
    %c65 = arith.constant 65 : index
    %c0_148 = arith.constant 0 : index
    %145 = tpu.strided_load %arg14[%c65, %c0_148] {strides = array<i32: 2, 1>} : memref<128x64xf32, #tpu.memory_space<vmem>>, vector<4x64xf32>
    %c72_149 = arith.constant 72 : index
    %c0_150 = arith.constant 0 : index
    %146 = tpu.strided_load %arg14[%c72_149, %c0_150] {strides = array<i32: 2, 1>} : memref<128x64xf32, #tpu.memory_space<vmem>>, vector<4x64xf32>
    %c73 = arith.constant 73 : index
    %c0_151 = arith.constant 0 : index
    %147 = tpu.strided_load %arg14[%c73, %c0_151] {strides = array<i32: 2, 1>} : memref<128x64xf32, #tpu.memory_space<vmem>>, vector<4x64xf32>
    %148 = arith.maximumf %144, %145 : vector<4x64xf32>
    %149 = arith.maximumf %146, %147 : vector<4x64xf32>
    %150 = arith.maximumf %148, %149 : vector<4x64xf32>
    %c43 = arith.constant 43 : index
    %c0_152 = arith.constant 0 : index
    %151 = vector.load %arg15[%c43, %c0_152] : memref<72x64xf32, #tpu.memory_space<vmem>>, vector<4x64xf32>
    tpu.vector_store %arg15[%c43, %c0_152], %150 {strides = array<i32>} : memref<72x64xf32, #tpu.memory_space<vmem>>, vector<4x64xf32>,
    %c80_153 = arith.constant 80 : index
    %c0_154 = arith.constant 0 : index
    %152 = tpu.strided_load %arg14[%c80_153, %c0_154] {strides = array<i32: 2, 1>} : memref<128x64xf32, #tpu.memory_space<vmem>>, vector<4x64xf32>
    %c81 = arith.constant 81 : index
    %c0_155 = arith.constant 0 : index
    %153 = tpu.strided_load %arg14[%c81, %c0_155] {strides = array<i32: 2, 1>} : memref<128x64xf32, #tpu.memory_space<vmem>>, vector<4x64xf32>
    %c88_156 = arith.constant 88 : index
    %c0_157 = arith.constant 0 : index
    %154 = tpu.strided_load %arg14[%c88_156, %c0_157] {strides = array<i32: 2, 1>} : memref<128x64xf32, #tpu.memory_space<vmem>>, vector<4x64xf32>
    %c89 = arith.constant 89 : index
    %c0_158 = arith.constant 0 : index
    %155 = tpu.strided_load %arg14[%c89, %c0_158] {strides = array<i32: 2, 1>} : memref<128x64xf32, #tpu.memory_space<vmem>>, vector<4x64xf32>
    %156 = arith.maximumf %152, %153 : vector<4x64xf32>
    %157 = arith.maximumf %154, %155 : vector<4x64xf32>
    %158 = arith.maximumf %156, %157 : vector<4x64xf32>
    %c49_159 = arith.constant 49 : index
    %c0_160 = arith.constant 0 : index
    %159 = vector.load %arg15[%c49_159, %c0_160] : memref<72x64xf32, #tpu.memory_space<vmem>>, vector<4x64xf32>
    tpu.vector_store %arg15[%c49_159, %c0_160], %158 {strides = array<i32>} : memref<72x64xf32, #tpu.memory_space<vmem>>, vector<4x64xf32>,
    %c96_161 = arith.constant 96 : index
    %c0_162 = arith.constant 0 : index
    %160 = tpu.strided_load %arg14[%c96_161, %c0_162] {strides = array<i32: 2, 1>} : memref<128x64xf32, #tpu.memory_space<vmem>>, vector<4x64xf32>
    %c97 = arith.constant 97 : index
    %c0_163 = arith.constant 0 : index
    %161 = tpu.strided_load %arg14[%c97, %c0_163] {strides = array<i32: 2, 1>} : memref<128x64xf32, #tpu.memory_space<vmem>>, vector<4x64xf32>
    %c104_164 = arith.constant 104 : index
    %c0_165 = arith.constant 0 : index
    %162 = tpu.strided_load %arg14[%c104_164, %c0_165] {strides = array<i32: 2, 1>} : memref<128x64xf32, #tpu.memory_space<vmem>>, vector<4x64xf32>
    %c105 = arith.constant 105 : index
    %c0_166 = arith.constant 0 : index
    %163 = tpu.strided_load %arg14[%c105, %c0_166] {strides = array<i32: 2, 1>} : memref<128x64xf32, #tpu.memory_space<vmem>>, vector<4x64xf32>
    %164 = arith.maximumf %160, %161 : vector<4x64xf32>
    %165 = arith.maximumf %162, %163 : vector<4x64xf32>
    %166 = arith.maximumf %164, %165 : vector<4x64xf32>
    %c55 = arith.constant 55 : index
    %c0_167 = arith.constant 0 : index
    %167 = vector.load %arg15[%c55, %c0_167] : memref<72x64xf32, #tpu.memory_space<vmem>>, vector<4x64xf32>
    tpu.vector_store %arg15[%c55, %c0_167], %166 {strides = array<i32>} : memref<72x64xf32, #tpu.memory_space<vmem>>, vector<4x64xf32>,
    %c112_168 = arith.constant 112 : index
    %c0_169 = arith.constant 0 : index
    %168 = tpu.strided_load %arg14[%c112_168, %c0_169] {strides = array<i32: 2, 1>} : memref<128x64xf32, #tpu.memory_space<vmem>>, vector<4x64xf32>
    %c113 = arith.constant 113 : index
    %c0_170 = arith.constant 0 : index
    %169 = tpu.strided_load %arg14[%c113, %c0_170] {strides = array<i32: 2, 1>} : memref<128x64xf32, #tpu.memory_space<vmem>>, vector<4x64xf32>
    %c120_171 = arith.constant 120 : index
    %c0_172 = arith.constant 0 : index
    %170 = tpu.strided_load %arg14[%c120_171, %c0_172] {strides = array<i32: 2, 1>} : memref<128x64xf32, #tpu.memory_space<vmem>>, vector<4x64xf32>
    %c121 = arith.constant 121 : index
    %c0_173 = arith.constant 0 : index
    %171 = tpu.strided_load %arg14[%c121, %c0_173] {strides = array<i32: 2, 1>} : memref<128x64xf32, #tpu.memory_space<vmem>>, vector<4x64xf32>
    %172 = arith.maximumf %168, %169 : vector<4x64xf32>
    %173 = arith.maximumf %170, %171 : vector<4x64xf32>
    %174 = arith.maximumf %172, %173 : vector<4x64xf32>
    %c61 = arith.constant 61 : index
    %c0_174 = arith.constant 0 : index
    %175 = vector.load %arg15[%c61, %c0_174] : memref<72x64xf32, #tpu.memory_space<vmem>>, vector<4x64xf32>
    tpu.vector_store %arg15[%c61, %c0_174], %174 {strides = array<i32>} : memref<72x64xf32, #tpu.memory_space<vmem>>, vector<4x64xf32>,
    %c0_175 = arith.constant 0 : index
    %c0_176 = arith.constant 0 : index
    %176 = vector.load %arg15[%c0_175, %c0_176] : memref<72x64xf32, #tpu.memory_space<vmem>>, vector<58x64xf32>
    %177 = arith.truncf %176 : vector<58x64xf32> to vector<58x64xbf16>
    %c0_177 = arith.constant 0 : index
    %c0_178 = arith.constant 0 : index
    %178 = vector.load %arg5[%c0_177, %c0_178] : memref<576x64xbf16, #tpu.memory_space<vmem>>, vector<64x64xbf16>
    %cst_179 = arith.constant dense<0.000000e+00> : vector<58x64xf32>
    %179 = tpu.matmul %177, %178, %cst_179 {dimension_numbers = #tpu.dot_dimension_numbers<[1], [0], [0], [1], [0, 0, 1, 1], [], []>} : vector<58x64xbf16>, vector<64x64xbf16>, vector<58x64xf32> -> vector<58x64xf32>
    %c1_180 = arith.constant 1 : index
    %c0_181 = arith.constant 0 : index
    %180 = vector.load %arg15[%c1_180, %c0_181] : memref<72x64xf32, #tpu.memory_space<vmem>>, vector<58x64xf32>
    %181 = arith.truncf %180 : vector<58x64xf32> to vector<58x64xbf16>
    %c64_182 = arith.constant 64 : index
    %c0_183 = arith.constant 0 : index
    %182 = vector.load %arg5[%c64_182, %c0_183] : memref<576x64xbf16, #tpu.memory_space<vmem>>, vector<64x64xbf16>
    %cst_184 = arith.constant dense<0.000000e+00> : vector<58x64xf32>
    %183 = tpu.matmul %181, %182, %cst_184 {dimension_numbers = #tpu.dot_dimension_numbers<[1], [0], [0], [1], [0, 0, 1, 1], [], []>} : vector<58x64xbf16>, vector<64x64xbf16>, vector<58x64xf32> -> vector<58x64xf32>
    %184 = arith.addf %179, %183 : vector<58x64xf32>
    %c2_185 = arith.constant 2 : index
    %c0_186 = arith.constant 0 : index
    %185 = vector.load %arg15[%c2_185, %c0_186] : memref<72x64xf32, #tpu.memory_space<vmem>>, vector<58x64xf32>
    %186 = arith.truncf %185 : vector<58x64xf32> to vector<58x64xbf16>
    %c128_187 = arith.constant 128 : index
    %c0_188 = arith.constant 0 : index
    %187 = vector.load %arg5[%c128_187, %c0_188] : memref<576x64xbf16, #tpu.memory_space<vmem>>, vector<64x64xbf16>
    %cst_189 = arith.constant dense<0.000000e+00> : vector<58x64xf32>
    %188 = tpu.matmul %186, %187, %cst_189 {dimension_numbers = #tpu.dot_dimension_numbers<[1], [0], [0], [1], [0, 0, 1, 1], [], []>} : vector<58x64xbf16>, vector<64x64xbf16>, vector<58x64xf32> -> vector<58x64xf32>
    %189 = arith.addf %184, %188 : vector<58x64xf32>
    %c6 = arith.constant 6 : index
    %c0_190 = arith.constant 0 : index
    %190 = vector.load %arg15[%c6, %c0_190] : memref<72x64xf32, #tpu.memory_space<vmem>>, vector<58x64xf32>
    %191 = arith.truncf %190 : vector<58x64xf32> to vector<58x64xbf16>
    %c192 = arith.constant 192 : index
    %c0_191 = arith.constant 0 : index
    %192 = vector.load %arg5[%c192, %c0_191] : memref<576x64xbf16, #tpu.memory_space<vmem>>, vector<64x64xbf16>
    %cst_192 = arith.constant dense<0.000000e+00> : vector<58x64xf32>
    %193 = tpu.matmul %191, %192, %cst_192 {dimension_numbers = #tpu.dot_dimension_numbers<[1], [0], [0], [1], [0, 0, 1, 1], [], []>} : vector<58x64xbf16>, vector<64x64xbf16>, vector<58x64xf32> -> vector<58x64xf32>
    %194 = arith.addf %189, %193 : vector<58x64xf32>
    %c7_193 = arith.constant 7 : index
    %c0_194 = arith.constant 0 : index
    %195 = vector.load %arg15[%c7_193, %c0_194] : memref<72x64xf32, #tpu.memory_space<vmem>>, vector<58x64xf32>
    %196 = arith.truncf %195 : vector<58x64xf32> to vector<58x64xbf16>
    %c256_195 = arith.constant 256 : index
    %c0_196 = arith.constant 0 : index
    %197 = vector.load %arg5[%c256_195, %c0_196] : memref<576x64xbf16, #tpu.memory_space<vmem>>, vector<64x64xbf16>
    %cst_197 = arith.constant dense<0.000000e+00> : vector<58x64xf32>
    %198 = tpu.matmul %196, %197, %cst_197 {dimension_numbers = #tpu.dot_dimension_numbers<[1], [0], [0], [1], [0, 0, 1, 1], [], []>} : vector<58x64xbf16>, vector<64x64xbf16>, vector<58x64xf32> -> vector<58x64xf32>
    %199 = arith.addf %194, %198 : vector<58x64xf32>
    %c8_198 = arith.constant 8 : index
    %c0_199 = arith.constant 0 : index
    %200 = vector.load %arg15[%c8_198, %c0_199] : memref<72x64xf32, #tpu.memory_space<vmem>>, vector<58x64xf32>
    %201 = arith.truncf %200 : vector<58x64xf32> to vector<58x64xbf16>
    %c320 = arith.constant 320 : index
    %c0_200 = arith.constant 0 : index
    %202 = vector.load %arg5[%c320, %c0_200] : memref<576x64xbf16, #tpu.memory_space<vmem>>, vector<64x64xbf16>
    %cst_201 = arith.constant dense<0.000000e+00> : vector<58x64xf32>
    %203 = tpu.matmul %201, %202, %cst_201 {dimension_numbers = #tpu.dot_dimension_numbers<[1], [0], [0], [1], [0, 0, 1, 1], [], []>} : vector<58x64xbf16>, vector<64x64xbf16>, vector<58x64xf32> -> vector<58x64xf32>
    %204 = arith.addf %199, %203 : vector<58x64xf32>
    %c12_202 = arith.constant 12 : index
    %c0_203 = arith.constant 0 : index
    %205 = vector.load %arg15[%c12_202, %c0_203] : memref<72x64xf32, #tpu.memory_space<vmem>>, vector<58x64xf32>
    %206 = arith.truncf %205 : vector<58x64xf32> to vector<58x64xbf16>
    %c384_204 = arith.constant 384 : index
    %c0_205 = arith.constant 0 : index
    %207 = vector.load %arg5[%c384_204, %c0_205] : memref<576x64xbf16, #tpu.memory_space<vmem>>, vector<64x64xbf16>
    %cst_206 = arith.constant dense<0.000000e+00> : vector<58x64xf32>
    %208 = tpu.matmul %206, %207, %cst_206 {dimension_numbers = #tpu.dot_dimension_numbers<[1], [0], [0], [1], [0, 0, 1, 1], [], []>} : vector<58x64xbf16>, vector<64x64xbf16>, vector<58x64xf32> -> vector<58x64xf32>
    %209 = arith.addf %204, %208 : vector<58x64xf32>
    %c13_207 = arith.constant 13 : index
    %c0_208 = arith.constant 0 : index
    %210 = vector.load %arg15[%c13_207, %c0_208] : memref<72x64xf32, #tpu.memory_space<vmem>>, vector<58x64xf32>
    %211 = arith.truncf %210 : vector<58x64xf32> to vector<58x64xbf16>
    %c448 = arith.constant 448 : index
    %c0_209 = arith.constant 0 : index
    %212 = vector.load %arg5[%c448, %c0_209] : memref<576x64xbf16, #tpu.memory_space<vmem>>, vector<64x64xbf16>
    %cst_210 = arith.constant dense<0.000000e+00> : vector<58x64xf32>
    %213 = tpu.matmul %211, %212, %cst_210 {dimension_numbers = #tpu.dot_dimension_numbers<[1], [0], [0], [1], [0, 0, 1, 1], [], []>} : vector<58x64xbf16>, vector<64x64xbf16>, vector<58x64xf32> -> vector<58x64xf32>
    %214 = arith.addf %209, %213 : vector<58x64xf32>
    %c14 = arith.constant 14 : index
    %c0_211 = arith.constant 0 : index
    %215 = vector.load %arg15[%c14, %c0_211] : memref<72x64xf32, #tpu.memory_space<vmem>>, vector<58x64xf32>
    %216 = arith.truncf %215 : vector<58x64xf32> to vector<58x64xbf16>
    %c512_212 = arith.constant 512 : index
    %c0_213 = arith.constant 0 : index
    %217 = vector.load %arg5[%c512_212, %c0_213] : memref<576x64xbf16, #tpu.memory_space<vmem>>, vector<64x64xbf16>
    %cst_214 = arith.constant dense<0.000000e+00> : vector<58x64xf32>
    %218 = tpu.matmul %216, %217, %cst_214 {dimension_numbers = #tpu.dot_dimension_numbers<[1], [0], [0], [1], [0, 0, 1, 1], [], []>} : vector<58x64xbf16>, vector<64x64xbf16>, vector<58x64xf32> -> vector<58x64xf32>
    %219 = arith.addf %214, %218 : vector<58x64xf32>
    %220 = vector.extract_strided_slice %219 {offsets = [0, 0], sizes = [4, 64], strides = [1, 1]} : vector<58x64xf32> to vector<4x64xf32>
    %c0_215 = arith.constant 0 : index
    %c0_216 = arith.constant 0 : index
    %221 = vector.load %arg16[%c0_215, %c0_216] : memref<32x64xf32, #tpu.memory_space<vmem>>, vector<4x64xf32>
    tpu.vector_store %arg16[%c0_215, %c0_216], %220 {strides = array<i32>} : memref<32x64xf32, #tpu.memory_space<vmem>>, vector<4x64xf32>,
    %222 = vector.extract_strided_slice %219 {offsets = [6, 0], sizes = [4, 64], strides = [1, 1]} : vector<58x64xf32> to vector<4x64xf32>
    %c4 = arith.constant 4 : index
    %c0_217 = arith.constant 0 : index
    %223 = vector.load %arg16[%c4, %c0_217] : memref<32x64xf32, #tpu.memory_space<vmem>>, vector<4x64xf32>
    tpu.vector_store %arg16[%c4, %c0_217], %222 {strides = array<i32>} : memref<32x64xf32, #tpu.memory_space<vmem>>, vector<4x64xf32>,
    %224 = vector.extract_strided_slice %219 {offsets = [12, 0], sizes = [4, 64], strides = [1, 1]} : vector<58x64xf32> to vector<4x64xf32>
    %c8_218 = arith.constant 8 : index
    %c0_219 = arith.constant 0 : index
    %225 = vector.load %arg16[%c8_218, %c0_219] : memref<32x64xf32, #tpu.memory_space<vmem>>, vector<4x64xf32>
    tpu.vector_store %arg16[%c8_218, %c0_219], %224 {strides = array<i32>} : memref<32x64xf32, #tpu.memory_space<vmem>>, vector<4x64xf32>,
    %226 = vector.extract_strided_slice %219 {offsets = [18, 0], sizes = [4, 64], strides = [1, 1]} : vector<58x64xf32> to vector<4x64xf32>
    %c12_220 = arith.constant 12 : index
    %c0_221 = arith.constant 0 : index
    %227 = vector.load %arg16[%c12_220, %c0_221] : memref<32x64xf32, #tpu.memory_space<vmem>>, vector<4x64xf32>
    tpu.vector_store %arg16[%c12_220, %c0_221], %226 {strides = array<i32>} : memref<32x64xf32, #tpu.memory_space<vmem>>, vector<4x64xf32>,
    %228 = vector.extract_strided_slice %219 {offsets = [36, 0], sizes = [4, 64], strides = [1, 1]} : vector<58x64xf32> to vector<4x64xf32>
    %c16_222 = arith.constant 16 : index
    %c0_223 = arith.constant 0 : index
    %229 = vector.load %arg16[%c16_222, %c0_223] : memref<32x64xf32, #tpu.memory_space<vmem>>, vector<4x64xf32>
    tpu.vector_store %arg16[%c16_222, %c0_223], %228 {strides = array<i32>} : memref<32x64xf32, #tpu.memory_space<vmem>>, vector<4x64xf32>,
    %230 = vector.extract_strided_slice %219 {offsets = [42, 0], sizes = [4, 64], strides = [1, 1]} : vector<58x64xf32> to vector<4x64xf32>
    %c20_224 = arith.constant 20 : index
    %c0_225 = arith.constant 0 : index
    %231 = vector.load %arg16[%c20_224, %c0_225] : memref<32x64xf32, #tpu.memory_space<vmem>>, vector<4x64xf32>
    tpu.vector_store %arg16[%c20_224, %c0_225], %230 {strides = array<i32>} : memref<32x64xf32, #tpu.memory_space<vmem>>, vector<4x64xf32>,
    %232 = vector.extract_strided_slice %219 {offsets = [48, 0], sizes = [4, 64], strides = [1, 1]} : vector<58x64xf32> to vector<4x64xf32>
    %c24_226 = arith.constant 24 : index
    %c0_227 = arith.constant 0 : index
    %233 = vector.load %arg16[%c24_226, %c0_227] : memref<32x64xf32, #tpu.memory_space<vmem>>, vector<4x64xf32>
    tpu.vector_store %arg16[%c24_226, %c0_227], %232 {strides = array<i32>} : memref<32x64xf32, #tpu.memory_space<vmem>>, vector<4x64xf32>,
    %234 = vector.extract_strided_slice %219 {offsets = [54, 0], sizes = [4, 64], strides = [1, 1]} : vector<58x64xf32> to vector<4x64xf32>
    %c28 = arith.constant 28 : index
    %c0_228 = arith.constant 0 : index
    %235 = vector.load %arg16[%c28, %c0_228] : memref<32x64xf32, #tpu.memory_space<vmem>>, vector<4x64xf32>
    tpu.vector_store %arg16[%c28, %c0_228], %234 {strides = array<i32>} : memref<32x64xf32, #tpu.memory_space<vmem>>, vector<4x64xf32>,
    %c0_229 = arith.constant 0 : index
    %c0_230 = arith.constant 0 : index
    %236 = vector.load %arg16[%c0_229, %c0_230] : memref<32x64xf32, #tpu.memory_space<vmem>>, vector<32x64xf32>
    %cst_231 = arith.constant dense<0.000000e+00> : vector<64xf32>
    %237 = vector.multi_reduction <add>, %236, %cst_231 [0] : vector<32x64xf32> to vector<64xf32>
    %238 = vector.shape_cast %237 : vector<64xf32> to vector<1x64xf32>
    %cst_232 = arith.constant 3.125000e-02 : f32
    %239 = vector.broadcast %cst_232 : f32 to vector<1x64xf32>
    %240 = arith.mulf %238, %239 : vector<1x64xf32>
    %241 = vector.broadcast %240 : vector<1x64xf32> to vector<32x64xf32>
    %242 = arith.subf %236, %241 : vector<32x64xf32>
    %243 = arith.mulf %242, %242 : vector<32x64xf32>
    %cst_233 = arith.constant dense<0.000000e+00> : vector<64xf32>
    %244 = vector.multi_reduction <add>, %243, %cst_233 [0] : vector<32x64xf32> to vector<64xf32>
    %245 = vector.shape_cast %244 : vector<64xf32> to vector<1x64xf32>
    %cst_234 = arith.constant 3.125000e-02 : f32
    %246 = vector.broadcast %cst_234 : f32 to vector<1x64xf32>
    %247 = arith.mulf %245, %246 : vector<1x64xf32>
    %cst_235 = arith.constant 9.99999974E-6 : f32
    %248 = vector.broadcast %cst_235 : f32 to vector<1x64xf32>
    %249 = arith.addf %247, %248 : vector<1x64xf32>
    %250 = math.rsqrt %249 : vector<1x64xf32>
    %251 = vector.broadcast %250 : vector<1x64xf32> to vector<32x64xf32>
    %252 = arith.mulf %242, %251 : vector<32x64xf32>
    %c0_236 = arith.constant 0 : index
    %c0_237 = arith.constant 0 : index
    %253 = vector.load %arg6[%c0_236, %c0_237] : memref<1x64xf32, #tpu.memory_space<vmem>>, vector<1x64xf32>
    %254 = vector.broadcast %253 : vector<1x64xf32> to vector<32x64xf32>
    %255 = arith.mulf %252, %254 : vector<32x64xf32>
    %c0_238 = arith.constant 0 : index
    %c0_239 = arith.constant 0 : index
    %256 = vector.load %arg7[%c0_238, %c0_239] : memref<1x64xf32, #tpu.memory_space<vmem>>, vector<1x64xf32>
    %257 = vector.broadcast %256 : vector<1x64xf32> to vector<32x64xf32>
    %258 = arith.addf %255, %257 : vector<32x64xf32>
    %cst_240 = arith.constant 0.000000e+00 : f32
    %259 = vector.broadcast %cst_240 : f32 to vector<32x64xf32>
    %260 = arith.maximumf %258, %259 : vector<32x64xf32>
    %c0_241 = arith.constant 0 : index
    %c0_242 = arith.constant 0 : index
    %261 = vector.load %arg16[%c0_241, %c0_242] : memref<32x64xf32, #tpu.memory_space<vmem>>, vector<32x64xf32>
    tpu.vector_store %arg16[%c0_241, %c0_242], %260 {strides = array<i32>} : memref<32x64xf32, #tpu.memory_space<vmem>>, vector<32x64xf32>,
    %c0_243 = arith.constant 0 : index
    %c0_244 = arith.constant 0 : index
    %262 = tpu.strided_load %arg16[%c0_243, %c0_244] {strides = array<i32: 2, 1>} : memref<32x64xf32, #tpu.memory_space<vmem>>, vector<2x64xf32>
    %c1_245 = arith.constant 1 : index
    %c0_246 = arith.constant 0 : index
    %263 = tpu.strided_load %arg16[%c1_245, %c0_246] {strides = array<i32: 2, 1>} : memref<32x64xf32, #tpu.memory_space<vmem>>, vector<2x64xf32>
    %c4_247 = arith.constant 4 : index
    %c0_248 = arith.constant 0 : index
    %264 = tpu.strided_load %arg16[%c4_247, %c0_248] {strides = array<i32: 2, 1>} : memref<32x64xf32, #tpu.memory_space<vmem>>, vector<2x64xf32>
    %c5 = arith.constant 5 : index
    %c0_249 = arith.constant 0 : index
    %265 = tpu.strided_load %arg16[%c5, %c0_249] {strides = array<i32: 2, 1>} : memref<32x64xf32, #tpu.memory_space<vmem>>, vector<2x64xf32>
    %266 = arith.maximumf %262, %263 : vector<2x64xf32>
    %267 = arith.maximumf %264, %265 : vector<2x64xf32>
    %268 = arith.maximumf %266, %267 : vector<2x64xf32>
    %269 = vector.extract_strided_slice %268 {offsets = [0, 0], sizes = [1, 64], strides = [1, 1]} : vector<2x64xf32> to vector<1x64xf32>
    %c0_250 = arith.constant 0 : index
    %c0_251 = arith.constant 0 : index
    %270 = vector.load %arg17[%c0_250, %c0_251] : memref<2x256xf32, #tpu.memory_space<vmem>>, vector<1x64xf32>
    tpu.vector_store %arg17[%c0_250, %c0_251], %269 {strides = array<i32>} : memref<2x256xf32, #tpu.memory_space<vmem>>, vector<1x64xf32>,
    %271 = vector.extract_strided_slice %268 {offsets = [1, 0], sizes = [1, 64], strides = [1, 1]} : vector<2x64xf32> to vector<1x64xf32>
    %c0_252 = arith.constant 0 : index
    %c64_253 = arith.constant 64 : index
    %272 = vector.load %arg17[%c0_252, %c64_253] : memref<2x256xf32, #tpu.memory_space<vmem>>, vector<1x64xf32>
    tpu.vector_store %arg17[%c0_252, %c64_253], %271 {strides = array<i32>} : memref<2x256xf32, #tpu.memory_space<vmem>>, vector<1x64xf32>,
    %c8_254 = arith.constant 8 : index
    %c0_255 = arith.constant 0 : index
    %273 = tpu.strided_load %arg16[%c8_254, %c0_255] {strides = array<i32: 2, 1>} : memref<32x64xf32, #tpu.memory_space<vmem>>, vector<2x64xf32>
    %c9_256 = arith.constant 9 : index
    %c0_257 = arith.constant 0 : index
    %274 = tpu.strided_load %arg16[%c9_256, %c0_257] {strides = array<i32: 2, 1>} : memref<32x64xf32, #tpu.memory_space<vmem>>, vector<2x64xf32>
    %c12_258 = arith.constant 12 : index
    %c0_259 = arith.constant 0 : index
    %275 = tpu.strided_load %arg16[%c12_258, %c0_259] {strides = array<i32: 2, 1>} : memref<32x64xf32, #tpu.memory_space<vmem>>, vector<2x64xf32>
    %c13_260 = arith.constant 13 : index
    %c0_261 = arith.constant 0 : index
    %276 = tpu.strided_load %arg16[%c13_260, %c0_261] {strides = array<i32: 2, 1>} : memref<32x64xf32, #tpu.memory_space<vmem>>, vector<2x64xf32>
    %277 = arith.maximumf %273, %274 : vector<2x64xf32>
    %278 = arith.maximumf %275, %276 : vector<2x64xf32>
    %279 = arith.maximumf %277, %278 : vector<2x64xf32>
    %280 = vector.extract_strided_slice %279 {offsets = [0, 0], sizes = [1, 64], strides = [1, 1]} : vector<2x64xf32> to vector<1x64xf32>
    %c0_262 = arith.constant 0 : index
    %c128_263 = arith.constant 128 : index
    %281 = vector.load %arg17[%c0_262, %c128_263] : memref<2x256xf32, #tpu.memory_space<vmem>>, vector<1x64xf32>
    tpu.vector_store %arg17[%c0_262, %c128_263], %280 {strides = array<i32>} : memref<2x256xf32, #tpu.memory_space<vmem>>, vector<1x64xf32>,
    %282 = vector.extract_strided_slice %279 {offsets = [1, 0], sizes = [1, 64], strides = [1, 1]} : vector<2x64xf32> to vector<1x64xf32>
    %c0_264 = arith.constant 0 : index
    %c192_265 = arith.constant 192 : index
    %283 = vector.load %arg17[%c0_264, %c192_265] : memref<2x256xf32, #tpu.memory_space<vmem>>, vector<1x64xf32>
    tpu.vector_store %arg17[%c0_264, %c192_265], %282 {strides = array<i32>} : memref<2x256xf32, #tpu.memory_space<vmem>>, vector<1x64xf32>,
    %c16_266 = arith.constant 16 : index
    %c0_267 = arith.constant 0 : index
    %284 = tpu.strided_load %arg16[%c16_266, %c0_267] {strides = array<i32: 2, 1>} : memref<32x64xf32, #tpu.memory_space<vmem>>, vector<2x64xf32>
    %c17_268 = arith.constant 17 : index
    %c0_269 = arith.constant 0 : index
    %285 = tpu.strided_load %arg16[%c17_268, %c0_269] {strides = array<i32: 2, 1>} : memref<32x64xf32, #tpu.memory_space<vmem>>, vector<2x64xf32>
    %c20_270 = arith.constant 20 : index
    %c0_271 = arith.constant 0 : index
    %286 = tpu.strided_load %arg16[%c20_270, %c0_271] {strides = array<i32: 2, 1>} : memref<32x64xf32, #tpu.memory_space<vmem>>, vector<2x64xf32>
    %c21_272 = arith.constant 21 : index
    %c0_273 = arith.constant 0 : index
    %287 = tpu.strided_load %arg16[%c21_272, %c0_273] {strides = array<i32: 2, 1>} : memref<32x64xf32, #tpu.memory_space<vmem>>, vector<2x64xf32>
    %288 = arith.maximumf %284, %285 : vector<2x64xf32>
    %289 = arith.maximumf %286, %287 : vector<2x64xf32>
    %290 = arith.maximumf %288, %289 : vector<2x64xf32>
    %291 = vector.extract_strided_slice %290 {offsets = [0, 0], sizes = [1, 64], strides = [1, 1]} : vector<2x64xf32> to vector<1x64xf32>
    %c1_274 = arith.constant 1 : index
    %c0_275 = arith.constant 0 : index
    %292 = vector.load %arg17[%c1_274, %c0_275] : memref<2x256xf32, #tpu.memory_space<vmem>>, vector<1x64xf32>
    tpu.vector_store %arg17[%c1_274, %c0_275], %291 {strides = array<i32>} : memref<2x256xf32, #tpu.memory_space<vmem>>, vector<1x64xf32>,
    %293 = vector.extract_strided_slice %290 {offsets = [1, 0], sizes = [1, 64], strides = [1, 1]} : vector<2x64xf32> to vector<1x64xf32>
    %c1_276 = arith.constant 1 : index
    %c64_277 = arith.constant 64 : index
    %294 = vector.load %arg17[%c1_276, %c64_277] : memref<2x256xf32, #tpu.memory_space<vmem>>, vector<1x64xf32>
    tpu.vector_store %arg17[%c1_276, %c64_277], %293 {strides = array<i32>} : memref<2x256xf32, #tpu.memory_space<vmem>>, vector<1x64xf32>,
    %c24_278 = arith.constant 24 : index
    %c0_279 = arith.constant 0 : index
    %295 = tpu.strided_load %arg16[%c24_278, %c0_279] {strides = array<i32: 2, 1>} : memref<32x64xf32, #tpu.memory_space<vmem>>, vector<2x64xf32>
    %c25_280 = arith.constant 25 : index
    %c0_281 = arith.constant 0 : index
    %296 = tpu.strided_load %arg16[%c25_280, %c0_281] {strides = array<i32: 2, 1>} : memref<32x64xf32, #tpu.memory_space<vmem>>, vector<2x64xf32>
    %c28_282 = arith.constant 28 : index
    %c0_283 = arith.constant 0 : index
    %297 = tpu.strided_load %arg16[%c28_282, %c0_283] {strides = array<i32: 2, 1>} : memref<32x64xf32, #tpu.memory_space<vmem>>, vector<2x64xf32>
    %c29 = arith.constant 29 : index
    %c0_284 = arith.constant 0 : index
    %298 = tpu.strided_load %arg16[%c29, %c0_284] {strides = array<i32: 2, 1>} : memref<32x64xf32, #tpu.memory_space<vmem>>, vector<2x64xf32>
    %299 = arith.maximumf %295, %296 : vector<2x64xf32>
    %300 = arith.maximumf %297, %298 : vector<2x64xf32>
    %301 = arith.maximumf %299, %300 : vector<2x64xf32>
    %302 = vector.extract_strided_slice %301 {offsets = [0, 0], sizes = [1, 64], strides = [1, 1]} : vector<2x64xf32> to vector<1x64xf32>
    %c1_285 = arith.constant 1 : index
    %c128_286 = arith.constant 128 : index
    %303 = vector.load %arg17[%c1_285, %c128_286] : memref<2x256xf32, #tpu.memory_space<vmem>>, vector<1x64xf32>
    tpu.vector_store %arg17[%c1_285, %c128_286], %302 {strides = array<i32>} : memref<2x256xf32, #tpu.memory_space<vmem>>, vector<1x64xf32>,
    %304 = vector.extract_strided_slice %301 {offsets = [1, 0], sizes = [1, 64], strides = [1, 1]} : vector<2x64xf32> to vector<1x64xf32>
    %c1_287 = arith.constant 1 : index
    %c192_288 = arith.constant 192 : index
    %305 = vector.load %arg17[%c1_287, %c192_288] : memref<2x256xf32, #tpu.memory_space<vmem>>, vector<1x64xf32>
    tpu.vector_store %arg17[%c1_287, %c192_288], %304 {strides = array<i32>} : memref<2x256xf32, #tpu.memory_space<vmem>>, vector<1x64xf32>,
    %c0_289 = arith.constant 0 : index
    %c0_290 = arith.constant 0 : index
    %306 = vector.load %arg17[%c0_289, %c0_290] : memref<2x256xf32, #tpu.memory_space<vmem>>, vector<2x256xf32>
    %c0_291 = arith.constant 0 : index
    %c0_292 = arith.constant 0 : index
    %307 = vector.load %arg8[%c0_291, %c0_292] : memref<256x32xf32, #tpu.memory_space<vmem>>, vector<256x32xf32>
    %cst_293 = arith.constant dense<0.000000e+00> : vector<2x32xf32>
    %308 = tpu.matmul %306, %307, %cst_293 {dimension_numbers = #tpu.dot_dimension_numbers<[1], [0], [0], [1], [0, 0, 1, 1], [], []>} : vector<2x256xf32>, vector<256x32xf32>, vector<2x32xf32> -> vector<2x32xf32>
    %c0_294 = arith.constant 0 : index
    %c0_295 = arith.constant 0 : index
    %309 = vector.load %arg9[%c0_294, %c0_295] : memref<1x32xf32, #tpu.memory_space<vmem>>, vector<1x32xf32>
    %310 = vector.broadcast %309 : vector<1x32xf32> to vector<2x32xf32>
    %311 = arith.addf %308, %310 : vector<2x32xf32>
    %cst_296 = arith.constant 0.000000e+00 : f32
    %312 = vector.broadcast %cst_296 : f32 to vector<2x32xf32>
    %313 = arith.maximumf %311, %312 : vector<2x32xf32>
    %c0_297 = arith.constant 0 : index
    %c0_298 = arith.constant 0 : index
    %314 = vector.load %arg10[%c0_297, %c0_298] : memref<1x32xf32, #tpu.memory_space<vmem>>, vector<1x32xf32>
    %315 = vector.broadcast %314 : vector<1x32xf32> to vector<2x32xf32>
    %316 = arith.mulf %313, %315 : vector<2x32xf32>
    %cst_299 = arith.constant dense<0.000000e+00> : vector<2xf32>
    %317 = vector.multi_reduction <add>, %316, %cst_299 [1] : vector<2x32xf32> to vector<2xf32>
    %318 = vector.shape_cast %317 : vector<2xf32> to vector<2x1xf32>
    %c0_300 = arith.constant 0 : index
    %c0_301 = arith.constant 0 : index
    %319 = vector.load %arg11[%c0_300, %c0_301] : memref<1x1xf32, #tpu.memory_space<vmem>>, vector<1x1xf32>
    %320 = vector.broadcast %319 : vector<1x1xf32> to vector<2x1xf32>
    %321 = arith.addf %318, %320 : vector<2x1xf32>
    %cst_302 = arith.constant 0.000000e+00 : f32
    %322 = vector.broadcast %cst_302 : f32 to vector<2x1xf32>
    %323 = arith.subf %322, %321 : vector<2x1xf32>
    %324 = math.exp %323 : vector<2x1xf32>
    %cst_303 = arith.constant 1.000000e+00 : f32
    %325 = vector.broadcast %cst_303 : f32 to vector<2x1xf32>
    %326 = arith.addf %325, %324 : vector<2x1xf32>
    %cst_304 = arith.constant 1.000000e+00 : f32
    %327 = vector.broadcast %cst_304 : f32 to vector<2x1xf32>
    %328 = arith.divf %327, %326 : vector<2x1xf32>
    %c0_305 = arith.constant 0 : index
    %c0_306 = arith.constant 0 : index
    %329 = vector.load %arg12[%c0_305, %c0_306] : memref<2x1xf32, #tpu.memory_space<vmem>>, vector<2x1xf32>
    tpu.vector_store %arg12[%c0_305, %c0_306], %328 {strides = array<i32>} : memref<2x1xf32, #tpu.memory_space<vmem>>, vector<2x1xf32>,
    return
  }
  func.func @transform_0(%arg0: i32) -> (i32, i32) {
    %c0_i32 = arith.constant 0 : i32
    %c0_i32_0 = arith.constant 0 : i32
    %c0_i32_1 = arith.constant 0 : i32
    return %c0_i32, %c0_i32_0 : i32, i32
  }
  func.func @transform_1(%arg0: i32) -> (i32, i32) {
    %c0_i32 = arith.constant 0 : i32
    %c0_i32_0 = arith.constant 0 : i32
    %c0_i32_1 = arith.constant 0 : i32
    return %c0_i32, %c0_i32_0 : i32, i32
  }
  func.func @transform_2(%arg0: i32) -> (i32, i32) {
    %c0_i32 = arith.constant 0 : i32
    %c0_i32_0 = arith.constant 0 : i32
    %c0_i32_1 = arith.constant 0 : i32
    return %c0_i32, %c0_i32_0 : i32, i32
  }
  func.func @transform_3(%arg0: i32) -> (i32, i32) {
    %c0_i32 = arith.constant 0 : i32
    %c0_i32_0 = arith.constant 0 : i32
    %c0_i32_1 = arith.constant 0 : i32
    return %c0_i32, %c0_i32_0 : i32, i32
  }
  func.func @transform_4(%arg0: i32) -> (i32, i32) {
    %c0_i32 = arith.constant 0 : i32
    %c0_i32_0 = arith.constant 0 : i32
    %c0_i32_1 = arith.constant 0 : i32
    return %c0_i32, %c0_i32_0 : i32, i32
  }
  func.func @transform_5(%arg0: i32) -> (i32, i32) {
    %c0_i32 = arith.constant 0 : i32
    %c0_i32_0 = arith.constant 0 : i32
    %c0_i32_1 = arith.constant 0 : i32
    return %c0_i32, %c0_i32_0 : i32, i32
  }
  func.func @transform_6(%arg0: i32) -> (i32, i32) {
    %c0_i32 = arith.constant 0 : i32
    %c0_i32_0 = arith.constant 0 : i32
    %c0_i32_1 = arith.constant 0 : i32
    return %c0_i32, %c0_i32_0 : i32, i32
  }
  func.func @transform_7(%arg0: i32) -> (i32, i32) {
    %c0_i32 = arith.constant 0 : i32
    %c0_i32_0 = arith.constant 0 : i32
    %c0_i32_1 = arith.constant 0 : i32
    return %c0_i32, %c0_i32_0 : i32, i32
  }
  func.func @transform_8(%arg0: i32) -> (i32, i32) {
    %c0_i32 = arith.constant 0 : i32
    %c0_i32_0 = arith.constant 0 : i32
    %c0_i32_1 = arith.constant 0 : i32
    return %c0_i32, %c0_i32_0 : i32, i32
  }
  func.func @transform_9(%arg0: i32) -> (i32, i32) {
    %c0_i32 = arith.constant 0 : i32
    %c0_i32_0 = arith.constant 0 : i32
    %c0_i32_1 = arith.constant 0 : i32
    return %c0_i32, %c0_i32_0 : i32, i32
  }
  func.func @transform_10(%arg0: i32) -> (i32, i32) {
    %c0_i32 = arith.constant 0 : i32
    %c0_i32_0 = arith.constant 0 : i32
    %c0_i32_1 = arith.constant 0 : i32
    return %c0_i32, %c0_i32_0 : i32, i32
  }
  func.func @transform_11(%arg0: i32) -> (i32, i32) {
    %c0_i32 = arith.constant 0 : i32
    %c0_i32_0 = arith.constant 0 : i32
    %c0_i32_1 = arith.constant 0 : i32
    return %c0_i32, %c0_i32_0 : i32, i32
  }
}

</mosaic_0001>

<bundles_post_ra>
// kernel: relation_network_forward.1
= control target key start
LH: loop header
LB: loop body
LE: loop exit
PB: predicated region body
PF: predicated region fallthrough
CT: control target
= control target key end

     0   :  { %vm448_vm0 = vsmask.f32 7424  ;;  %vm898_vm1 = vcmask 1046528   ;;  %vm2115_vm2 = vcmask 1045504   ;;  %vm2870_vm3 = vsmask.f32 5376  ;;  %s8525_s1 = inlined_call_operand.vmem [shape: bf16[1152,64], index: 1, kind: input, shape index: {}]   ;;  %s8526_s0 = inlined_call_operand.vmem [shape: bf16[200,128], index: 0, kind: input, shape index: {}]   ;;  %s8527_s4 = inlined_call_operand.vmem [shape: bf16[576,64], index: 4, kind: input, shape index: {}]   ;;  %s8528_s2 = inlined_call_operand.vmem [shape: f32[1,64], index: 2, kind: input, shape index: {}]   ;;  %s8529_s3 = inlined_call_operand.vmem [shape: f32[1,64], index: 3, kind: input, shape index: {}]   ;;  %s8530_s7 = inlined_call_operand.vmem [shape: f32[256,32], index: 7, kind: input, shape index: {}]   ;;  %s8531_s5 = inlined_call_operand.vmem [shape: f32[1,64], index: 5, kind: input, shape index: {}]   ;;  %s8532_s6 = inlined_call_operand.vmem [shape: f32[1,64], index: 6, kind: input, shape index: {}]   ;;  %s8533_s10 = inlined_call_operand.<no memory space> [shape: f32[1,1], index: 10, kind: input, shape index: {}]   ;;  %s8534_s8 = inlined_call_operand.vmem [shape: f32[1,32], index: 8, kind: input, shape index: {}]   ;;  %s8535_s9 = inlined_call_operand.vmem [shape: f32[1,32], index: 9, kind: input, shape index: {}]   ;;  %s8536_s11 = inlined_call_operand.vmem [shape: f32[2,1], index: 11, kind: output, shape index: {}]  }
   0x1   :  { %v6601_v0 = vld [vmem:[%s8525_s1] sm:$0xff]   ;;  %v6602_v1 = vld [vmem:[%s8525_s1 + $0x8] sm:$0xff]   ;;  %v6603_v2 = vld [vmem:[%s8525_s1 + $0x10] sm:$0xff]   ;;  %vm1653_vm4 = vsmask.f32 6400  ;;  %vm326_vm5 = vcmask 523264  }
   0x2   :  { %5998 = vmatprep.subr.bf16.mxu0 %v6601_v0  ;;  %v6604_v3 = vld [vmem:[%s8525_s1 + $0x18] sm:$0xff]   ;;  %v6609_v4 = vld [vmem:[%s8526_s0] sm:$0xff]   ;;  %v6606_v6 = vld [vmem:[%s8525_s1 + $0x28] sm:$0xff]   ;;  %vm3332_vm6 = vcmask 1044480   ;;  %vm349_vm7 = vcmask 517120   ;;  %vm3884_vm8 = vcmask 519168  }
   0x3   :  { %5999 = vmatpush3.bf16.msra.mxu0 %v6601_v0  ;;  %6014 = vmatprep.mubr.bf16.mxu0 %v6609_v4  ;;  %v6605_v5 = vld [vmem:[%s8525_s1 + $0x20] sm:$0xff]   ;;  %v6607_v7 = vld [vmem:[%s8525_s1 + $0x30] sm:$0xff]   ;;  %v6608_v8 = vld [vmem:[%s8525_s1 + $0x38] sm:$0xff]   ;;  %vm5105_vm9 = vcmask 521218   ;;  %vm5100_vm10 = vcmask 523270   ;;  %vm5103_vm11 = vcmask 523268  }
   0x4   :  { %6000 = vmatprep.subr.bf16.mxu0 %v6602_v1  ;;  %v6611_v9 = vld [vmem:[%s8525_s1 + $0x40] sm:$0xff]   ;;  %v6610_v10 = vld [vmem:[%s8526_s0 + $0x8] sm:$0xff]   ;;  %v6613_v11 = vld [vmem:[%s8526_s0 + $0x10] sm:$0xff]   ;;  %vm5198_vm12 = vcmask 516096   ;;  %s6827_s14 = smov 64   ;;  %vm5213_vm13 = vcmask 1040896  }
   0x5   :  { %v6612_v12 = vld [vmem:[%s8525_s1 + $0x48] sm:$0xff]   ;;  %v6615_v13 = vld [vmem:[%s8525_s1 + $0x50] sm:$0xff]   ;;  %v6614_v14 = vld [vmem:[%s8526_s0 + $0x18] sm:$0xff]   ;;  %vm5423_vm14 = vcmask 254976   ;;  %vm5441_vm15 = vcmask 1024  }
   0x6   :  { %v6616_v15 = vld [vmem:[%s8526_s0 + $0x20] sm:$0xff]   ;;  %v6618_v16 = vld [vmem:[%s8525_s1 + $0x58] sm:$0xff]   ;;  %v6617_v19 = vld [vmem:[%s8526_s0 + $0x28] sm:$0xff]  }
   0x7   :  { %6001 = vmatpush3.bf16.msra.mxu0 %v6602_v1  ;;  %v6621_v17 = vld [vmem:[%s8525_s1 + $0x60] sm:$0xff]   ;;  %v6645_v20 = vld [vmem:[%s8525_s1 + $0xc8] sm:$0xff]   ;;  %v6619_v21 = vld [vmem:[%s8526_s0 + $0x30] sm:$0xff]  }
   0x8   :  { %6002 = vmatprep.subr.bf16.mxu0 %v6603_v2  ;;  %v6643_v18 = vld [vmem:[%s8525_s1 + $0xc0] sm:$0xff]   ;;  %v6622_v22 = vld [vmem:[%s8525_s1 + $0x68] sm:$0xff]   ;;  %v6648_v23 = vld [vmem:[%s8525_s1 + $0xd0] sm:$0xff]  }
   0x9   :  { %6118 = vmatprep.subr.bf16.mxu1 %v6643_v18  ;;  %v6620_v24 = vld [vmem:[%s8526_s0 + $0x38] sm:$0xff]   ;;  %v6625_v25 = vld [vmem:[%s8525_s1 + $0x70] sm:$0xff]   ;;  %v6623_v27 = vld [vmem:[%s8526_s0 + $0x40] sm:$0xff]  }
   0xa   :  { %6119 = vmatpush3.bf16.msra.mxu1 %v6643_v18  ;;  %v6650_v26 = vld [vmem:[%s8525_s1 + $0xd8] sm:$0xff]   ;;  %v6629_v29 = vld [vmem:[%s8526_s0] sm:$0xff]   ;;  %v6630_v31 = vld [vmem:[%s8526_s0 + $0x8] sm:$0xff]  }
   0xb   :  { %6003 = vmatpush3.bf16.msra.mxu0 %v6603_v2  ;;  %6120 = vmatprep.subr.bf16.mxu1 %v6645_v20  ;;  %v6628_v28 = vld [vmem:[%s8525_s1 + $0x78] sm:$0xff]   ;;  %v6653_v30 = vld [vmem:[%s8525_s1 + $0xe0] sm:$0xff]   ;;  %v6624_v32 = vld [vmem:[%s8526_s0 + $0x48] sm:$0xff]   ;;  %v452_v33 = vshll.u32 %v6629_v29, 16  ;;  %v457_v38 = vshll.u32 %v6630_v31, 16  ;;  %v450_v39 = vshrl.u32 %v6629_v29, 16 }
   0xc   :  { %6004 = vmatprep.subr.bf16.mxu0 %v6604_v3  ;;  %v6990_v34 = vld [vmem:[%s8525_s1 + $0x80] sm:$0xff]   ;;  %v6654_v35 = vld [vmem:[%s8525_s1 + $0xe8] sm:$0xff]   ;;  %v6631_v36 = vld [vmem:[%s8526_s0 + $0x10] sm:$0xff]   ;;  %v461_v53 = vshrl.u32 %v6630_v31, 16 }
   0xd   :  { %v6626_v37 = vld [vmem:[%s8526_s0 + $0x50] sm:$0xff]   ;;  %v454_v40 = vrot.slane %v452_v33, 1  ;;  %v465_v42 = vshll.u32 %v6631_v36, 16  ;;  %v459_v44 = vrot.slane %v457_v38, 1  ;;  %v6634_v45 = vld [vmem:[%s8526_s0 + $0x18] sm:$0xff]   ;;  %v469_v54 = vshrl.u32 %v6631_v36, 16 }
   0xe   :  { %6121 = vmatpush3.bf16.msra.mxu1 %v6645_v20  ;;  %v6659_v41 = vld [vmem:[%s8525_s1 + $0xf0] sm:$0xff]   ;;  %v6664_v46 = vld [vmem:[%s8526_s0 + $0x4] sm:$0xfe]   ;;  %v6627_v47 = vld [vmem:[%s8526_s0 + $0x58] ss:$0 sps:$4 sm:$0x11]  }
   0xf   :  { %6005 = vmatpush3.bf16.msra.mxu0 %v6604_v3  ;;  %6122 = vmatprep.subr.bf16.mxu1 %v6648_v23  ;;  %v6665_v43 = vld [vmem:[%s8526_s0 + $0xc] sm:$0xff]   ;;  %v455_v48 = vor.u32 %v454_v40, %v450_v39  ;;  %v6666_v50 = vld [vmem:[%s8526_s0 + $0x14] sm:$0xff]   ;;  %v1276_v52 = vrot.slane %v6664_v46, 1  ;;  %v473_v55 = vshll.u32 %v6634_v45, 16  ;;  %v6670_v59 = vld [vmem:[%s8526_s0 + $0x1c] sm:$0xff]   ;;  %v467_v60 = vrot.slane %v465_v42, 1 }
  0x10   :  { %6006 = vmatprep.subr.bf16.mxu0 %v6605_v5  ;;  %v1277_v49 = vrot.slane %v6665_v43, 1  ;;  %v6660_v51 = vld [vmem:[%s8525_s1 + $0xf8] sm:$0xff]   ;;  %v1279_v58 = vrot.slane %v6666_v50, 1  ;;  %v6635_v61 = vld [vmem:[%s8526_s0 + $0x20] sm:$0xff]   ;;  %v1281_v62 = vrot.slane %v6670_v59, 1  ;;  %v463_v63 = vor.u32 %v461_v53, %v459_v44  ;;  %v7034_v0 = vld [vmem:[%s8526_s0 + $0x28] sm:$0xff]  }
  0x11   :  { %v460_v57 = vsel %vm448_vm0, %v455_v48, %v459_v44  ;;  %v471_v1 = vor.u32 %v469_v54, %v467_v60  ;;  %v475_v2 = vrot.slane %v473_v55, 1  ;;  %v6671_v4 = vld [vmem:[%s8526_s0 + $0x24] sm:$0xff]   ;;  %v493_v29 = vshrl.u32 %v7034_v0, 16  ;;  %v6639_v31 = vld [vmem:[%s8525_s1 + $0x98] sm:$0xff]   ;;  %v7111_v50 = vld [vmem:[%s8526_s0 + $0x4c] sm:$0xff]  }
  0x12   :  { %6123 = vmatpush3.bf16.msra.mxu1 %v6648_v23  ;;  %v1278_v56 = vsel %vm898_vm1, %v1276_v52, %v1277_v49  ;;  %v1280_v3 = vsel %vm898_vm1, %v1277_v49, %v1279_v58  ;;  %v6680_v20 = vld [vmem:[%s8525_s1 + $0x148] sm:$0xff]   ;;  %v6641_v38 = vld [vmem:[%s8526_s0 + $0x40] sm:$0xff]   ;;  %v6687_v43 = vld [vmem:[%s8525_s1 + $0x158] sm:$0xff]  }
  0x13   :  { %6007 = vmatpush3.bf16.msra.mxu0 %v6605_v5  ;;  %6124 = vmatprep.subr.bf16.mxu1 %v6650_v26  ;;  %v477_v5 = vshrl.u32 %v6634_v45, 16  ;;  %v7098_v42 = vld [vmem:[%s8526_s0 + $0x48] sm:$0xff]   ;;  %v513_v52 = vshll.u32 %v6641_v38, 16  ;;  %v6692_v53 = vld [vmem:[%s8525_s1 + $0x160] sm:$0xff]  }
  0x14   :  { %6008 = vmatprep.subr.bf16.mxu0 %v6606_v6  ;;  %6134 = vmatprep.mubr.bf16.mxu1 %v1278_v56  ;;  %v6684_v49 = vld [vmem:[%s8526_s0 + $0x44] sm:$0xff]   ;;  %v521_v56 = vshll.u32 %v7098_v42, 16 }
  0x15   :  { %v6644_v55 = vld [vmem:[%s8525_s1 + $0xa8] sm:$0xff]   ;;  %v1291_v59 = vrot.slane %v6684_v49, 1 }
  0x16   :  { %6125 = vmatpush3.bf16.msra.mxu1 %v6650_v26  ;;  %v6677_v26 = vld [vmem:[%s8526_s0 + $0x34] sm:$0xff]  }
  0x17   :  { %6009 = vmatpush3.bf16.msra.mxu0 %v6606_v6  ;;  %6126 = vmatprep.subr.bf16.mxu1 %v6653_v30  ;;  %v1282_v6 = vsel %vm898_vm1, %v1279_v58, %v1281_v62  ;;  %v517_v58 = vshrl.u32 %v6641_v38, 16  ;;  %v6706_v38 = vld [vmem:[%s8526_s0 + $0x14] sm:$0xff]  }
  0x18   :  { %6010 = vmatprep.subr.bf16.mxu0 %v6607_v7 }
  0x1a   :  { %6127 = vmatpush3.bf16.msra.mxu1 %v6653_v30 }
  0x1b   :  { %6011 = vmatpush3.bf16.msra.mxu0 %v6607_v7  ;;  %6128 = vmatprep.subr.bf16.mxu1 %v6654_v35  ;;  %v6633_v7 = vld [vmem:[%s8525_s1 + $0x88] sm:$0xff]  }
  0x1c   :  { %6012 = vmatprep.subr.bf16.mxu0 %v6608_v8 }
  0x1e   :  { %6129 = vmatpush3.bf16.msra.mxu1 %v6654_v35 }
  0x1f   :  { %6013 = vmatpush3.bf16.msra.mxu0 %v6608_v8  ;;  %6130 = vmatprep.subr.bf16.mxu1 %v6659_v41  ;;  %v481_v8 = vshll.u32 %v6635_v61, 16 }
  0x20   :  { %6038 = vmatprep.subr.bf16.mxu0 %v6611_v9 }
  0x21   :  { %v483_v18 = vrot.slane %v481_v8, 1 }
  0x22   :  { %6015 = vmatmul.mubr.bf16.vlgmr.msra.gmra.mrb[0].mxu0 %v6610_v10  ;;  %6131 = vmatpush3.bf16.msra.mxu1 %v6659_v41  ;;  %v468_v10 = vsel %vm448_vm0, %v463_v63, %v467_v60  ;;  %v6642_v41 = vld [vmem:[%s8525_s1 + $0xa0] sm:$0xff]   ;;  %v6647_v60 = vld [vmem:[%s8526_s0 + $0x50] sm:$0xff]   ;;  %v6693_v63 = vld [vmem:[%s8525_s1 + $0x168] sm:$0xff]  }
  0x23   :  { %6039 = vmatpush3.bf16.msra.mxu0 %v6611_v9  ;;  %6018 = vmatprep.mubr.bf16.mxu0 %v6613_v11  ;;  %v6676_v9 = vld [vmem:[%s8526_s0 + $0x2c] sm:$0xff]   ;;  %v485_v11 = vshrl.u32 %v6635_v61, 16  ;;  %v1293_v61 = vrot.slane %v7111_v50, 1  ;;  %v529_v8 = vshll.u32 %v6647_v60, 16 }
  0x24   :  { %6040 = vmatprep.subr.bf16.mxu0 %v6612_v12  ;;  %6132 = vmatprep.subr.bf16.mxu1 %v6660_v51 }
  0x25   :  { %v487_v23 = vor.u32 %v485_v11, %v483_v18  ;;  %v6652_v11 = vld [vmem:[%s8525_s1 + $0xb8] sm:$0xff]  }
  0x26   :  { %6133 = vmatpush3.bf16.msra.mxu1 %v6660_v51 }
  0x27   :  { %6041 = vmatpush3.bf16.msra.mxu0 %v6612_v12  ;;  %v489_v12 = vshll.u32 %v7034_v0, 16 }
  0x28   :  { %6042 = vmatprep.subr.bf16.mxu0 %v6615_v13 }
  0x29   :  { %6135 = vmatmul.mubr.bf16.vlgmr.msra.gmra.mrb[0].mxu1 %v1280_v3 }
  0x2a   :  { %6019 = vmatmul.mubr.bf16.gmra.mrb[4].mxu0 %v6614_v14  ;;  %6138 = vmatprep.mubr.bf16.mxu1 %v1282_v6  ;;  %v1283_v14 = vrot.slane %v6671_v4, 1  ;;  %v6651_v4 = vld [vmem:[%s8526_s0 + $0x58] ss:$0 sps:$4 sm:$0x33]  }
  0x2b   :  { %6043 = vmatpush3.bf16.msra.mxu0 %v6615_v13  ;;  %6022 = vmatprep.mubr.bf16.mxu0 %v6616_v15  ;;  %v476_v13 = vsel %vm448_vm0, %v471_v1, %v475_v2  ;;  %v6678_v15 = vld [vmem:[%s8525_s1 + $0x140] sm:$0xff]   ;;  %v523_v1 = vrot.slane %v521_v56, 1  ;;  %v6690_v6 = vld [vmem:[%s8526_s0 + $0x54] sm:$0xff]  }
  0x2c   :  { %6044 = vmatprep.subr.bf16.mxu0 %v6618_v16  ;;  %6198 = vmatprep.subr.bf16.mxu1 %v6678_v15 }
  0x2d   :  { %6199 = vmatpush3.bf16.msra.mxu1 %v6678_v15 }
  0x2e   :  { %6200 = vmatprep.subr.bf16.mxu1 %v6680_v20 }
  0x2f   :  { %6045 = vmatpush3.bf16.msra.mxu0 %v6618_v16  ;;  %v6638_v16 = vld [vmem:[%s8526_s0 + $0x30] sm:$0xff]  }
  0x30   :  { %6046 = vmatprep.subr.bf16.mxu0 %v6621_v17  ;;  %v497_v30 = vshll.u32 %v6638_v16, 16  ;;  %v501_v33 = vshrl.u32 %v6638_v16, 16  ;;  %v537_v16 = vshll.u32 %v6651_v4, 16 }
  0x31   :  { %6201 = vmatpush3.bf16.msra.mxu1 %v6680_v20  ;;  %v6700_v20 = vld [vmem:[%s8525_s1 + $0x178] sm:$0xff]  }
  0x32   :  { %6023 = vmatmul.mubr.bf16.gmra.mrb[8].mxu0 %v6617_v19  ;;  %v6636_v19 = vld [vmem:[%s8525_s1 + $0x90] sm:$0xff]   ;;  %v499_v40 = vrot.slane %v497_v30, 1  ;;  %v6655_v30 = vld [vmem:[%s8526_s0] sm:$0xfe]  }
  0x33   :  { %6026 = vmatprep.mubr.bf16.mxu0 %v6619_v21  ;;  %6047 = vmatpush3.bf16.msra.mxu0 %v6621_v17  ;;  %v1285_v17 = vrot.slane %v6676_v9, 1  ;;  %v479_v21 = vor.u32 %v477_v5, %v475_v2  ;;  %v6649_v2 = vld [vmem:[%s8525_s1 + $0xb0] sm:$0xff]   ;;  %v533_v9 = vshrl.u32 %v6647_v60, 16 }
  0x34   :  { %6048 = vmatprep.subr.bf16.mxu0 %v6622_v22  ;;  %v503_v45 = vor.u32 %v501_v33, %v499_v40 }
  0x37   :  { %6049 = vmatpush3.bf16.msra.mxu0 %v6622_v22  ;;  %v7066_v22 = vld [vmem:[%s8526_s0 + $0x38] sm:$0xff]  }
  0x38   :  { %6050 = vmatprep.subr.bf16.mxu0 %v6625_v25  ;;  %v505_v36 = vshll.u32 %v7066_v22, 16 }
  0x3a   :  { %6027 = vmatmul.mubr.bf16.gmra.mrb[12].mxu0 %v6620_v24  ;;  %v491_v24 = vrot.slane %v489_v12, 1  ;;  %v507_v46 = vrot.slane %v505_v36, 1  ;;  %v6698_v12 = vld [vmem:[%s8526_s0 + $0x5c] ss:$0 sps:$4 sm:$0x33]   ;;  %v899_v36 = vrot.slane %v6655_v30, 1 }
  0x3b   :  { %6030 = vmatprep.mubr.bf16.mxu0 %v6623_v27  ;;  %6051 = vmatpush3.bf16.msra.mxu0 %v6625_v25  ;;  %v1284_v25 = vsel %vm898_vm1, %v1281_v62, %v1283_v14  ;;  %v1286_v27 = vsel %vm898_vm1, %v1283_v14, %v1285_v17  ;;  %v515_v62 = vrot.slane %v513_v52, 1 }
  0x3c   :  { %6052 = vmatprep.subr.bf16.mxu0 %v6628_v28  ;;  %6139 = vmatmul.mubr.bf16.gmra.mrb[4].mxu1 %v1284_v25  ;;  %v492_v35 = vsel %vm448_vm0, %v487_v23, %v491_v24  ;;  %v495_v44 = vor.u32 %v493_v29, %v491_v24  ;;  %v539_v23 = vrot.slane %v537_v16, 1  ;;  %v6658_v24 = vld [vmem:[%s8525_s1 + $0x100] sm:$0xff]  }
  0x3d   :  { %6142 = vmatprep.mubr.bf16.mxu1 %v1286_v27  ;;  %v519_v3 = vor.u32 %v517_v58, %v515_v62  ;;  %v6704_v27 = vld [vmem:[%s8526_s0 + $0x4] sm:$0xfc]  }
  0x3e   :  { %v500_v54 = vsel %vm448_vm0, %v495_v44, %v499_v40  ;;  %v2116_v33 = vrot.slane %v6704_v27, 2  ;;  %v6710_v40 = vld [vmem:[%s8526_s0 + $0x1c] sm:$0xff]  }
  0x3f   :  { %6053 = vmatpush3.bf16.msra.mxu0 %v6628_v28  ;;  %v7076_v28 = vld [vmem:[%s8526_s0 + $0x3c] sm:$0xff]   ;;  %v524_v15 = vsel %vm448_vm0, %v519_v3, %v523_v1  ;;  %v6717_v3 = vld [vmem:[%s8526_s0 + $0x34] sm:$0xff]  }
  0x40   :  { %6078 = vmatprep.subr.bf16.mxu0 %v6990_v34  ;;  %v1289_v39 = vrot.slane %v7076_v28, 1  ;;  %v6705_v28 = vld [vmem:[%s8526_s0 + $0xc] sm:$0xff]   ;;  %v6662_v44 = vld [vmem:[%s8526_s0 + $0x18] sm:$0xff]   ;;  %v6732_v27 = vld [vmem:[%s8525_s1 + $0x1e0] sm:$0xff]  }
  0x41   :  { %v904_v49 = vrot.slane %v6662_v44, 1  ;;  %v6730_v44 = vld [vmem:[%s8526_s0 + $0x54] sm:$0xff]  }
  0x42   :  { %6031 = vmatmul.mubr.bf16.gmra.mrb[16].mxu0 %v6624_v32  ;;  %v484_v32 = vsel %vm448_vm0, %v479_v21, %v483_v18  ;;  %v1292_v5 = vsel %vm898_vm1, %v1289_v39, %v1291_v59  ;;  %v1297_v18 = vrot.slane %v6698_v12, 1 }
  0x43   :  { %6034 = vmatprep.mubr.bf16.mxu0 %v6626_v37  ;;  %v1287_v37 = vrot.slane %v6677_v26, 1 }
  0x45   :  { %v1288_v48 = vsel %vm898_vm1, %v1285_v17, %v1287_v37  ;;  %v1290_v51 = vsel %vm898_vm1, %v1287_v37, %v1289_v39  ;;  %v1295_v17 = vrot.slane %v6690_v6, 1  ;;  %v7233_v6 = vld [vmem:[%s8526_s0 + $0x3c] sm:$0xff]  }
  0x46   :  { %6143 = vmatmul.mubr.bf16.gmra.mrb[8].mxu1 %v1288_v48  ;;  %v6711_v48 = vld [vmem:[%s8526_s0 + $0x24] sm:$0xff]   ;;  %v2129_v16 = vrot.slane %v7233_v6, 2 }
  0x47   :  { %6146 = vmatprep.mubr.bf16.mxu1 %v1290_v51  ;;  %v1296_v25 = vsel %vm898_vm1, %v1293_v61, %v1295_v17  ;;  %v1298_v26 = vsel %vm898_vm1, %v1295_v17, %v1297_v18  ;;  %v6716_v51 = vld [vmem:[%s8526_s0 + $0x2c] sm:$0xff]   ;;  %v2123_v60 = vrot.slane %v6711_v48, 2 }
  0x4a   :  { %6035 = vmatmul.mubr.bf16.gmra.mrb[20].mxu0 %v6627_v47  ;;  %v509_v47 = vshrl.u32 %v7066_v22, 16 }
  0x4b   :  { %6054 = vmatprep.mubr.bf16.mxu0 %v460_v57  ;;  %v508_v57 = vsel %vm448_vm0, %v503_v45, %v507_v46  ;;  %v2119_v45 = vrot.slane %v6706_v38, 2 }
  0x4c   :  { %v511_v0 = vor.u32 %v509_v47, %v507_v46  ;;  %v2121_v46 = vrot.slane %v6710_v40, 2  ;;  %v6686_v40 = vld [vmem:[%s8525_s1 + $0x130] sm:$0xff]  }
  0x4e   :  { %v516_v14 = vsel %vm448_vm0, %v511_v0, %v515_v62  ;;  %6147 = vmatmul.mubr.bf16.gmra.mrb[12].mxu1 %v1292_v5  ;;  %v2122_v52 = vsel %vm2115_vm2, %v2119_v45, %v2121_v46 }
  0x52   :  { %6055 = vmatmul.mubr.bf16.vlgmr.msra.gmra.mrb[24].mxu0 %v468_v10  ;;  %v1294_v10 = vsel %vm898_vm1, %v1291_v59, %v1293_v61  ;;  %v6668_v59 = vld [vmem:[%s8526_s0 + $0x28] sm:$0xff]   ;;  %v2125_v61 = vrot.slane %v6716_v51, 2  ;;  %v6691_v51 = vld [vmem:[%s8525_s1 + $0x138] sm:$0xff]  }
  0x53   :  { %6079 = vmatpush3.bf16.msra.mxu0 %v6990_v34  ;;  %6058 = vmatprep.mubr.bf16.mxu0 %v476_v13  ;;  %v6685_v34 = vld [vmem:[%s8525_s1 + $0x150] sm:$0xff]   ;;  %v908_v0 = vrot.slane %v6668_v59, 1 }
  0x54   :  { %6080 = vmatprep.subr.bf16.mxu0 %v6633_v7  ;;  %6202 = vmatprep.subr.bf16.mxu1 %v6685_v34  ;;  %v6699_v13 = vld [vmem:[%s8525_s1 + $0x170] sm:$0xff]   ;;  %v2126_v5 = vsel %vm2115_vm2, %v2123_v60, %v2125_v61 }
  0x55   :  { %6203 = vmatpush3.bf16.msra.mxu1 %v6685_v34  ;;  %6150 = vmatprep.mubr.bf16.mxu1 %v1294_v10  ;;  %v2117_v34 = vrot.slane %v6705_v28, 2  ;;  %v7245_v10 = vld [vmem:[%s8526_s0 + $0x40] sm:$0xff]   ;;  %v6745_v59 = vld [vmem:[%s8526_s0 + $0x10] sm:$0xff]  }
  0x56   :  { %6204 = vmatprep.subr.bf16.mxu1 %v6687_v43  ;;  %6151 = vmatmul.mubr.bf16.gmra.mrb[16].mxu1 %v1296_v25 }
  0x57   :  { %6081 = vmatpush3.bf16.msra.mxu0 %v6633_v7  ;;  %v525_v7 = vshrl.u32 %v7098_v42, 16  ;;  %6154 = vmatprep.mubr.bf16.mxu1 %v1298_v26  ;;  %v2118_v39 = vsel %vm2115_vm2, %v2116_v33, %v2117_v34  ;;  %v6657_v42 = vld [vmem:[%s8526_s0 + $0x10] sm:$0xff]   ;;  %v2120_v50 = vsel %vm2115_vm2, %v2117_v34, %v2119_v45 }
  0x58   :  { %6082 = vmatprep.subr.bf16.mxu0 %v6636_v19  ;;  %v902_v47 = vrot.slane %v6657_v42, 1  ;;  %v6696_v34 = vld [vmem:[%s8526_s0 + $0x14] sm:$0xff]   ;;  %v7312_v42 = vld [vmem:[%s8526_s0 + $0x5c] ss:$0 sps:$4 sm:$0x77]  }
  0x59   :  { %6205 = vmatpush3.bf16.msra.mxu1 %v6687_v43  ;;  %v527_v21 = vor.u32 %v525_v7, %v523_v1  ;;  %v6669_v1 = vld [vmem:[%s8526_s0 + $0x30] sm:$0xff]   ;;  %v1675_v48 = vshll.u32 %v6696_v34, 16 }
  0x5a   :  { %6059 = vmatmul.mubr.bf16.gmra.mrb[28].mxu0 %v484_v32  ;;  %6206 = vmatprep.subr.bf16.mxu1 %v6692_v53  ;;  %v6656_v32 = vld [vmem:[%s8526_s0 + $0x8] sm:$0xff]   ;;  %v905_v58 = vsel %vm898_vm1, %v902_v47, %v904_v49  ;;  %v6725_v7 = vld [vmem:[%s8525_s1 + $0x1d0] sm:$0xff]   ;;  %v910_v17 = vrot.slane %v6669_v1, 1  ;;  %v2880_v1 = vshrl.u32 %v6745_v59, 16 }
  0x5b   :  { %6083 = vmatpush3.bf16.msra.mxu0 %v6636_v19  ;;  %6062 = vmatprep.mubr.bf16.mxu0 %v492_v35  ;;  %v531_v19 = vrot.slane %v529_v8, 1  ;;  %v541_v35 = vshrl.u32 %v6651_v4, 16  ;;  %v900_v37 = vrot.slane %v6656_v32, 1  ;;  %v7227_v4 = vld [vmem:[%s8526_s0 + $0x38] sm:$0xff]  }
  0x5c   :  { %6084 = vmatprep.subr.bf16.mxu0 %v6639_v31  ;;  %v6672_v8 = vld [vmem:[%s8525_s1 + $0x118] sm:$0xff]   ;;  %v911_v32 = vsel %vm898_vm1, %v908_v0, %v910_v17 }
  0x5d   :  { %6207 = vmatpush3.bf16.msra.mxu1 %v6692_v53  ;;  %v535_v22 = vor.u32 %v533_v9, %v531_v19  ;;  %v532_v29 = vsel %vm448_vm0, %v527_v21, %v531_v19  ;;  %v901_v43 = vsel %vm898_vm1, %v899_v36, %v900_v37  ;;  %v6718_v53 = vld [vmem:[%s8525_s1 + $0x1c0] sm:$0xff]   ;;  %v903_v56 = vsel %vm898_vm1, %v900_v37, %v902_v47  ;;  %v7268_v19 = vld [vmem:[%s8526_s0 + $0x50] sm:$0xff]   ;;  %v6733_v37 = vld [vmem:[%s8525_s1 + $0x1e8] sm:$0xff]  }
  0x5e   :  { %6208 = vmatprep.subr.bf16.mxu1 %v6693_v63  ;;  %6155 = vmatmul.mubr.bf16.gmra.mrb[20].mxu1 %v1297_v18  ;;  %v6675_v18 = vld [vmem:[%s8525_s1 + $0x120] sm:$0xff]   ;;  %v914_v21 = vrot.slane %v7245_v10, 1  ;;  %v918_v30 = vrot.slane %v7268_v19, 1 }
  0x5f   :  { %6085 = vmatpush3.bf16.msra.mxu0 %v6639_v31  ;;  %v540_v31 = vsel %vm448_vm0, %v535_v22, %v539_v23  ;;  %6214 = vmatprep.mubr.bf16.mxu1 %v2118_v39  ;;  %v6694_v22 = vld [vmem:[%s8526_s0 + $0x4] sm:$0xfe]  }
  0x60   :  { %6086 = vmatprep.subr.bf16.mxu0 %v6642_v41  ;;  %v1655_v38 = vshrl.u32 %v6694_v22, 16 }
  0x61   :  { %6209 = vmatpush3.bf16.msra.mxu1 %v6693_v63  ;;  %v6667_v63 = vld [vmem:[%s8525_s1 + $0x110] sm:$0xff]  }
  0x62   :  { %6063 = vmatmul.mubr.bf16.gmra.mrb[32].mxu0 %v500_v54  ;;  %6210 = vmatprep.subr.bf16.mxu1 %v6699_v13  ;;  %v6661_v54 = vld [vmem:[%s8525_s1 + $0x108] sm:$0xff]  }
  0x63   :  { %6066 = vmatprep.mubr.bf16.mxu0 %v508_v57  ;;  %6087 = vmatpush3.bf16.msra.mxu0 %v6642_v41  ;;  %v543_v41 = vor.u32 %v541_v35, %v539_v23  ;;  %v6720_v57 = vld [vmem:[%s8525_s1 + $0x1c8] sm:$0xff]  }
  0x64   :  { %6088 = vmatprep.subr.bf16.mxu0 %v6644_v55  ;;  %v6724_v23 = vld [vmem:[%s8526_s0 + $0x44] sm:$0xff]  }
  0x65   :  { %6211 = vmatpush3.bf16.msra.mxu1 %v6699_v13  ;;  %v2127_v13 = vrot.slane %v6717_v3, 2  ;;  %v2131_v36 = vrot.slane %v6724_v23, 2  ;;  %v6750_v23 = vld [vmem:[%s8526_s0 + $0x20] sm:$0xff]  }
  0x66   :  { %6212 = vmatprep.subr.bf16.mxu1 %v6700_v20 }
  0x67   :  { %6089 = vmatpush3.bf16.msra.mxu0 %v6644_v55  ;;  %v6663_v55 = vld [vmem:[%s8526_s0 + $0x20] sm:$0xff]   ;;  %v2128_v26 = vsel %vm2115_vm2, %v2125_v61, %v2127_v13  ;;  %v2130_v28 = vsel %vm2115_vm2, %v2127_v13, %v2129_v16  ;;  %v2132_v47 = vsel %vm2115_vm2, %v2129_v16, %v2131_v36  ;;  %v2882_v16 = vrot.slane %v2880_v1, 2 }
  0x68   :  { %6090 = vmatprep.subr.bf16.mxu0 %v6649_v2  ;;  %v906_v62 = vrot.slane %v6663_v55, 1  ;;  %v2135_v55 = vrot.slane %v6730_v44, 2 }
  0x69   :  { %6213 = vmatpush3.bf16.msra.mxu1 %v6700_v20  ;;  %v912_v20 = vrot.slane %v7227_v4, 1  ;;  %v1677_v4 = vrot.slane %v1675_v48, 2 }
  0x6a   :  { %6067 = vmatmul.mubr.bf16.gmra.mrb[36].mxu0 %v516_v14  ;;  %6278 = vmatprep.subr.bf16.mxu1 %v6718_v53  ;;  %v907_v9 = vsel %vm898_vm1, %v904_v49, %v906_v62  ;;  %v909_v12 = vsel %vm898_vm1, %v906_v62, %v908_v0  ;;  %v6727_v14 = vld [vmem:[%s8525_s1 + $0x1d8] sm:$0xff]  }
  0x6b   :  { %6070 = vmatprep.mubr.bf16.mxu0 %v524_v15  ;;  %6091 = vmatpush3.bf16.msra.mxu0 %v6649_v2  ;;  %v2124_v2 = vsel %vm2115_vm2, %v2121_v46, %v2123_v60  ;;  %v7259_v15 = vld [vmem:[%s8526_s0 + $0x58] ss:$0 sps:$4 sm:$0x33]   ;;  %v913_v35 = vsel %vm898_vm1, %v910_v17, %v912_v20  ;;  %v1672_v46 = vshrl.u32 %v6696_v34, 16  ;;  %v6751_v34 = vld [vmem:[%s8526_s0 + $0x28] sm:$0xff]  }
  0x6c   :  { %6092 = vmatprep.subr.bf16.mxu0 %v6652_v11  ;;  %6215 = vmatmul.mubr.bf16.vlgmr.msra.gmra.mrb[24].mxu1 %v2120_v50  ;;  %v920_v33 = vrot.slane %v7259_v15, 1  ;;  %v6739_v50 = vld [vmem:[%s8525_s1 + $0x1f0] sm:$0xff]   ;;  %v6746_v0 = vld [vmem:[%s8526_s0 + $0x18] sm:$0xff]  }
  0x6d   :  { %6218 = vmatprep.mubr.bf16.mxu1 %v2122_v52  ;;  %6279 = vmatpush3.bf16.msra.mxu1 %v6718_v53  ;;  %v7325_v52 = vrot.slane %v1655_v38, 1  ;;  %v7330_v53 = vld [vmem:[%s8526_s0 + $0x1c] sm:$0xff]   ;;  %v1674_v3 = vrot.slane %v1672_v46, 1 }
  0x6e   :  { %6280 = vmatprep.subr.bf16.mxu1 %v6720_v57 }
  0x6f   :  { %6093 = vmatpush3.bf16.msra.mxu0 %v6652_v11  ;;  %v7250_v11 = vld [vmem:[%s8526_s0 + $0x48] sm:$0xff]  }
  0x70   :  { %6158 = vmatprep.subr.bf16.mxu0 %v6658_v24  ;;  %v916_v25 = vrot.slane %v7250_v11, 1 }
  0x71   :  { %6281 = vmatpush3.bf16.msra.mxu1 %v6720_v57 }
  0x72   :  { %6071 = vmatmul.mubr.bf16.gmra.mrb[40].mxu0 %v532_v29  ;;  %6282 = vmatprep.subr.bf16.mxu1 %v6725_v7  ;;  %v6679_v29 = vld [vmem:[%s8525_s1 + $0x128] sm:$0xff]   ;;  %v917_v57 = vsel %vm898_vm1, %v914_v21, %v916_v25 }
  0x73   :  { %6074 = vmatprep.mubr.bf16.mxu0 %v540_v31  ;;  %v6695_v31 = vld [vmem:[%s8526_s0 + $0xc] sm:$0xff]  }
  0x74   :  { %6219 = vmatmul.mubr.bf16.gmra.mrb[28].mxu1 %v2124_v2  ;;  %v1666_v45 = vshll.u32 %v6695_v31, 16  ;;  %v2883_v2 = vshll.u32 %v6745_v59, 16 }
  0x75   :  { %6222 = vmatprep.mubr.bf16.mxu1 %v2126_v5  ;;  %6283 = vmatpush3.bf16.msra.mxu1 %v6725_v7  ;;  %v7354_v7 = vld [vmem:[%s8525_s1 + $0x180] sm:$0xff]  }
  0x76   :  { %6284 = vmatprep.subr.bf16.mxu1 %v6727_v14  ;;  %v1668_v62 = vrot.slane %v1666_v45, 2  ;;  %v2885_v17 = vrot.slane %v2883_v2, 3  ;;  %v2910_v45 = vshll.u32 %v6751_v34, 16 }
  0x78   :  { %v2886_v11 = vor.u32 %v2885_v17, %v2882_v16  ;;  %v2912_v59 = vrot.slane %v2910_v45, 3  ;;  %v6707_v16 = vld [vmem:[%s8525_s1 + $0x190] sm:$0xff]   ;;  %v6715_v45 = vld [vmem:[%s8525_s1 + $0x1a0] sm:$0xff]  }
  0x79   :  { %6285 = vmatpush3.bf16.msra.mxu1 %v6727_v14 }
  0x7a   :  { %6075 = vmatmul.mubr.bf16.gmra.mrb[44].mxu0 %v543_v41  ;;  %6286 = vmatprep.subr.bf16.mxu1 %v6732_v27  ;;  %v1658_v41 = vshll.u32 %v6694_v22, 16  ;;  %v2892_v22 = vshll.u32 %v6746_v0, 16 }
  0x7b   :  { %6094 = vmatprep.mubr.bf16.mxu0 %v901_v43  ;;  %v1663_v43 = vshrl.u32 %v6695_v31, 16 }
  0x7c   :  { %6223 = vmatmul.mubr.bf16.gmra.mrb[32].mxu1 %v2128_v26  ;;  %v7343_v60 = vrot.slane %v1658_v41, 2  ;;  %v6708_v41 = vld [vmem:[%s8526_s0 + $0x2c] sm:$0xff]  }
  0x7d   :  { %6226 = vmatprep.mubr.bf16.mxu1 %v2130_v28  ;;  %6287 = vmatpush3.bf16.msra.mxu1 %v6732_v27  ;;  %v1665_v61 = vrot.slane %v1663_v43, 1  ;;  %v2898_v27 = vshrl.u32 %v6750_v23, 16 }
  0x7e   :  { %6288 = vmatprep.subr.bf16.mxu1 %v6733_v37  ;;  %v1661_v19 = vor.u32 %v7343_v60, %v7325_v52  ;;  %v1678_v52 = vor.u32 %v1677_v4, %v1674_v3  ;;  %v6701_v4 = vld [vmem:[%s8525_s1 + $0x188] sm:$0xff]  }
  0x81   :  { %6289 = vmatpush3.bf16.msra.mxu1 %v6733_v37  ;;  %v2900_v37 = vrot.slane %v2898_v27, 2  ;;  %v6765_v27 = vld [vmem:[%s8526_s0 + $0x50] sm:$0xff]  }
  0x82   :  { %6095 = vmatmul.mubr.bf16.vlgmr.msra.gmra.mrb[48].mxu0 %v903_v56  ;;  %v6740_v56 = vld [vmem:[%s8525_s1 + $0x1f8] sm:$0xff]   ;;  %6290 = vmatprep.subr.bf16.mxu1 %v6739_v50 }
  0x83   :  { %6159 = vmatpush3.bf16.msra.mxu0 %v6658_v24  ;;  %6098 = vmatprep.mubr.bf16.mxu0 %v905_v58  ;;  %v7281_v24 = vld [vmem:[%s8526_s0 + $0x4c] sm:$0xff]   ;;  %v2137_v58 = vrot.slane %v7312_v42, 2  ;;  %v2907_v42 = vshrl.u32 %v6751_v34, 16 }
  0x84   :  { %6160 = vmatprep.subr.bf16.mxu0 %v6661_v54  ;;  %v2133_v39 = vrot.slane %v7281_v24, 2  ;;  %6227 = vmatmul.mubr.bf16.gmra.mrb[36].mxu1 %v2132_v47  ;;  %v921_v24 = vsel %vm898_vm1, %v918_v30, %v920_v33 }
  0x85   :  { %6291 = vmatpush3.bf16.msra.mxu1 %v6739_v50  ;;  %v2138_v10 = vsel %vm2115_vm2, %v2135_v55, %v2137_v58 }
  0x86   :  { %v2134_v49 = vsel %vm2115_vm2, %v2131_v36, %v2133_v39  ;;  %6292 = vmatprep.subr.bf16.mxu1 %v6740_v56 }
  0x87   :  { %6161 = vmatpush3.bf16.msra.mxu0 %v6661_v54  ;;  %v915_v54 = vsel %vm898_vm1, %v912_v20, %v914_v21  ;;  %6230 = vmatprep.mubr.bf16.mxu1 %v2134_v49  ;;  %v2889_v20 = vshrl.u32 %v6746_v0, 16  ;;  %v919_v21 = vsel %vm898_vm1, %v916_v25, %v918_v30  ;;  %v2901_v25 = vshll.u32 %v6750_v23, 16 }
  0x88   :  { %6162 = vmatprep.subr.bf16.mxu0 %v6667_v63  ;;  %v1669_v30 = vor.u32 %v1668_v62, %v1665_v61  ;;  %v6761_v61 = vld [vmem:[%s8526_s0 + $0x40] sm:$0xff]  }
  0x89   :  { %6293 = vmatpush3.bf16.msra.mxu1 %v6740_v56  ;;  %v2891_v31 = vrot.slane %v2889_v20, 2  ;;  %v2903_v38 = vrot.slane %v2901_v25, 3  ;;  %v2909_v56 = vrot.slane %v2907_v42, 2  ;;  %v6713_v62 = vld [vmem:[%s8526_s0 + $0x3c] sm:$0xff]   ;;  %v6714_v20 = vld [vmem:[%s8526_s0 + $0x44] sm:$0xff]  }
  0x8a   :  { %6099 = vmatmul.mubr.bf16.gmra.mrb[52].mxu0 %v907_v9  ;;  %v2136_v9 = vsel %vm2115_vm2, %v2133_v39, %v2135_v55  ;;  %v1670_v43 = vsel %vm1653_vm4, %v1661_v19, %v1669_v30  ;;  %v6709_v55 = vld [vmem:[%s8526_s0 + $0x34] sm:$0xff]   ;;  %v1679_v0 = vsel %vm1653_vm4, %v1669_v30, %v1678_v52  ;;  %v1717_v17 = vshrl.u32 %v6713_v62, 16  ;;  %v6721_v19 = vld [vmem:[%s8526_s0 + $0x4c] sm:$0xff]  }
  0x8b   :  { %6163 = vmatpush3.bf16.msra.mxu0 %v6667_v63  ;;  %6102 = vmatprep.mubr.bf16.mxu0 %v909_v12  ;;  %v6744_v63 = vld [vmem:[%s8526_s0 + $0x8] sm:$0xfc]   ;;  %v2904_v48 = vor.u32 %v2903_v38, %v2900_v37  ;;  %v1726_v34 = vshrl.u32 %v6714_v20, 16  ;;  %v1729_v42 = vshll.u32 %v6714_v20, 16 }
  0x8c   :  { %6164 = vmatprep.subr.bf16.mxu0 %v6672_v8  ;;  %v2872_v5 = vshrl.u32 %v6744_v63, 16  ;;  %v2875_v6 = vshll.u32 %v6744_v63, 16  ;;  %v6703_v12 = vld [vmem:[%s8526_s0 + $0x24] sm:$0xff]   ;;  %6231 = vmatmul.mubr.bf16.gmra.mrb[40].mxu1 %v2136_v9  ;;  %v2913_v9 = vor.u32 %v2912_v59, %v2909_v56  ;;  %v6728_v56 = vld [vmem:[%s8526_s0 + $0x5c] ss:$0 sps:$4 sm:$0x77]  }
  0x8d   :  { %6234 = vmatprep.mubr.bf16.mxu1 %v2138_v10  ;;  %v1690_v28 = vshrl.u32 %v6703_v12, 16  ;;  %v1731_v59 = vrot.slane %v1729_v42, 2 }
  0x8e   :  { %v2874_v13 = vrot.slane %v2872_v5, 2  ;;  %v2877_v14 = vrot.slane %v2875_v6, 3  ;;  %v1708_v6 = vshrl.u32 %v6709_v55, 16 }
  0x8f   :  { %6165 = vmatpush3.bf16.msra.mxu0 %v6672_v8  ;;  %v1681_v8 = vshrl.u32 %v7330_v53, 16  ;;  %v1692_v47 = vrot.slane %v1690_v28, 1 }
  0x90   :  { %6166 = vmatprep.subr.bf16.mxu0 %v6675_v18  ;;  %v2878_v26 = vor.u32 %v2877_v14, %v2874_v13  ;;  %v2937_v13 = vshll.u32 %v6761_v61, 16 }
  0x92   :  { %6103 = vmatmul.mubr.bf16.gmra.mrb[56].mxu0 %v911_v32  ;;  %v2894_v32 = vrot.slane %v2892_v22, 3  ;;  %v2887_v36 = vsel %vm2870_vm3, %v2878_v26, %v2886_v11  ;;  %v1710_v26 = vrot.slane %v1708_v6, 1 }
  0x93   :  { %6106 = vmatprep.mubr.bf16.mxu0 %v913_v35  ;;  %6167 = vmatpush3.bf16.msra.mxu0 %v6675_v18  ;;  %v1684_v18 = vshll.u32 %v7330_v53, 16  ;;  %v1683_v35 = vrot.slane %v1681_v8, 1  ;;  %v1699_v53 = vshrl.u32 %v6708_v41, 16  ;;  %v1711_v8 = vshll.u32 %v6709_v55, 16 }
  0x94   :  { %6168 = vmatprep.subr.bf16.mxu0 %v6679_v29  ;;  %6235 = vmatmul.mubr.bf16.gmra.mrb[44].mxu1 %v2137_v58  ;;  %v2895_v44 = vor.u32 %v2894_v32, %v2891_v31  ;;  %v6712_v32 = vld [vmem:[%s8525_s1 + $0x198] sm:$0xff]  }
  0x95   :  { %v1686_v39 = vrot.slane %v1684_v18, 2  ;;  %6294 = vmatprep.mubr.bf16.mxu1 %v2887_v36  ;;  %v1701_v1 = vrot.slane %v1699_v53, 1  ;;  %v1720_v18 = vshll.u32 %v6713_v62, 16  ;;  %v1713_v31 = vrot.slane %v1711_v8, 2 }
  0x96   :  { %v2896_v58 = vsel %vm2870_vm3, %v2886_v11, %v2895_v44  ;;  %v2914_v11 = vsel %vm2870_vm3, %v2904_v48, %v2913_v9 }
  0x97   :  { %6169 = vmatpush3.bf16.msra.mxu0 %v6679_v29  ;;  %v1693_v29 = vshll.u32 %v6703_v12, 16  ;;  %v2934_v12 = vshrl.u32 %v6761_v61, 16  ;;  %v1722_v36 = vrot.slane %v1720_v18, 2 }
  0x98   :  { %6170 = vmatprep.subr.bf16.mxu0 %v6686_v40 }
  0x99   :  { %v1695_v50 = vrot.slane %v1693_v29, 2  ;;  %v2936_v28 = vrot.slane %v2934_v12, 2  ;;  %v2939_v29 = vrot.slane %v2937_v13, 3  ;;  %v1753_v12 = vshrl.u32 %v6728_v56, 16  ;;  %v6726_v13 = vld [vmem:[%s8525_s1 + $0x1b0] sm:$0xff]  }
  0x9a   :  { %6107 = vmatmul.mubr.bf16.gmra.mrb[60].mxu0 %v915_v54  ;;  %v1702_v54 = vshll.u32 %v6708_v41, 16  ;;  %v2955_v41 = vshll.u32 %v6765_v27, 16 }
  0x9b   :  { %6110 = vmatprep.mubr.bf16.mxu0 %v917_v57  ;;  %6171 = vmatpush3.bf16.msra.mxu0 %v6686_v40  ;;  %v6756_v40 = vld [vmem:[%s8526_s0 + $0x30] sm:$0xff]   ;;  %v1687_v57 = vor.u32 %v1686_v39, %v1683_v35  ;;  %v1696_v14 = vor.u32 %v1695_v50, %v1692_v47  ;;  %v1719_v35 = vrot.slane %v1717_v17, 1  ;;  %v1714_v47 = vor.u32 %v1713_v31, %v1710_v26 }
  0x9c   :  { %6172 = vmatprep.subr.bf16.mxu0 %v6691_v51  ;;  %v2916_v46 = vshrl.u32 %v6756_v40, 16  ;;  %v2919_v49 = vshll.u32 %v6756_v40, 16  ;;  %v1704_v2 = vrot.slane %v1702_v54, 2  ;;  %6295 = vmatmul.mubr.bf16.vlgmr.msra.gmra.mrb[48].mxu1 %v2896_v58  ;;  %v2952_v40 = vshrl.u32 %v6765_v27, 16  ;;  %v6771_v58 = vld [vmem:[%s8526_s0 + $0x60] ss:$0 sps:$4 sm:$0xff]  }
  0x9d   :  { %v1688_v5 = vsel %vm1653_vm4, %v1678_v52, %v1687_v57  ;;  %v2957_v55 = vrot.slane %v2955_v41, 3  ;;  %v1755_v27 = vrot.slane %v1753_v12, 1  ;;  %v6736_v41 = vld [vmem:[%s8526_s0 + $0x18] sm:$0xff]  }
  0x9e   :  { %v2918_v15 = vrot.slane %v2916_v46, 2  ;;  %v2921_v60 = vrot.slane %v2919_v49, 3  ;;  %v1705_v22 = vor.u32 %v1704_v2, %v1701_v1  ;;  %v1735_v46 = vshrl.u32 %v6721_v19, 16 }
  0x9f   :  { %6173 = vmatpush3.bf16.msra.mxu0 %v6691_v51  ;;  %v6757_v51 = vld [vmem:[%s8526_s0 + $0x38] sm:$0xff]   ;;  %v1738_v49 = vshll.u32 %v6721_v19, 16  ;;  %v2954_v54 = vrot.slane %v2952_v40, 2 }
  0xa0   :  { %6238 = vmatprep.subr.bf16.mxu0 %v7354_v7  ;;  %v2925_v63 = vshrl.u32 %v6757_v51, 16  ;;  %v2928_v3 = vshll.u32 %v6757_v51, 16  ;;  %v2922_v10 = vor.u32 %v2921_v60, %v2918_v15  ;;  %v1706_v30 = vsel %vm1653_vm4, %v1696_v14, %v1705_v22  ;;  %v6766_v51 = vld [vmem:[%s8526_s0 + $0x58] sm:$0xff]   ;;  %v6719_v15 = vld [vmem:[%s8525_s1 + $0x1a8] sm:$0xff]  }
  0xa1   :  { %v1715_v60 = vsel %vm1653_vm4, %v1705_v22, %v1714_v47  ;;  %v1737_v61 = vrot.slane %v1735_v46, 1  ;;  %v1740_v62 = vrot.slane %v1738_v49, 2  ;;  %v2961_v1 = vshrl.u32 %v6766_v51, 16 }
  0xa2   :  { %6111 = vmatmul.mubr.bf16.gmra.mrb[64].mxu0 %v919_v21  ;;  %v2927_v21 = vrot.slane %v2925_v63, 2  ;;  %v2930_v23 = vrot.slane %v2928_v3, 3  ;;  %v2923_v25 = vsel %vm2870_vm3, %v2913_v9, %v2922_v10  ;;  %v2964_v2 = vshll.u32 %v6766_v51, 16 }
  0xa3   :  { %6114 = vmatprep.mubr.bf16.mxu0 %v921_v24  ;;  %v6762_v24 = vld [vmem:[%s8526_s0 + $0x48] sm:$0xff]   ;;  %v2958_v3 = vor.u32 %v2957_v55, %v2954_v54  ;;  %v1741_v8 = vor.u32 %v1740_v62, %v1737_v61  ;;  %v2963_v17 = vrot.slane %v2961_v1, 2  ;;  %v6749_v55 = vld [vmem:[%s8526_s0 + $0x38] sm:$0xff]  }
  0xa4   :  { %v2931_v37 = vor.u32 %v2930_v23, %v2927_v21  ;;  %v2943_v38 = vshrl.u32 %v6762_v24, 16  ;;  %v2946_v39 = vshll.u32 %v6762_v24, 16  ;;  %v2966_v18 = vrot.slane %v2964_v2, 3  ;;  %v6754_v61 = vld [vmem:[%s8526_s0 + $0x48] sm:$0xff]  }
  0xa5   :  { %v2508_v1 = vrot.slane %v6754_v61, 2  ;;  %v6778_v61 = vld [vmem:[%s8526_s0 + $0x50] sm:$0xff]  }
  0xa6   :  { %v2932_v50 = vsel %vm2870_vm3, %v2922_v10, %v2931_v37  ;;  %v2945_v52 = vrot.slane %v2943_v38, 2  ;;  %v2948_v53 = vrot.slane %v2946_v39, 3  ;;  %v6735_v38 = vld [vmem:[%s8526_s0 + $0x10] sm:$0xff]  }
  0xa7   :  { %v2494_v40 = vrot.slane %v6735_v38, 2 }
  0xaa   :  { %6115 = vmatmul.mubr.bf16.gmra.mrb[68].mxu0 %v920_v33  ;;  %v2905_v33 = vsel %vm2870_vm3, %v2895_v44, %v2904_v48  ;;  %v1728_v44 = vrot.slane %v1726_v34, 1  ;;  %v1723_v48 = vor.u32 %v1722_v36, %v1719_v35  ;;  %v6737_v34 = vld [vmem:[%s8525_s1 + $0x200] sm:$0xff]  }
  0xab   :  { %6174 = vmatprep.mubr.bf16.mxu0 %v1670_v43  ;;  %6298 = vmatprep.mubr.bf16.mxu1 %v2905_v33  ;;  %v2940_v43 = vor.u32 %v2939_v29, %v2936_v28  ;;  %v6722_v33 = vld [vmem:[%s8526_s0 + $0x54] sm:$0xff]   ;;  %v2967_v29 = vor.u32 %v2966_v18, %v2963_v17 }
  0xac   :  { %6299 = vmatmul.mubr.bf16.gmra.mrb[52].mxu1 %v2914_v11  ;;  %v1724_v63 = vsel %vm1653_vm4, %v1714_v47, %v1723_v48  ;;  %v1732_v6 = vor.u32 %v1731_v59, %v1728_v44  ;;  %v1744_v9 = vshrl.u32 %v6722_v33, 16  ;;  %v1747_v10 = vshll.u32 %v6722_v33, 16  ;;  %v6731_v28 = vld [vmem:[%s8525_s1 + $0x1b8] sm:$0xff]   ;;  %v6743_v47 = vld [vmem:[%s8526_s0 + $0x28] sm:$0xff]   ;;  %v6755_v33 = vld [vmem:[%s8525_s1 + $0x220] sm:$0xff]  }
  0xad   :  { %6302 = vmatprep.mubr.bf16.mxu1 %v2923_v25  ;;  %v2968_v19 = vsel %vm2870_vm3, %v2958_v3, %v2967_v29  ;;  %v2496_v44 = vrot.slane %v6736_v41, 2  ;;  %v2500_v51 = vrot.slane %v6743_v47, 2  ;;  %v2504_v59 = vrot.slane %v6749_v55, 2 }
  0xae   :  { %v1733_v23 = vsel %vm1653_vm4, %v1723_v48, %v1732_v6  ;;  %v1746_v24 = vrot.slane %v1744_v9, 1  ;;  %v1749_v26 = vrot.slane %v1747_v10, 2  ;;  %v1742_v11 = vsel %vm1653_vm4, %v1732_v6, %v1741_v8  ;;  %v6741_v48 = vld [vmem:[%s8525_s1 + $0x208] sm:$0xff]   ;;  %v6760_v9 = vld [vmem:[%s8526_s0 + $0x58] sm:$0xff]  }
  0xaf   :  { %v2497_v46 = vsel %vm2115_vm2, %v2494_v40, %v2496_v44 }
  0xb0   :  { %v1750_v31 = vor.u32 %v1749_v26, %v1746_v24  ;;  %v6768_v26 = vld [vmem:[%s8526_s0 + $0x8] sm:$0xf8]  }
  0xb2   :  { %6175 = vmatmul.mubr.bf16.vlgmr.msra.gmra.mrb[72].mxu0 %v1679_v0  ;;  %v2949_v0 = vor.u32 %v2948_v53, %v2945_v52  ;;  %v1751_v35 = vsel %vm1653_vm4, %v1741_v8, %v1750_v31  ;;  %v6747_v52 = vld [vmem:[%s8525_s1 + $0x210] sm:$0xff]  }
  0xb3   :  { %6239 = vmatpush3.bf16.msra.mxu0 %v7354_v7  ;;  %6178 = vmatprep.mubr.bf16.mxu0 %v1688_v5  ;;  %v1697_v7 = vsel %vm1653_vm4, %v1687_v57, %v1696_v14  ;;  %v2941_v57 = vsel %vm2870_vm3, %v2931_v37, %v2940_v43  ;;  %v2973_v5 = vshll.u32 %v6771_v58, 16  ;;  %v1756_v14 = vshll.u32 %v6728_v56, 16  ;;  %v6734_v37 = vld [vmem:[%s8526_s0 + $0x8] sm:$0xfc]  }
  0xb4   :  { %6240 = vmatprep.subr.bf16.mxu0 %v6701_v4  ;;  %6303 = vmatmul.mubr.bf16.gmra.mrb[56].mxu1 %v2932_v50  ;;  %v2959_v20 = vsel %vm2870_vm3, %v2949_v0, %v2958_v3  ;;  %v2493_v39 = vrot.slane %v6734_v37, 2  ;;  %v6748_v50 = vld [vmem:[%s8526_s0 + $0x30] sm:$0xff]  }
  0xb5   :  { %6306 = vmatprep.mubr.bf16.mxu1 %v2941_v57  ;;  %v2975_v22 = vrot.slane %v2973_v5, 3  ;;  %v1758_v25 = vrot.slane %v1756_v14, 2  ;;  %v2502_v53 = vrot.slane %v6748_v50, 2  ;;  %v6752_v57 = vld [vmem:[%s8525_s1 + $0x218] sm:$0xff]   ;;  %v6763_v3 = vld [vmem:[%s8525_s1 + $0x230] sm:$0xff]  }
  0xb6   :  { %v2495_v42 = vsel %vm2115_vm2, %v2493_v39, %v2494_v40  ;;  %v6767_v14 = vld [vmem:[%s8525_s1 + $0x238] sm:$0xff]   ;;  %v6773_v40 = vld [vmem:[%s8526_s0 + $0x28] sm:$0xff]  }
  0xb7   :  { %6241 = vmatpush3.bf16.msra.mxu0 %v6701_v4  ;;  %v2970_v4 = vshrl.u32 %v6771_v58, 16  ;;  %v2503_v56 = vsel %vm2115_vm2, %v2500_v51, %v2502_v53  ;;  %v6753_v58 = vld [vmem:[%s8526_s0 + $0x40] sm:$0xff]   ;;  %v6775_v50 = vld [vmem:[%s8526_s0 + $0x38] sm:$0xff]  }
  0xb8   :  { %6242 = vmatprep.subr.bf16.mxu0 %v6707_v16 }
  0xb9   :  { %v2972_v21 = vrot.slane %v2970_v4, 2 }
  0xba   :  { %6179 = vmatmul.mubr.bf16.gmra.mrb[76].mxu0 %v1697_v7 }
  0xbb   :  { %6243 = vmatpush3.bf16.msra.mxu0 %v6707_v16  ;;  %6182 = vmatprep.mubr.bf16.mxu0 %v1706_v30  ;;  %v2950_v16 = vsel %vm2870_vm3, %v2940_v43, %v2949_v0  ;;  %v2976_v7 = vor.u32 %v2975_v22, %v2972_v21  ;;  %v6742_v43 = vld [vmem:[%s8526_s0 + $0x20] sm:$0xff]   ;;  %v6759_v0 = vld [vmem:[%s8526_s0 + $0x50] sm:$0xff]  }
  0xbc   :  { %6244 = vmatprep.subr.bf16.mxu0 %v6712_v32  ;;  %6307 = vmatmul.mubr.bf16.gmra.mrb[60].mxu1 %v2950_v16  ;;  %v2510_v2 = vrot.slane %v6759_v0, 2  ;;  %v2512_v16 = vrot.slane %v6760_v9, 2 }
  0xbd   :  { %6310 = vmatprep.mubr.bf16.mxu1 %v2959_v20  ;;  %v2977_v30 = vsel %vm2870_vm3, %v2967_v29, %v2976_v7 }
  0xbe   :  { %v2511_v12 = vsel %vm2115_vm2, %v2508_v1, %v2510_v2  ;;  %v2513_v22 = vsel %vm2115_vm2, %v2510_v2, %v2512_v16 }
  0xbf   :  { %6245 = vmatpush3.bf16.msra.mxu0 %v6712_v32  ;;  %v1759_v32 = vor.u32 %v1758_v25, %v1755_v27  ;;  %v3333_v27 = vrot.slane %v6768_v26, 3 }
  0xc0   :  { %6246 = vmatprep.subr.bf16.mxu0 %v6715_v45 }
  0xc1   :  { %v1760_v36 = vsel %vm1653_vm4, %v1750_v31, %v1759_v32  ;;  %v6770_v31 = vld [vmem:[%s8526_s0 + $0x18] sm:$0xff]  }
  0xc2   :  { %6183 = vmatmul.mubr.bf16.gmra.mrb[80].mxu0 %v1715_v60  ;;  %v2505_v60 = vsel %vm2115_vm2, %v2502_v53, %v2504_v59  ;;  %v6776_v53 = vld [vmem:[%s8526_s0 + $0x40] sm:$0xff]  }
  0xc3   :  { %6186 = vmatprep.mubr.bf16.mxu0 %v1724_v63  ;;  %6247 = vmatpush3.bf16.msra.mxu0 %v6715_v45  ;;  %v2498_v45 = vrot.slane %v6742_v43, 2  ;;  %v6758_v63 = vld [vmem:[%s8525_s1 + $0x228] sm:$0xff]   ;;  %v6774_v43 = vld [vmem:[%s8526_s0 + $0x30] sm:$0xff]   ;;  %v3346_v55 = vrot.slane %v6776_v53, 3 }
  0xc4   :  { %6248 = vmatprep.subr.bf16.mxu0 %v6719_v15  ;;  %6311 = vmatmul.mubr.bf16.gmra.mrb[64].mxu1 %v2968_v19  ;;  %v6772_v19 = vld [vmem:[%s8526_s0 + $0x20] sm:$0xff]  }
  0xc5   :  { %6314 = vmatprep.mubr.bf16.mxu1 %v2977_v30  ;;  %v2499_v49 = vsel %vm2115_vm2, %v2496_v44, %v2498_v45  ;;  %v2501_v54 = vsel %vm2115_vm2, %v2498_v45, %v2500_v51  ;;  %v3336_v30 = vrot.slane %v6770_v31, 3  ;;  %v3340_v44 = vrot.slane %v6773_v40, 3 }
  0xc6   :  { %v3342_v45 = vrot.slane %v6774_v43, 3 }
  0xc7   :  { %6249 = vmatpush3.bf16.msra.mxu0 %v6719_v15  ;;  %v2506_v15 = vrot.slane %v6753_v58, 2 }
  0xc8   :  { %6250 = vmatprep.subr.bf16.mxu0 %v6726_v13 }
  0xc9   :  { %v2507_v62 = vsel %vm2115_vm2, %v2504_v59, %v2506_v15  ;;  %v2509_v8 = vsel %vm2115_vm2, %v2506_v15, %v2508_v1  ;;  %v6777_v15 = vld [vmem:[%s8526_s0 + $0x48] sm:$0xff]   ;;  %v3350_v1 = vrot.slane %v6778_v61, 3 }
  0xca   :  { %6187 = vmatmul.mubr.bf16.gmra.mrb[84].mxu0 %v1733_v23 }
  0xcb   :  { %6190 = vmatprep.mubr.bf16.mxu0 %v1742_v11  ;;  %6251 = vmatpush3.bf16.msra.mxu0 %v6726_v13  ;;  %v6764_v13 = vld [vmem:[%s8526_s0 + $0x60] ss:$0 sps:$4 sm:$0x77]   ;;  %v6769_v11 = vld [vmem:[%s8526_s0 + $0x10] sm:$0xff]  }
  0xcc   :  { %6252 = vmatprep.subr.bf16.mxu0 %v6731_v28  ;;  %6315 = vmatmul.mubr.bf16.gmra.mrb[68].mxu1 %v2976_v7  ;;  %v2514_v17 = vrot.slane %v6764_v13, 2  ;;  %v3334_v25 = vrot.slane %v6769_v11, 3 }
  0xce   :  { %v2515_v24 = vsel %vm2115_vm2, %v2512_v16, %v2514_v17  ;;  %v3337_v39 = vsel %vm3332_vm6, %v3334_v25, %v3336_v30  ;;  %v6779_v16 = vld [vmem:[%s8526_s0 + $0x58] sm:$0xff]  }
  0xcf   :  { %6253 = vmatpush3.bf16.msra.mxu0 %v6731_v28  ;;  %v3352_v26 = vrot.slane %v6779_v16, 3 }
  0xd0   :  { %6318 = vmatprep.subr.bf16.mxu0 %v6737_v34 }
  0xd2   :  { %6191 = vmatmul.mubr.bf16.gmra.mrb[88].mxu0 %v1751_v35  ;;  %v3338_v35 = vrot.slane %v6772_v19, 3 }
  0xd3   :  { %6194 = vmatprep.mubr.bf16.mxu0 %v1760_v36 }
  0xda   :  { %6195 = vmatmul.mubr.bf16.gmra.mrb[92].mxu0 %v1759_v32 }
  0xdb   :  { %6254 = vmatprep.mubr.bf16.mxu0 %v2495_v42  ;;  %v3339_v42 = vsel %vm3332_vm6, %v3336_v30, %v3338_v35 }
  0xe2   :  { %6255 = vmatmul.mubr.bf16.vlgmr.msra.gmra.mrb[96].mxu0 %v2497_v46 }
  0xe3   :  { %6319 = vmatpush3.bf16.msra.mxu0 %v6737_v34  ;;  %6258 = vmatprep.mubr.bf16.mxu0 %v2499_v49  ;;  %v3335_v34 = vsel %vm3332_vm6, %v3333_v27, %v3334_v25  ;;  %v3341_v49 = vsel %vm3332_vm6, %v3338_v35, %v3340_v44 }
  0xe4   :  { %6320 = vmatprep.subr.bf16.mxu0 %v6741_v48 }
  0xe7   :  { %6321 = vmatpush3.bf16.msra.mxu0 %v6741_v48 }
  0xe8   :  { %6322 = vmatprep.subr.bf16.mxu0 %v6747_v52 }
  0xea   :  { %6259 = vmatmul.mubr.bf16.gmra.mrb[100].mxu0 %v2501_v54  ;;  %v3344_v54 = vrot.slane %v6775_v50, 3 }
  0xeb   :  { %6323 = vmatpush3.bf16.msra.mxu0 %v6747_v52  ;;  %6262 = vmatprep.mubr.bf16.mxu0 %v2503_v56  ;;  %v3343_v52 = vsel %vm3332_vm6, %v3340_v44, %v3342_v45 }
  0xec   :  { %6324 = vmatprep.subr.bf16.mxu0 %v6752_v57  ;;  %v3345_v59 = vsel %vm3332_vm6, %v3342_v45, %v3344_v54 }
  0xef   :  { %6325 = vmatpush3.bf16.msra.mxu0 %v6752_v57 }
  0xf0   :  { %6326 = vmatprep.subr.bf16.mxu0 %v6755_v33 }
  0xf2   :  { %6263 = vmatmul.mubr.bf16.gmra.mrb[104].mxu0 %v2505_v60  ;;  %v3347_v60 = vsel %vm3332_vm6, %v3344_v54, %v3346_v55 }
  0xf3   :  { %6266 = vmatprep.mubr.bf16.mxu0 %v2507_v62  ;;  %6327 = vmatpush3.bf16.msra.mxu0 %v6755_v33 }
  0xf4   :  { %6328 = vmatprep.subr.bf16.mxu0 %v6758_v63 }
  0xf5   :  { %v6016_v4 = vpop.f32.mrb[0].mxu0 }
  0xf6   :  { %329 = vst.msk [vmem:[#allocation2 + $0x10] sm:$0xff] %vm326_vm5, %v6016_v4  ;;  %v232_v5 = vpop.f32.mrb[1].mxu0 }
  0xf7   :  { %327 = vst.msk [vmem:[#allocation2] sm:$0xff] %vm326_vm5, %v232_v5  ;;  %v6017_v6 = vpop.f32.mrb[2].mxu0  ;;  %6329 = vmatpush3.bf16.msra.mxu0 %v6758_v63  ;;  %v3348_v63 = vrot.slane %v6777_v15, 3 }
  0xf8   :  { %330 = vst.msk [vmem:[#allocation2 + $0x18] sm:$0xff] %vm326_vm5, %v6017_v6  ;;  %v235_v10 = vpop.f32.mrb[3].mxu0  ;;  %6330 = vmatprep.subr.bf16.mxu0 %v6763_v3 }
  0xf9   :  { %328 = vst.msk [vmem:[#allocation2 + $0x8] sm:$0xff] %vm326_vm5, %v235_v10 }
  0xfa   :  { %6267 = vmatmul.mubr.bf16.gmra.mrb[108].mxu0 %v2509_v8 }
  0xfb   :  { %6270 = vmatprep.mubr.bf16.mxu0 %v2511_v12  ;;  %6331 = vmatpush3.bf16.msra.mxu0 %v6763_v3 }
  0xfc   :  { %6332 = vmatprep.subr.bf16.mxu0 %v6767_v14  ;;  %v7601_v62 = vpop.f32.mrb[0].mxu1 }
  0xfd   :  { %v6020_v18 = vpop.f32.mrb[4].mxu0  ;;  %v7603_v0 = vpop.f32.mrb[1].mxu1  ;;  %v734_v4 = vld [vmem:[#allocation2 + $0x10] sm:$0xff] }
  0xfe   :  { %333 = vst.msk [vmem:[#allocation2 + $0x30] sm:$0xff] %vm326_vm5, %v6020_v18  ;;  %v248_v20 = vpop.f32.mrb[5].mxu0  ;;  %v7605_v2 = vpop.f32.mrb[2].mxu1  ;;  %v732_v9 = vld [vmem:[#allocation2] sm:$0xff] }
  0xff   :  { %331 = vst.msk [vmem:[#allocation2 + $0x20] sm:$0xff] %vm326_vm5, %v248_v20  ;;  %v6021_v21 = vpop.f32.mrb[6].mxu0  ;;  %6333 = vmatpush3.bf16.msra.mxu0 %v6767_v14  ;;  %v7607_v5 = vpop.f32.mrb[3].mxu1  ;;  %v735_v13 = vld [vmem:[#allocation2 + $0x18] sm:$0xff]  ;;  %v3349_v14 = vsel %vm3332_vm6, %v3346_v55, %v3348_v63 }
 0x100   :  { %334 = vst.msk [vmem:[#allocation2 + $0x38] sm:$0xff] %vm326_vm5, %v6021_v21  ;;  %v251_v23 = vpop.f32.mrb[7].mxu0  ;;  %v733_v20 = vld [vmem:[#allocation2 + $0x8] sm:$0xff]  ;;  %v3351_v21 = vsel %vm3332_vm6, %v3348_v63, %v3350_v1 }
 0x101   :  { %332 = vst.msk [vmem:[#allocation2 + $0x28] sm:$0xff] %vm326_vm5, %v251_v23 }
 0x102   :  { %6271 = vmatmul.mubr.bf16.gmra.mrb[112].mxu0 %v2513_v22  ;;  %v6780_v22 = vld [vmem:[%s8526_s0 + $0x60] ss:$0 sps:$4 sm:$0xff]  }
 0x103   :  { %6274 = vmatprep.mubr.bf16.mxu0 %v2515_v24  ;;  %v3354_v27 = vrot.slane %v6780_v22, 3 }
 0x105   :  { %v6024_v28 = vpop.f32.mrb[8].mxu0  ;;  %v3355_v40 = vsel %vm3332_vm6, %v3352_v26, %v3354_v27 }
 0x106   :  { %337 = vst.msk [vmem:[#allocation2 + $0x50] sm:$0xff] %vm326_vm5, %v6024_v28  ;;  %v264_v29 = vpop.f32.mrb[9].mxu0 }
 0x107   :  { %335 = vst.msk [vmem:[#allocation2 + $0x40] sm:$0xff] %vm326_vm5, %v264_v29  ;;  %v6025_v7 = vpop.f32.mrb[10].mxu0  ;;  %v738_v29 = vld [vmem:[#allocation2 + $0x30] sm:$0xff]  ;;  %v739_v35 = vld [vmem:[#allocation2 + $0x38] sm:$0xff] }
 0x108   :  { %338 = vst.msk [vmem:[#allocation2 + $0x58] sm:$0xff] %vm326_vm5, %v6025_v7  ;;  %v267_v32 = vpop.f32.mrb[11].mxu0 }
 0x109   :  { %336 = vst.msk [vmem:[#allocation2 + $0x48] sm:$0xff] %vm326_vm5, %v267_v32 }
 0x10a   :  { %6275 = vmatmul.mubr.bf16.gmra.mrb[116].mxu0 %v2514_v17 }
 0x10b   :  { %6334 = vmatprep.mubr.bf16.mxu0 %v3335_v34  ;;  %v736_v34 = vld [vmem:[#allocation2 + $0x20] sm:$0xff] }
 0x10d   :  { %v6028_v36 = vpop.f32.mrb[12].mxu0 }
 0x10e   :  { %341 = vst.msk [vmem:[#allocation2 + $0x70] sm:$0xff] %vm326_vm5, %v6028_v36  ;;  %v280_v37 = vpop.f32.mrb[13].mxu0  ;;  %v3353_v36 = vsel %vm3332_vm6, %v3350_v1, %v3352_v26  ;;  %v740_v50 = vld [vmem:[#allocation2 + $0x40] sm:$0xff] }
 0x10f   :  { %339 = vst.msk [vmem:[#allocation2 + $0x60] sm:$0xff] %vm326_vm5, %v280_v37  ;;  %v6029_v38 = vpop.f32.mrb[14].mxu0  ;;  %v7620_v24 = vpop.f32.mrb[4].mxu1  ;;  %v743_v53 = vld [vmem:[#allocation2 + $0x58] sm:$0xff] }
 0x110   :  { %342 = vst.msk [vmem:[#allocation2 + $0x78] sm:$0xff] %vm326_vm5, %v6029_v38  ;;  %v283_v41 = vpop.f32.mrb[15].mxu0  ;;  %v7623_v11 = vpop.f32.mrb[5].mxu1 }
 0x111   :  { %340 = vst.msk [vmem:[#allocation2 + $0x68] sm:$0xff] %vm326_vm5, %v283_v41  ;;  %v7625_v25 = vpop.f32.mrb[6].mxu1 }
 0x112   :  { %6335 = vmatmul.mubr.bf16.vlgmr.msra.gmra.mrb[120].mxu0 %v3337_v39  ;;  %v7627_v7 = vpop.f32.mrb[7].mxu1  ;;  %v737_v39 = vld [vmem:[#allocation2 + $0x28] sm:$0xff] }
 0x113   :  { %6338 = vmatprep.mubr.bf16.mxu0 %v3339_v42 }
 0x115   :  { %v6032_v46 = vpop.f32.mrb[16].mxu0 }
 0x116   :  { %345 = vst.msk [vmem:[#allocation2 + $0x90] sm:$0xff] %vm326_vm5, %v6032_v46  ;;  %v296_v47 = vpop.f32.mrb[17].mxu0  ;;  %v742_v46 = vld [vmem:[#allocation2 + $0x50] sm:$0xff] }
 0x117   :  { %343 = vst.msk [vmem:[#allocation2 + $0x80] sm:$0xff] %vm326_vm5, %v296_v47  ;;  %v6033_v48 = vpop.f32.mrb[18].mxu0 }
 0x118   :  { %346 = vst.msk [vmem:[#allocation2 + $0x98] sm:$0xff] %vm326_vm5, %v6033_v48  ;;  %v299_v51 = vpop.f32.mrb[19].mxu0 }
 0x119   :  { %344 = vst.msk [vmem:[#allocation2 + $0x88] sm:$0xff] %vm326_vm5, %v299_v51  ;;  %v7634_v42 = vpop.f32.mrb[8].mxu1 }
 0x11a   :  { %6339 = vmatmul.mubr.bf16.gmra.mrb[124].mxu0 %v3341_v49  ;;  %v7637_v43 = vpop.f32.mrb[9].mxu1 }
 0x11b   :  { %6342 = vmatprep.mubr.bf16.mxu0 %v3343_v52  ;;  %v7639_v44 = vpop.f32.mrb[10].mxu1 }
 0x11c   :  { %v7641_v47 = vpop.f32.mrb[11].mxu1 }
 0x11d   :  { %v6036_v56 = vpop.f32.mrb[20].mxu0 }
 0x11e   :  { %350 = vst.msk [vmem:[#allocation2 + $0xb0] sm:$0x3] %vm349_vm7, %v6036_v56  ;;  %v312_v57 = vpop.f32.mrb[21].mxu0  ;;  %v741_v56 = vld [vmem:[#allocation2 + $0x48] sm:$0xff]  ;;  %v748_v26 = vld [vmem:[#allocation2 + $0x80] sm:$0xff] }
 0x11f   :  { %347 = vst.msk [vmem:[#allocation2 + $0xa0] sm:$0xff] %vm326_vm5, %v312_v57  ;;  %v6037_v58 = vpop.f32.mrb[22].mxu0 }
 0x120   :  { %v315_v33 = vpop.f32.mrb[23].mxu0 }
 0x121   :  { %348 = vst.msk [vmem:[#allocation2 + $0xa8] sm:$0xff] %vm326_vm5, %v315_v33  ;;  %v7646_v58 = vpop.f32.mrb[12].mxu1 }
 0x122   :  { %6343 = vmatmul.mubr.bf16.gmra.mrb[128].mxu0 %v3345_v59  ;;  %v7649_v59 = vpop.f32.mrb[13].mxu1 }
 0x123   :  { %6346 = vmatprep.mubr.bf16.mxu0 %v3347_v60  ;;  %v7651_v15 = vpop.f32.mrb[14].mxu1  ;;  %v746_v60 = vld [vmem:[#allocation2 + $0x70] sm:$0xff] }
 0x124   :  { %v7653_v61 = vpop.f32.mrb[15].mxu1 }
 0x125   :  { %v6056_v3 = vpop.f32.mrb[24].mxu0 }
 0x126   :  { %v757_v6 = vadd.f32 %v6056_v3, %v734_v4  ;;  %v638_v8 = vpop.f32.mrb[25].mxu0  ;;  %v744_v3 = vld [vmem:[#allocation2 + $0x60] sm:$0xff] }
 0x127   :  { %v755_v10 = vadd.f32 %v732_v9, %v638_v8  ;;  %v6057_v12 = vpop.f32.mrb[26].mxu0  ;;  %v747_v8 = vld [vmem:[#allocation2 + $0x78] sm:$0xff] }
 0x128   :  { %780 = vst.msk [vmem:[#allocation2 + $0x10] sm:$0xff] %vm326_vm5, %v757_v6  ;;  %v758_v17 = vadd.f32 %v6057_v12, %v735_v13  ;;  %v641_v18 = vpop.f32.mrb[27].mxu0  ;;  %v745_v12 = vld [vmem:[#allocation2 + $0x68] sm:$0xff] }
 0x129   :  { %778 = vst.msk [vmem:[#allocation2] sm:$0xff] %vm326_vm5, %v755_v10  ;;  %v756_v23 = vadd.f32 %v733_v20, %v641_v18  ;;  %v750_v20 = vld [vmem:[#allocation2 + $0x90] sm:$0xff] }
 0x12a   :  { %781 = vst.msk [vmem:[#allocation2 + $0x18] sm:$0xff] %vm326_vm5, %v758_v17  ;;  %6347 = vmatmul.mubr.bf16.gmra.mrb[132].mxu0 %v3349_v14  ;;  %v7658_v14 = vpop.f32.mrb[16].mxu1 }
 0x12b   :  { %779 = vst.msk [vmem:[#allocation2 + $0x8] sm:$0xff] %vm326_vm5, %v756_v23  ;;  %6350 = vmatprep.mubr.bf16.mxu0 %v3351_v21  ;;  %v7661_v16 = vpop.f32.mrb[17].mxu1 }
 0x12c   :  { %v7663_v17 = vpop.f32.mrb[18].mxu1 }
 0x12d   :  { %v6060_v28 = vpop.f32.mrb[28].mxu0  ;;  %v7665_v21 = vpop.f32.mrb[19].mxu1 }
 0x12e   :  { %v761_v31 = vadd.f32 %v6060_v28, %v738_v29  ;;  %v654_v32 = vpop.f32.mrb[29].mxu0  ;;  %v751_v29 = vld [vmem:[#allocation2 + $0x98] sm:$0xff] }
 0x12f   :  { %v759_v19 = vadd.f32 %v736_v34, %v654_v32  ;;  %v6061_v30 = vpop.f32.mrb[30].mxu0  ;;  %v749_v34 = vld [vmem:[#allocation2 + $0x88] sm:$0xff] }
 0x130   :  { %784 = vst.msk [vmem:[#allocation2 + $0x30] sm:$0xff] %vm326_vm5, %v761_v31  ;;  %v762_v37 = vadd.f32 %v6061_v30, %v739_v35  ;;  %v657_v38 = vpop.f32.mrb[31].mxu0 }
 0x131   :  { %782 = vst.msk [vmem:[#allocation2 + $0x20] sm:$0xff] %vm326_vm5, %v759_v19  ;;  %v760_v41 = vadd.f32 %v737_v39, %v657_v38  ;;  %v7670_v30 = vpop.f32.mrb[20].mxu1  ;;  %v754_v38 = vld [vmem:[#allocation2 + $0xb0] sm:$0x3] }
 0x132   :  { %785 = vst.msk [vmem:[#allocation2 + $0x38] sm:$0xff] %vm326_vm5, %v762_v37  ;;  %6351 = vmatmul.mubr.bf16.gmra.mrb[136].mxu0 %v3353_v36  ;;  %v7673_v35 = vpop.f32.mrb[21].mxu1 }
 0x133   :  { %783 = vst.msk [vmem:[#allocation2 + $0x28] sm:$0xff] %vm326_vm5, %v760_v41  ;;  %6354 = vmatprep.mubr.bf16.mxu0 %v3355_v40  ;;  %v6157_v36 = vpop.f32.mrb[22].mxu1 }
 0x134   :  { %v7675_v39 = vpop.f32.mrb[23].mxu1 }
 0x135   :  { %v6064_v45 = vpop.f32.mrb[32].mxu0 }
 0x136   :  { %v765_v48 = vadd.f32 %v6064_v45, %v742_v46  ;;  %v670_v49 = vpop.f32.mrb[33].mxu0  ;;  %v752_v45 = vld [vmem:[#allocation2 + $0xa0] sm:$0xff] }
 0x137   :  { %v763_v51 = vadd.f32 %v740_v50, %v670_v49  ;;  %v6065_v52 = vpop.f32.mrb[34].mxu0  ;;  %v753_v50 = vld [vmem:[#allocation2 + $0xa8] sm:$0xff] }
 0x138   :  { %788 = vst.msk [vmem:[#allocation2 + $0x50] sm:$0xff] %vm326_vm5, %v765_v48  ;;  %v766_v54 = vadd.f32 %v6065_v52, %v743_v53  ;;  %v673_v55 = vpop.f32.mrb[35].mxu0 }
 0x139   :  { %786 = vst.msk [vmem:[#allocation2 + $0x40] sm:$0xff] %vm326_vm5, %v763_v51  ;;  %v764_v57 = vadd.f32 %v741_v56, %v673_v55  ;;  %v1112_v56 = vld [vmem:[#allocation2 + $0x10] sm:$0xff] }
 0x13a   :  { %789 = vst.msk [vmem:[#allocation2 + $0x58] sm:$0xff] %vm326_vm5, %v766_v54  ;;  %6355 = vmatmul.mubr.bf16.gmra.mrb[140].mxu0 %v3354_v27 }
 0x13b   :  { %787 = vst.msk [vmem:[#allocation2 + $0x48] sm:$0xff] %vm326_vm5, %v764_v57 }
 0x13d   :  { %v6068_v33 = vpop.f32.mrb[36].mxu0 }
 0x13e   :  { %v769_v63 = vadd.f32 %v6068_v33, %v746_v60  ;;  %v686_v1 = vpop.f32.mrb[37].mxu0 }
 0x13f   :  { %v767_v4 = vadd.f32 %v744_v3, %v686_v1  ;;  %v6069_v6 = vpop.f32.mrb[38].mxu0  ;;  %v7679_v52 = vpop.f32.mrb[24].mxu1 }
 0x140   :  { %792 = vst.msk [vmem:[#allocation2 + $0x70] sm:$0xff] %vm326_vm5, %v769_v63  ;;  %v770_v9 = vadd.f32 %v6069_v6, %v747_v8  ;;  %v689_v10 = vpop.f32.mrb[39].mxu0  ;;  %v7682_v53 = vpop.f32.mrb[25].mxu1  ;;  %v1110_v63 = vld [vmem:[#allocation2] sm:$0xff] }
 0x141   :  { %790 = vst.msk [vmem:[#allocation2 + $0x60] sm:$0xff] %vm326_vm5, %v767_v4  ;;  %v768_v13 = vadd.f32 %v745_v12, %v689_v10  ;;  %v7684_v54 = vpop.f32.mrb[26].mxu1  ;;  %v1113_v4 = vld [vmem:[#allocation2 + $0x18] sm:$0xff] }
 0x142   :  { %793 = vst.msk [vmem:[#allocation2 + $0x78] sm:$0xff] %vm326_vm5, %v770_v9  ;;  %v7686_v57 = vpop.f32.mrb[27].mxu1  ;;  %v1111_v9 = vld [vmem:[#allocation2 + $0x8] sm:$0xff] }
 0x143   :  { %791 = vst.msk [vmem:[#allocation2 + $0x68] sm:$0xff] %vm326_vm5, %v768_v13 }
 0x145   :  { %v6072_v18 = vpop.f32.mrb[40].mxu0 }
 0x146   :  { %v773_v22 = vadd.f32 %v6072_v18, %v750_v20  ;;  %v702_v23 = vpop.f32.mrb[41].mxu0 }
 0x147   :  { %v771_v27 = vadd.f32 %v748_v26, %v702_v23  ;;  %v6073_v28 = vpop.f32.mrb[42].mxu0  ;;  %v7691_v12 = vpop.f32.mrb[28].mxu1 }
 0x148   :  { %796 = vst.msk [vmem:[#allocation2 + $0x90] sm:$0xff] %vm326_vm5, %v773_v22  ;;  %v774_v31 = vadd.f32 %v6073_v28, %v751_v29  ;;  %v705_v32 = vpop.f32.mrb[43].mxu0  ;;  %v7694_v13 = vpop.f32.mrb[29].mxu1  ;;  %v1116_v22 = vld [vmem:[#allocation2 + $0x30] sm:$0xff]  ;;  %v1114_v28 = vld [vmem:[#allocation2 + $0x20] sm:$0xff] }
 0x149   :  { %794 = vst.msk [vmem:[#allocation2 + $0x80] sm:$0xff] %vm326_vm5, %v771_v27  ;;  %v772_v19 = vadd.f32 %v749_v34, %v705_v32  ;;  %v7696_v18 = vpop.f32.mrb[30].mxu1  ;;  %v1117_v32 = vld [vmem:[#allocation2 + $0x38] sm:$0xff] }
 0x14a   :  { %797 = vst.msk [vmem:[#allocation2 + $0x98] sm:$0xff] %vm326_vm5, %v774_v31  ;;  %v7698_v23 = vpop.f32.mrb[31].mxu1 }
 0x14b   :  { %795 = vst.msk [vmem:[#allocation2 + $0x88] sm:$0xff] %vm326_vm5, %v772_v19 }
 0x14d   :  { %v6076_v37 = vpop.f32.mrb[44].mxu0 }
 0x14e   :  { %v777_v40 = vadd.f32 %v6076_v37, %v754_v38  ;;  %v718_v41 = vpop.f32.mrb[45].mxu0  ;;  %v1115_v38 = vld [vmem:[#allocation2 + $0x28] sm:$0xff] }
 0x14f   :  { %v775_v46 = vadd.f32 %v752_v45, %v718_v41  ;;  %v6077_v48 = vpop.f32.mrb[46].mxu0 }
 0x150   :  { %800 = vst.msk [vmem:[#allocation2 + $0xb0] sm:$0x3] %vm349_vm7, %v777_v40  ;;  %v721_v49 = vpop.f32.mrb[47].mxu0 }
 0x151   :  { %798 = vst.msk [vmem:[#allocation2 + $0xa0] sm:$0xff] %vm326_vm5, %v775_v46  ;;  %v776_v51 = vadd.f32 %v753_v50, %v721_v49  ;;  %v7707_v50 = vpop.f32.mrb[32].mxu1 }
 0x153   :  { %799 = vst.msk [vmem:[#allocation2 + $0xa8] sm:$0xff] %vm326_vm5, %v776_v51  ;;  %v7712_v51 = vpop.f32.mrb[33].mxu1 }
 0x155   :  { %v6096_v55 = vpop.f32.mrb[48].mxu0 }
 0x156   :  { %v1135_v33 = vadd.f32 %v6096_v55, %v1112_v56  ;;  %v1016_v60 = vpop.f32.mrb[49].mxu0  ;;  %v1120_v56 = vld [vmem:[#allocation2 + $0x50] sm:$0xff] }
 0x157   :  { %v1133_v1 = vadd.f32 %v1110_v63, %v1016_v60  ;;  %v6097_v3 = vpop.f32.mrb[50].mxu0  ;;  %v1118_v63 = vld [vmem:[#allocation2 + $0x40] sm:$0xff] }
 0x158   :  { %1158 = vst.msk [vmem:[#allocation2 + $0x10] sm:$0xff] %vm326_vm5, %v1135_v33  ;;  %v1136_v6 = vadd.f32 %v6097_v3, %v1113_v4  ;;  %v1019_v8 = vpop.f32.mrb[51].mxu0  ;;  %v1121_v4 = vld [vmem:[#allocation2 + $0x58] sm:$0xff] }
 0x159   :  { %1156 = vst.msk [vmem:[#allocation2] sm:$0xff] %vm326_vm5, %v1133_v1  ;;  %v1134_v10 = vadd.f32 %v1111_v9, %v1019_v8 }
 0x15a   :  { %1159 = vst.msk [vmem:[#allocation2 + $0x18] sm:$0xff] %vm326_vm5, %v1136_v6 }
 0x15b   :  { %1157 = vst.msk [vmem:[#allocation2 + $0x8] sm:$0xff] %vm326_vm5, %v1134_v10  ;;  %v1119_v10 = vld [vmem:[#allocation2 + $0x48] sm:$0xff] }
 0x15d   :  { %v6100_v20 = vpop.f32.mrb[52].mxu0 }
 0x15e   :  { %v1139_v26 = vadd.f32 %v6100_v20, %v1116_v22  ;;  %v1032_v27 = vpop.f32.mrb[53].mxu0 }
 0x15f   :  { %v1137_v29 = vadd.f32 %v1114_v28, %v1032_v27  ;;  %v6101_v31 = vpop.f32.mrb[54].mxu0  ;;  %v1489_v34 = vld [vmem:[#allocation2 + $0x10] sm:$0xff] }
 0x160   :  { %1162 = vst.msk [vmem:[#allocation2 + $0x30] sm:$0xff] %vm326_vm5, %v1139_v26  ;;  %v1140_v19 = vadd.f32 %v6101_v31, %v1117_v32  ;;  %v1512_v36 = vadd.f32 %v7601_v62, %v1489_v34  ;;  %v1035_v37 = vpop.f32.mrb[55].mxu0  ;;  %v1487_v40 = vld [vmem:[#allocation2] sm:$0xff] }
 0x161   :  { %1160 = vst.msk [vmem:[#allocation2 + $0x20] sm:$0xff] %vm326_vm5, %v1137_v29  ;;  %v1138_v41 = vadd.f32 %v1115_v38, %v1035_v37  ;;  %v1510_v45 = vadd.f32 %v1487_v40, %v7603_v0  ;;  %v1490_v46 = vld [vmem:[#allocation2 + $0x18] sm:$0xff]  ;;  %v7715_v0 = vpop.f32.mrb[34].mxu1  ;;  %v1122_v38 = vld [vmem:[#allocation2 + $0x60] sm:$0xff] }
 0x162   :  { %1163 = vst.msk [vmem:[#allocation2 + $0x38] sm:$0xff] %vm326_vm5, %v1140_v19  ;;  %1535 = vst.msk [vmem:[#allocation2 + $0x10] sm:$0xff] %vm326_vm5, %v1512_v36  ;;  %v1513_v48 = vadd.f32 %v7605_v2, %v1490_v46  ;;  %v1488_v49 = vld [vmem:[#allocation2 + $0x8] sm:$0xff]  ;;  %v7718_v2 = vpop.f32.mrb[35].mxu1  ;;  %v1124_v19 = vld [vmem:[#allocation2 + $0x70] sm:$0xff] }
 0x163   :  { %1161 = vst.msk [vmem:[#allocation2 + $0x28] sm:$0xff] %vm326_vm5, %v1138_v41  ;;  %1533 = vst.msk [vmem:[#allocation2] sm:$0xff] %vm326_vm5, %v1510_v45  ;;  %v1511_v62 = vadd.f32 %v1488_v49, %v7607_v5  ;;  %v7727_v31 = vpop.f32.mrb[36].mxu1  ;;  %v1125_v45 = vld [vmem:[#allocation2 + $0x78] sm:$0xff] }
 0x164   :  { %1536 = vst.msk [vmem:[#allocation2 + $0x18] sm:$0xff] %vm326_vm5, %v1513_v48  ;;  %v7732_v32 = vpop.f32.mrb[37].mxu1 }
 0x165   :  { %1534 = vst.msk [vmem:[#allocation2 + $0x8] sm:$0xff] %vm326_vm5, %v1511_v62  ;;  %v6104_v55 = vpop.f32.mrb[56].mxu0  ;;  %v1123_v62 = vld [vmem:[#allocation2 + $0x68] sm:$0xff] }
 0x166   :  { %v1143_v33 = vadd.f32 %v6104_v55, %v1120_v56  ;;  %v1048_v60 = vpop.f32.mrb[57].mxu0 }
 0x167   :  { %v1141_v1 = vadd.f32 %v1118_v63, %v1048_v60  ;;  %v6105_v3 = vpop.f32.mrb[58].mxu0  ;;  %v1493_v6 = vld [vmem:[#allocation2 + $0x30] sm:$0xff] }
 0x168   :  { %1166 = vst.msk [vmem:[#allocation2 + $0x50] sm:$0xff] %vm326_vm5, %v1143_v33  ;;  %v1144_v5 = vadd.f32 %v6105_v3, %v1121_v4  ;;  %v1516_v8 = vadd.f32 %v7620_v24, %v1493_v6  ;;  %v1051_v9 = vpop.f32.mrb[59].mxu0  ;;  %v1491_v20 = vld [vmem:[#allocation2 + $0x20] sm:$0xff] }
 0x169   :  { %1164 = vst.msk [vmem:[#allocation2 + $0x40] sm:$0xff] %vm326_vm5, %v1141_v1  ;;  %v1142_v22 = vadd.f32 %v1119_v10, %v1051_v9  ;;  %v1514_v26 = vadd.f32 %v1491_v20, %v7623_v11  ;;  %v1494_v27 = vld [vmem:[#allocation2 + $0x38] sm:$0xff]  ;;  %v7735_v11 = vpop.f32.mrb[38].mxu1  ;;  %v1126_v10 = vld [vmem:[#allocation2 + $0x80] sm:$0xff] }
 0x16a   :  { %1167 = vst.msk [vmem:[#allocation2 + $0x58] sm:$0xff] %vm326_vm5, %v1144_v5  ;;  %1539 = vst.msk [vmem:[#allocation2 + $0x30] sm:$0xff] %vm326_vm5, %v1516_v8  ;;  %v1517_v28 = vadd.f32 %v7625_v25, %v1494_v27  ;;  %v1492_v29 = vld [vmem:[#allocation2 + $0x28] sm:$0xff]  ;;  %v7738_v25 = vpop.f32.mrb[39].mxu1  ;;  %v1128_v5 = vld [vmem:[#allocation2 + $0x90] sm:$0xff] }
 0x16b   :  { %1165 = vst.msk [vmem:[#allocation2 + $0x48] sm:$0xff] %vm326_vm5, %v1142_v22  ;;  %1537 = vst.msk [vmem:[#allocation2 + $0x20] sm:$0xff] %vm326_vm5, %v1514_v26  ;;  %v1515_v24 = vadd.f32 %v1492_v29, %v7627_v7  ;;  %v7747_v3 = vpop.f32.mrb[40].mxu1  ;;  %v1129_v26 = vld [vmem:[#allocation2 + $0x98] sm:$0xff] }
 0x16c   :  { %1540 = vst.msk [vmem:[#allocation2 + $0x38] sm:$0xff] %vm326_vm5, %v1517_v28  ;;  %v7752_v4 = vpop.f32.mrb[41].mxu1 }
 0x16d   :  { %1538 = vst.msk [vmem:[#allocation2 + $0x28] sm:$0xff] %vm326_vm5, %v1515_v24  ;;  %v6108_v34 = vpop.f32.mrb[60].mxu0  ;;  %v1127_v24 = vld [vmem:[#allocation2 + $0x88] sm:$0xff] }
 0x16e   :  { %v1147_v36 = vadd.f32 %v6108_v34, %v1124_v19  ;;  %v1064_v37 = vpop.f32.mrb[61].mxu0 }
 0x16f   :  { %v1145_v40 = vadd.f32 %v1122_v38, %v1064_v37  ;;  %v6109_v41 = vpop.f32.mrb[62].mxu0  ;;  %v1497_v46 = vld [vmem:[#allocation2 + $0x50] sm:$0xff] }
 0x170   :  { %1170 = vst.msk [vmem:[#allocation2 + $0x70] sm:$0xff] %vm326_vm5, %v1147_v36  ;;  %v1148_v7 = vadd.f32 %v6109_v41, %v1125_v45  ;;  %v1520_v48 = vadd.f32 %v7634_v42, %v1497_v46  ;;  %v1067_v49 = vpop.f32.mrb[63].mxu0  ;;  %v1495_v55 = vld [vmem:[#allocation2 + $0x40] sm:$0xff] }
 0x171   :  { %1168 = vst.msk [vmem:[#allocation2 + $0x60] sm:$0xff] %vm326_vm5, %v1145_v40  ;;  %v1146_v56 = vadd.f32 %v1123_v62, %v1067_v49  ;;  %v1518_v33 = vadd.f32 %v1495_v55, %v7637_v43  ;;  %v1498_v60 = vld [vmem:[#allocation2 + $0x58] sm:$0xff]  ;;  %v7755_v43 = vpop.f32.mrb[42].mxu1  ;;  %v1130_v62 = vld [vmem:[#allocation2 + $0xa0] sm:$0xff] }
 0x172   :  { %1171 = vst.msk [vmem:[#allocation2 + $0x78] sm:$0xff] %vm326_vm5, %v1148_v7  ;;  %1543 = vst.msk [vmem:[#allocation2 + $0x50] sm:$0xff] %vm326_vm5, %v1520_v48  ;;  %v1521_v63 = vadd.f32 %v7639_v44, %v1498_v60  ;;  %v1496_v1 = vld [vmem:[#allocation2 + $0x48] sm:$0xff]  ;;  %v7758_v44 = vpop.f32.mrb[43].mxu1  ;;  %v1132_v7 = vld [vmem:[#allocation2 + $0xb0] sm:$0x3] }
 0x173   :  { %1169 = vst.msk [vmem:[#allocation2 + $0x68] sm:$0xff] %vm326_vm5, %v1146_v56  ;;  %1541 = vst.msk [vmem:[#allocation2 + $0x40] sm:$0xff] %vm326_vm5, %v1518_v33  ;;  %v1519_v42 = vadd.f32 %v1496_v1, %v7641_v47  ;;  %v7767_v41 = vpop.f32.mrb[44].mxu1 }
 0x174   :  { %1544 = vst.msk [vmem:[#allocation2 + $0x58] sm:$0xff] %vm326_vm5, %v1521_v63  ;;  %v7772_v45 = vpop.f32.mrb[45].mxu1  ;;  %v1131_v63 = vld [vmem:[#allocation2 + $0xa8] sm:$0xff] }
 0x175   :  { %1542 = vst.msk [vmem:[#allocation2 + $0x48] sm:$0xff] %vm326_vm5, %v1519_v42  ;;  %v6112_v6 = vpop.f32.mrb[64].mxu0 }
 0x176   :  { %v1151_v8 = vadd.f32 %v6112_v6, %v1128_v5  ;;  %v1080_v9 = vpop.f32.mrb[65].mxu0 }
 0x177   :  { %v1149_v20 = vadd.f32 %v1126_v10, %v1080_v9  ;;  %v6113_v22 = vpop.f32.mrb[66].mxu0  ;;  %v1501_v27 = vld [vmem:[#allocation2 + $0x70] sm:$0xff] }
 0x178   :  { %1174 = vst.msk [vmem:[#allocation2 + $0x90] sm:$0xff] %vm326_vm5, %v1151_v8  ;;  %v1152_v47 = vadd.f32 %v6113_v22, %v1129_v26  ;;  %v1524_v28 = vadd.f32 %v7646_v58, %v1501_v27  ;;  %v1083_v29 = vpop.f32.mrb[67].mxu0  ;;  %v1499_v34 = vld [vmem:[#allocation2 + $0x60] sm:$0xff]  ;;  %v1951_v26 = vld [vmem:[#allocation2 + $0x10] sm:$0xff] }
 0x179   :  { %1172 = vst.msk [vmem:[#allocation2 + $0x80] sm:$0xff] %vm326_vm5, %v1149_v20  ;;  %v1150_v19 = vadd.f32 %v1127_v24, %v1083_v29  ;;  %v1522_v36 = vadd.f32 %v1499_v34, %v7649_v59  ;;  %v1502_v37 = vld [vmem:[#allocation2 + $0x78] sm:$0xff]  ;;  %v6237_v59 = vpop.f32.mrb[46].mxu1 }
 0x17a   :  { %1175 = vst.msk [vmem:[#allocation2 + $0x98] sm:$0xff] %vm326_vm5, %v1152_v47  ;;  %1547 = vst.msk [vmem:[#allocation2 + $0x70] sm:$0xff] %vm326_vm5, %v1524_v28  ;;  %v1525_v38 = vadd.f32 %v7651_v15, %v1502_v37  ;;  %v1500_v40 = vld [vmem:[#allocation2 + $0x68] sm:$0xff]  ;;  %v7776_v48 = vpop.f32.mrb[47].mxu1  ;;  %v1949_v28 = vld [vmem:[#allocation2] sm:$0xff] }
 0x17b   :  { %1173 = vst.msk [vmem:[#allocation2 + $0x88] sm:$0xff] %vm326_vm5, %v1150_v19  ;;  %1545 = vst.msk [vmem:[#allocation2 + $0x60] sm:$0xff] %vm326_vm5, %v1522_v36  ;;  %v1523_v58 = vadd.f32 %v1500_v40, %v7653_v61  ;;  %v7784_v10 = vpop.f32.mrb[48].mxu1  ;;  %v1952_v19 = vld [vmem:[#allocation2 + $0x18] sm:$0xff]  ;;  %v1950_v40 = vld [vmem:[#allocation2 + $0x8] sm:$0xff] }
 0x17c   :  { %1548 = vst.msk [vmem:[#allocation2 + $0x78] sm:$0xff] %vm326_vm5, %v1525_v38  ;;  %v7789_v20 = vpop.f32.mrb[49].mxu1 }
 0x17d   :  { %1546 = vst.msk [vmem:[#allocation2 + $0x68] sm:$0xff] %vm326_vm5, %v1523_v58  ;;  %v6116_v46 = vpop.f32.mrb[68].mxu0  ;;  %v7792_v22 = vpop.f32.mrb[50].mxu1 }
 0x17e   :  { %v1155_v15 = vadd.f32 %v6116_v46, %v1132_v7  ;;  %v1096_v49 = vpop.f32.mrb[69].mxu0 }
 0x17f   :  { %v1153_v55 = vadd.f32 %v1130_v62, %v1096_v49  ;;  %v6117_v56 = vpop.f32.mrb[70].mxu0  ;;  %v1505_v33 = vld [vmem:[#allocation2 + $0x90] sm:$0xff] }
 0x180   :  { %1178 = vst.msk [vmem:[#allocation2 + $0xb0] sm:$0x3] %vm349_vm7, %v1155_v15  ;;  %v1528_v61 = vadd.f32 %v7658_v14, %v1505_v33  ;;  %v1099_v60 = vpop.f32.mrb[71].mxu0  ;;  %v1503_v1 = vld [vmem:[#allocation2 + $0x80] sm:$0xff]  ;;  %v1955_v62 = vld [vmem:[#allocation2 + $0x30] sm:$0xff] }
 0x181   :  { %1176 = vst.msk [vmem:[#allocation2 + $0xa0] sm:$0xff] %vm326_vm5, %v1153_v55  ;;  %v1154_v42 = vadd.f32 %v1131_v63, %v1099_v60  ;;  %v1526_v6 = vadd.f32 %v1503_v1, %v7661_v16  ;;  %v1506_v5 = vld [vmem:[#allocation2 + $0x98] sm:$0xff] }
 0x182   :  { %1551 = vst.msk [vmem:[#allocation2 + $0x90] sm:$0xff] %vm326_vm5, %v1528_v61  ;;  %v1529_v8 = vadd.f32 %v7663_v17, %v1506_v5  ;;  %v1504_v9 = vld [vmem:[#allocation2 + $0x88] sm:$0xff]  ;;  %v7795_v17 = vpop.f32.mrb[51].mxu1  ;;  %v1953_v61 = vld [vmem:[#allocation2 + $0x20] sm:$0xff]  ;;  %v1956_v1 = vld [vmem:[#allocation2 + $0x38] sm:$0xff] }
 0x183   :  { %1177 = vst.msk [vmem:[#allocation2 + $0xa8] sm:$0xff] %vm326_vm5, %v1154_v42  ;;  %1549 = vst.msk [vmem:[#allocation2 + $0x80] sm:$0xff] %vm326_vm5, %v1526_v6  ;;  %v1527_v14 = vadd.f32 %v1504_v9, %v7665_v21  ;;  %v7803_v7 = vpop.f32.mrb[52].mxu1 }
 0x184   :  { %1552 = vst.msk [vmem:[#allocation2 + $0x98] sm:$0xff] %vm326_vm5, %v1529_v8  ;;  %v7808_v15 = vpop.f32.mrb[53].mxu1  ;;  %v1954_v8 = vld [vmem:[#allocation2 + $0x28] sm:$0xff] }
 0x185   :  { %1550 = vst.msk [vmem:[#allocation2 + $0x88] sm:$0xff] %vm326_vm5, %v1527_v14  ;;  %v6176_v16 = vpop.f32.mrb[72].mxu0  ;;  %v7810_v49 = vpop.f32.mrb[54].mxu1 }
 0x186   :  { %v1974_v27 = vadd.f32 %v6176_v16, %v1951_v26  ;;  %v1855_v47 = vpop.f32.mrb[73].mxu0  ;;  %v7813_v55 = vpop.f32.mrb[55].mxu1 }
 0x187   :  { %v1972_v29 = vadd.f32 %v1949_v28, %v1855_v47  ;;  %v1509_v24 = vld [vmem:[#allocation2 + $0xb0] sm:$0x3]  ;;  %v6177_v34 = vpop.f32.mrb[74].mxu0  ;;  %v7822_v28 = vpop.f32.mrb[56].mxu1 }
 0x188   :  { %1997 = vst.msk [vmem:[#allocation2 + $0x10] sm:$0xff] %vm326_vm5, %v1974_v27  ;;  %v1532_v21 = vadd.f32 %v7670_v30, %v1509_v24  ;;  %v1975_v36 = vadd.f32 %v6177_v34, %v1952_v19  ;;  %v1507_v37 = vld [vmem:[#allocation2 + $0xa0] sm:$0xff]  ;;  %v1858_v38 = vpop.f32.mrb[75].mxu0  ;;  %v1959_v34 = vld [vmem:[#allocation2 + $0x50] sm:$0xff] }
 0x189   :  { %1995 = vst.msk [vmem:[#allocation2] sm:$0xff] %vm326_vm5, %v1972_v29  ;;  %v1530_v58 = vadd.f32 %v1507_v37, %v7673_v35  ;;  %v1973_v59 = vadd.f32 %v1950_v40, %v1858_v38  ;;  %v7827_v29 = vpop.f32.mrb[57].mxu1  ;;  %v1960_v40 = vld [vmem:[#allocation2 + $0x58] sm:$0xff] }
 0x18a   :  { %1555 = vst.msk [vmem:[#allocation2 + $0xb0] sm:$0x3] %vm349_vm7, %v1532_v21  ;;  %v1508_v46 = vld [vmem:[#allocation2 + $0xa8] sm:$0xff] }
 0x18b   :  { %1998 = vst.msk [vmem:[#allocation2 + $0x18] sm:$0xff] %vm326_vm5, %v1975_v36  ;;  %1553 = vst.msk [vmem:[#allocation2 + $0xa0] sm:$0xff] %vm326_vm5, %v1530_v58  ;;  %v1531_v30 = vadd.f32 %v1508_v46, %v7675_v39  ;;  %v1957_v36 = vld [vmem:[#allocation2 + $0x40] sm:$0xff] }
 0x18c   :  { %1996 = vst.msk [vmem:[#allocation2 + $0x8] sm:$0xff] %vm326_vm5, %v1973_v59 }
 0x18d   :  { %1554 = vst.msk [vmem:[#allocation2 + $0xa8] sm:$0xff] %vm326_vm5, %v1531_v30  ;;  %v6180_v35 = vpop.f32.mrb[76].mxu0  ;;  %v1958_v30 = vld [vmem:[#allocation2 + $0x48] sm:$0xff] }
 0x18e   :  { %v1978_v56 = vadd.f32 %v6180_v35, %v1955_v62  ;;  %v1871_v33 = vpop.f32.mrb[77].mxu0 }
 0x18f   :  { %v1976_v60 = vadd.f32 %v1953_v61, %v1871_v33  ;;  %v6181_v63 = vpop.f32.mrb[78].mxu0  ;;  %v2329_v42 = vld [vmem:[#allocation2 + $0x10] sm:$0xff] }
 0x190   :  { %2001 = vst.msk [vmem:[#allocation2 + $0x30] sm:$0xff] %vm326_vm5, %v1978_v56  ;;  %v1979_v39 = vadd.f32 %v6181_v63, %v1956_v1  ;;  %v2352_v6 = vadd.f32 %v7679_v52, %v2329_v42  ;;  %v1874_v5 = vpop.f32.mrb[79].mxu0  ;;  %v2327_v9 = vld [vmem:[#allocation2] sm:$0xff] }
 0x191   :  { %1999 = vst.msk [vmem:[#allocation2 + $0x20] sm:$0xff] %vm326_vm5, %v1976_v60  ;;  %v1977_v14 = vadd.f32 %v1954_v8, %v1874_v5  ;;  %v2350_v16 = vadd.f32 %v2327_v9, %v7682_v53  ;;  %v7830_v53 = vpop.f32.mrb[58].mxu1  ;;  %v1961_v8 = vld [vmem:[#allocation2 + $0x60] sm:$0xff] }
 0x192   :  { %v2330_v26 = vld [vmem:[#allocation2 + $0x18] sm:$0xff]  ;;  %2002 = vst.msk [vmem:[#allocation2 + $0x38] sm:$0xff] %vm326_vm5, %v1979_v39  ;;  %2375 = vst.msk [vmem:[#allocation2 + $0x10] sm:$0xff] %vm326_vm5, %v2352_v6  ;;  %v1963_v39 = vld [vmem:[#allocation2 + $0x70] sm:$0xff] }
 0x193   :  { %v2353_v27 = vadd.f32 %v7684_v54, %v2330_v26  ;;  %v2328_v47 = vld [vmem:[#allocation2 + $0x8] sm:$0xff]  ;;  %2000 = vst.msk [vmem:[#allocation2 + $0x28] sm:$0xff] %vm326_vm5, %v1977_v14  ;;  %2373 = vst.msk [vmem:[#allocation2] sm:$0xff] %vm326_vm5, %v2350_v16  ;;  %v7833_v54 = vpop.f32.mrb[59].mxu1  ;;  %v1964_v16 = vld [vmem:[#allocation2 + $0x78] sm:$0xff] }
 0x194   :  { %v2351_v52 = vadd.f32 %v2328_v47, %v7686_v57  ;;  %v7842_v63 = vpop.f32.mrb[60].mxu1 }
 0x195   :  { %2376 = vst.msk [vmem:[#allocation2 + $0x18] sm:$0xff] %vm326_vm5, %v2353_v27  ;;  %v6184_v24 = vpop.f32.mrb[80].mxu0  ;;  %v7847_v1 = vpop.f32.mrb[61].mxu1 }
 0x196   :  { %2374 = vst.msk [vmem:[#allocation2 + $0x8] sm:$0xff] %vm326_vm5, %v2351_v52  ;;  %v1982_v19 = vadd.f32 %v6184_v24, %v1959_v34  ;;  %v1887_v21 = vpop.f32.mrb[81].mxu0  ;;  %v1962_v52 = vld [vmem:[#allocation2 + $0x68] sm:$0xff] }
 0x197   :  { %v1980_v37 = vadd.f32 %v1957_v36, %v1887_v21  ;;  %v6185_v38 = vpop.f32.mrb[82].mxu0  ;;  %v2333_v58 = vld [vmem:[#allocation2 + $0x30] sm:$0xff] }
 0x198   :  { %2005 = vst.msk [vmem:[#allocation2 + $0x50] sm:$0xff] %vm326_vm5, %v1982_v19  ;;  %v1983_v57 = vadd.f32 %v6185_v38, %v1960_v40  ;;  %v2356_v59 = vadd.f32 %v7691_v12, %v2333_v58  ;;  %v1890_v46 = vpop.f32.mrb[83].mxu0  ;;  %v2331_v35 = vld [vmem:[#allocation2 + $0x20] sm:$0xff] }
 0x199   :  { %2003 = vst.msk [vmem:[#allocation2 + $0x40] sm:$0xff] %vm326_vm5, %v1980_v37  ;;  %v1981_v62 = vadd.f32 %v1958_v30, %v1890_v46  ;;  %v2354_v56 = vadd.f32 %v2331_v35, %v7694_v13  ;;  %v2334_v33 = vld [vmem:[#allocation2 + $0x38] sm:$0xff]  ;;  %v7850_v13 = vpop.f32.mrb[62].mxu1  ;;  %v1965_v30 = vld [vmem:[#allocation2 + $0x80] sm:$0xff] }
 0x19a   :  { %2006 = vst.msk [vmem:[#allocation2 + $0x58] sm:$0xff] %vm326_vm5, %v1983_v57  ;;  %2379 = vst.msk [vmem:[#allocation2 + $0x30] sm:$0xff] %vm326_vm5, %v2356_v59  ;;  %v2357_v61 = vadd.f32 %v7696_v18, %v2334_v33  ;;  %v2332_v60 = vld [vmem:[#allocation2 + $0x28] sm:$0xff]  ;;  %v7853_v18 = vpop.f32.mrb[63].mxu1  ;;  %v1967_v57 = vld [vmem:[#allocation2 + $0x90] sm:$0xff] }
 0x19b   :  { %2004 = vst.msk [vmem:[#allocation2 + $0x48] sm:$0xff] %vm326_vm5, %v1981_v62  ;;  %2377 = vst.msk [vmem:[#allocation2 + $0x20] sm:$0xff] %vm326_vm5, %v2354_v56  ;;  %v2355_v12 = vadd.f32 %v2332_v60, %v7698_v23  ;;  %v7862_v38 = vpop.f32.mrb[64].mxu1  ;;  %v1968_v56 = vld [vmem:[#allocation2 + $0x98] sm:$0xff] }
 0x19c   :  { %2380 = vst.msk [vmem:[#allocation2 + $0x38] sm:$0xff] %vm326_vm5, %v2357_v61  ;;  %v7867_v40 = vpop.f32.mrb[65].mxu1 }
 0x19d   :  { %2378 = vst.msk [vmem:[#allocation2 + $0x28] sm:$0xff] %vm326_vm5, %v2355_v12  ;;  %v6188_v42 = vpop.f32.mrb[84].mxu0  ;;  %v1966_v12 = vld [vmem:[#allocation2 + $0x88] sm:$0xff] }
 0x19e   :  { %v1986_v6 = vadd.f32 %v6188_v42, %v1963_v39  ;;  %v1903_v5 = vpop.f32.mrb[85].mxu0 }
 0x19f   :  { %v1984_v9 = vadd.f32 %v1961_v8, %v1903_v5  ;;  %v6189_v14 = vpop.f32.mrb[86].mxu0  ;;  %v2337_v26 = vld [vmem:[#allocation2 + $0x50] sm:$0xff] }
 0x1a0   :  { %2009 = vst.msk [vmem:[#allocation2 + $0x70] sm:$0xff] %vm326_vm5, %v1986_v6  ;;  %v1987_v23 = vadd.f32 %v6189_v14, %v1964_v16  ;;  %v2360_v27 = vadd.f32 %v7707_v50, %v2337_v26  ;;  %v1906_v47 = vpop.f32.mrb[87].mxu0  ;;  %v2335_v24 = vld [vmem:[#allocation2 + $0x40] sm:$0xff] }
 0x1a1   :  { %2007 = vst.msk [vmem:[#allocation2 + $0x60] sm:$0xff] %vm326_vm5, %v1984_v9  ;;  %v1985_v34 = vadd.f32 %v1962_v52, %v1906_v47  ;;  %v2358_v19 = vadd.f32 %v2335_v24, %v7712_v51  ;;  %v2338_v21 = vld [vmem:[#allocation2 + $0x58] sm:$0xff]  ;;  %v7870_v51 = vpop.f32.mrb[66].mxu1  ;;  %v1969_v52 = vld [vmem:[#allocation2 + $0xa0] sm:$0xff] }
 0x1a2   :  { %2010 = vst.msk [vmem:[#allocation2 + $0x78] sm:$0xff] %vm326_vm5, %v1987_v23  ;;  %2383 = vst.msk [vmem:[#allocation2 + $0x50] sm:$0xff] %vm326_vm5, %v2360_v27  ;;  %v2361_v36 = vadd.f32 %v7715_v0, %v2338_v21  ;;  %v2336_v37 = vld [vmem:[#allocation2 + $0x48] sm:$0xff]  ;;  %v7873_v0 = vpop.f32.mrb[67].mxu1  ;;  %v1971_v23 = vld [vmem:[#allocation2 + $0xb0] sm:$0x3] }
 0x1a3   :  { %2008 = vst.msk [vmem:[#allocation2 + $0x68] sm:$0xff] %vm326_vm5, %v1985_v34  ;;  %2381 = vst.msk [vmem:[#allocation2 + $0x40] sm:$0xff] %vm326_vm5, %v2358_v19  ;;  %v2359_v50 = vadd.f32 %v2336_v37, %v7718_v2  ;;  %v7882_v14 = vpop.f32.mrb[68].mxu1 }
 0x1a4   :  { %2384 = vst.msk [vmem:[#allocation2 + $0x58] sm:$0xff] %vm326_vm5, %v2361_v36  ;;  %v7887_v16 = vpop.f32.mrb[69].mxu1  ;;  %v1970_v36 = vld [vmem:[#allocation2 + $0xa8] sm:$0xff] }
 0x1a5   :  { %2382 = vst.msk [vmem:[#allocation2 + $0x48] sm:$0xff] %vm326_vm5, %v2359_v50  ;;  %v6192_v58 = vpop.f32.mrb[88].mxu0 }
 0x1a6   :  { %v1990_v59 = vadd.f32 %v6192_v58, %v1967_v57  ;;  %v1919_v46 = vpop.f32.mrb[89].mxu0 }
 0x1a7   :  { %v1988_v35 = vadd.f32 %v1965_v30, %v1919_v46  ;;  %v6193_v62 = vpop.f32.mrb[90].mxu0  ;;  %v2341_v33 = vld [vmem:[#allocation2 + $0x70] sm:$0xff] }
 0x1a8   :  { %2013 = vst.msk [vmem:[#allocation2 + $0x90] sm:$0xff] %vm326_vm5, %v1990_v59  ;;  %v1991_v2 = vadd.f32 %v6193_v62, %v1968_v56  ;;  %v2364_v61 = vadd.f32 %v7727_v31, %v2341_v33  ;;  %v1922_v60 = vpop.f32.mrb[91].mxu0  ;;  %v2339_v42 = vld [vmem:[#allocation2 + $0x60] sm:$0xff] }
 0x1a9   :  { %2011 = vst.msk [vmem:[#allocation2 + $0x80] sm:$0xff] %vm326_vm5, %v1988_v35  ;;  %v1989_v39 = vadd.f32 %v1966_v12, %v1922_v60  ;;  %v2362_v6 = vadd.f32 %v2339_v42, %v7732_v32  ;;  %v2342_v5 = vld [vmem:[#allocation2 + $0x78] sm:$0xff]  ;;  %v6317_v32 = vpop.f32.mrb[70].mxu1  ;;  %v2706_v35 = vld [vmem:[#allocation2 + $0x10] sm:$0xff]  ;;  %v2704_v56 = vld [vmem:[#allocation2] sm:$0xff] }
 0x1aa   :  { %2014 = vst.msk [vmem:[#allocation2 + $0x98] sm:$0xff] %vm326_vm5, %v1991_v2  ;;  %2387 = vst.msk [vmem:[#allocation2 + $0x70] sm:$0xff] %vm326_vm5, %v2364_v61  ;;  %v2365_v8 = vadd.f32 %v7735_v11, %v2342_v5  ;;  %v2340_v9 = vld [vmem:[#allocation2 + $0x68] sm:$0xff]  ;;  %v7891_v27 = vpop.f32.mrb[71].mxu1 }
 0x1ab   :  { %2012 = vst.msk [vmem:[#allocation2 + $0x88] sm:$0xff] %vm326_vm5, %v1989_v39  ;;  %2385 = vst.msk [vmem:[#allocation2 + $0x60] sm:$0xff] %vm326_vm5, %v2362_v6  ;;  %v2363_v31 = vadd.f32 %v2340_v9, %v7738_v25  ;;  %v2705_v39 = vld [vmem:[#allocation2 + $0x8] sm:$0xff] }
 0x1ac   :  { %2388 = vst.msk [vmem:[#allocation2 + $0x78] sm:$0xff] %vm326_vm5, %v2365_v8 }
 0x1ad   :  { %2386 = vst.msk [vmem:[#allocation2 + $0x68] sm:$0xff] %vm326_vm5, %v2363_v31  ;;  %v6196_v26 = vpop.f32.mrb[92].mxu0  ;;  %v2710_v31 = vld [vmem:[#allocation2 + $0x30] sm:$0xff] }
 0x1ae   :  { %v1994_v11 = vadd.f32 %v6196_v26, %v1971_v23  ;;  %v1935_v47 = vpop.f32.mrb[93].mxu0  ;;  %v2708_v23 = vld [vmem:[#allocation2 + $0x20] sm:$0xff] }
 0x1af   :  { %v1992_v24 = vadd.f32 %v1969_v52, %v1935_v47  ;;  %v6197_v34 = vpop.f32.mrb[94].mxu0  ;;  %v2345_v19 = vld [vmem:[#allocation2 + $0x90] sm:$0xff]  ;;  %v2711_v47 = vld [vmem:[#allocation2 + $0x38] sm:$0xff] }
 0x1b0   :  { %2017 = vst.msk [vmem:[#allocation2 + $0xb0] sm:$0x3] %vm349_vm7, %v1994_v11  ;;  %v2368_v25 = vadd.f32 %v7747_v3, %v2345_v19  ;;  %v1938_v21 = vpop.f32.mrb[95].mxu0  ;;  %v2343_v37 = vld [vmem:[#allocation2 + $0x80] sm:$0xff] }
 0x1b1   :  { %2015 = vst.msk [vmem:[#allocation2 + $0xa0] sm:$0xff] %vm326_vm5, %v1992_v24  ;;  %v1993_v50 = vadd.f32 %v1970_v36, %v1938_v21  ;;  %v2366_v58 = vadd.f32 %v2343_v37, %v7752_v4  ;;  %v2346_v57 = vld [vmem:[#allocation2 + $0x98] sm:$0xff] }
 0x1b2   :  { %2391 = vst.msk [vmem:[#allocation2 + $0x90] sm:$0xff] %vm326_vm5, %v2368_v25  ;;  %v2369_v59 = vadd.f32 %v7755_v43, %v2346_v57  ;;  %v2344_v46 = vld [vmem:[#allocation2 + $0x88] sm:$0xff]  ;;  %v2707_v43 = vld [vmem:[#allocation2 + $0x18] sm:$0xff] }
 0x1b3   :  { %2016 = vst.msk [vmem:[#allocation2 + $0xa8] sm:$0xff] %vm326_vm5, %v1993_v50  ;;  %2389 = vst.msk [vmem:[#allocation2 + $0x80] sm:$0xff] %vm326_vm5, %v2366_v58  ;;  %v2367_v3 = vadd.f32 %v2344_v46, %v7758_v44  ;;  %v2709_v25 = vld [vmem:[#allocation2 + $0x28] sm:$0xff] }
 0x1b4   :  { %2392 = vst.msk [vmem:[#allocation2 + $0x98] sm:$0xff] %vm326_vm5, %v2369_v59 }
 0x1b5   :  { %2390 = vst.msk [vmem:[#allocation2 + $0x88] sm:$0xff] %vm326_vm5, %v2367_v3  ;;  %v6256_v30 = vpop.f32.mrb[96].mxu0  ;;  %v2712_v3 = vld [vmem:[#allocation2 + $0x40] sm:$0xff] }
 0x1b6   :  { %v2729_v62 = vadd.f32 %v6256_v30, %v2706_v35  ;;  %v2610_v4 = vpop.f32.mrb[97].mxu0 }
 0x1b7   :  { %v2727_v33 = vadd.f32 %v2704_v56, %v2610_v4  ;;  %v2349_v2 = vld [vmem:[#allocation2 + $0xb0] sm:$0x3]  ;;  %v6257_v61 = vpop.f32.mrb[98].mxu0 }
 0x1b8   :  { %2752 = vst.msk [vmem:[#allocation2 + $0x10] sm:$0xff] %vm326_vm5, %v2729_v62  ;;  %v2372_v60 = vadd.f32 %v7767_v41, %v2349_v2  ;;  %v2730_v12 = vadd.f32 %v6257_v61, %v2707_v43  ;;  %v2347_v42 = vld [vmem:[#allocation2 + $0xa0] sm:$0xff]  ;;  %v2613_v44 = vpop.f32.mrb[99].mxu0  ;;  %v2715_v62 = vld [vmem:[#allocation2 + $0x58] sm:$0xff] }
 0x1b9   :  { %2750 = vst.msk [vmem:[#allocation2] sm:$0xff] %vm326_vm5, %v2727_v33  ;;  %v2370_v6 = vadd.f32 %v2347_v42, %v7772_v45  ;;  %v2728_v5 = vadd.f32 %v2705_v39, %v2613_v44 }
 0x1ba   :  { %2395 = vst.msk [vmem:[#allocation2 + $0xb0] sm:$0x3] %vm349_vm7, %v2372_v60  ;;  %v2348_v8 = vld [vmem:[#allocation2 + $0xa8] sm:$0xff] }
 0x1bb   :  { %2753 = vst.msk [vmem:[#allocation2 + $0x18] sm:$0xff] %vm326_vm5, %v2730_v12  ;;  %2393 = vst.msk [vmem:[#allocation2 + $0xa0] sm:$0xff] %vm326_vm5, %v2370_v6  ;;  %v2371_v41 = vadd.f32 %v2348_v8, %v7776_v48 }
 0x1bc   :  { %2751 = vst.msk [vmem:[#allocation2 + $0x8] sm:$0xff] %vm326_vm5, %v2728_v5  ;;  %v2716_v5 = vld [vmem:[#allocation2 + $0x60] sm:$0xff] }
 0x1bd   :  { %2394 = vst.msk [vmem:[#allocation2 + $0xa8] sm:$0xff] %vm326_vm5, %v2371_v41  ;;  %v6260_v9 = vpop.f32.mrb[100].mxu0 }
 0x1be   :  { %v2733_v32 = vadd.f32 %v6260_v9, %v2710_v31  ;;  %v2626_v26 = vpop.f32.mrb[101].mxu0  ;;  %v2719_v9 = vld [vmem:[#allocation2 + $0x78] sm:$0xff] }
 0x1bf   :  { %v2731_v45 = vadd.f32 %v2708_v23, %v2626_v26  ;;  %v6261_v11 = vpop.f32.mrb[102].mxu0  ;;  %v3168_v52 = vld [vmem:[#allocation2 + $0x10] sm:$0xff] }
 0x1c0   :  { %2756 = vst.msk [vmem:[#allocation2 + $0x30] sm:$0xff] %vm326_vm5, %v2733_v32  ;;  %v2734_v24 = vadd.f32 %v6261_v11, %v2711_v47  ;;  %v3191_v34 = vadd.f32 %v7784_v10, %v3168_v52  ;;  %v2629_v19 = vpop.f32.mrb[103].mxu0  ;;  %v3166_v21 = vld [vmem:[#allocation2] sm:$0xff] }
 0x1c1   :  { %2754 = vst.msk [vmem:[#allocation2 + $0x20] sm:$0xff] %vm326_vm5, %v2731_v45  ;;  %v2732_v48 = vadd.f32 %v2709_v25, %v2629_v19  ;;  %v3189_v36 = vadd.f32 %v3166_v21, %v7789_v20  ;;  %v2714_v20 = vld [vmem:[#allocation2 + $0x50] sm:$0xff]  ;;  %v2720_v21 = vld [vmem:[#allocation2 + $0x80] sm:$0xff] }
 0x1c2   :  { %v3169_v37 = vld [vmem:[#allocation2 + $0x18] sm:$0xff]  ;;  %2757 = vst.msk [vmem:[#allocation2 + $0x38] sm:$0xff] %vm326_vm5, %v2734_v24  ;;  %3214 = vst.msk [vmem:[#allocation2 + $0x10] sm:$0xff] %vm326_vm5, %v3191_v34 }
 0x1c3   :  { %v3192_v50 = vadd.f32 %v7792_v22, %v3169_v37  ;;  %v3167_v58 = vld [vmem:[#allocation2 + $0x8] sm:$0xff]  ;;  %2755 = vst.msk [vmem:[#allocation2 + $0x28] sm:$0xff] %vm326_vm5, %v2732_v48  ;;  %3212 = vst.msk [vmem:[#allocation2] sm:$0xff] %vm326_vm5, %v3189_v36  ;;  %v2723_v37 = vld [vmem:[#allocation2 + $0x98] sm:$0xff] }
 0x1c4   :  { %v3190_v10 = vadd.f32 %v3167_v58, %v7795_v17  ;;  %v2713_v17 = vld [vmem:[#allocation2 + $0x48] sm:$0xff] }
 0x1c5   :  { %3215 = vst.msk [vmem:[#allocation2 + $0x18] sm:$0xff] %vm326_vm5, %v3192_v50  ;;  %v6264_v57 = vpop.f32.mrb[104].mxu0 }
 0x1c6   :  { %3213 = vst.msk [vmem:[#allocation2 + $0x8] sm:$0xff] %vm326_vm5, %v3190_v10  ;;  %v2737_v59 = vadd.f32 %v6264_v57, %v2714_v20  ;;  %v2642_v46 = vpop.f32.mrb[105].mxu0 }
 0x1c7   :  { %v2735_v30 = vadd.f32 %v2712_v3, %v2642_v46  ;;  %v6265_v35 = vpop.f32.mrb[106].mxu0  ;;  %v3172_v22 = vld [vmem:[#allocation2 + $0x30] sm:$0xff] }
 0x1c8   :  { %2760 = vst.msk [vmem:[#allocation2 + $0x50] sm:$0xff] %vm326_vm5, %v2737_v59  ;;  %v2738_v4 = vadd.f32 %v6265_v35, %v2715_v62  ;;  %v3195_v56 = vadd.f32 %v7803_v7, %v3172_v22  ;;  %v2645_v33 = vpop.f32.mrb[107].mxu0  ;;  %v3170_v2 = vld [vmem:[#allocation2 + $0x20] sm:$0xff] }
 0x1c9   :  { %2758 = vst.msk [vmem:[#allocation2 + $0x40] sm:$0xff] %vm326_vm5, %v2735_v30  ;;  %v2736_v61 = vadd.f32 %v2713_v17, %v2645_v33  ;;  %v3193_v43 = vadd.f32 %v3170_v2, %v7808_v15  ;;  %v3173_v60 = vld [vmem:[#allocation2 + $0x38] sm:$0xff]  ;;  %v2718_v15 = vld [vmem:[#allocation2 + $0x70] sm:$0xff] }
 0x1ca   :  { %2761 = vst.msk [vmem:[#allocation2 + $0x58] sm:$0xff] %vm326_vm5, %v2738_v4  ;;  %3218 = vst.msk [vmem:[#allocation2 + $0x30] sm:$0xff] %vm326_vm5, %v3195_v56  ;;  %v3196_v12 = vadd.f32 %v7810_v49, %v3173_v60  ;;  %v3171_v42 = vld [vmem:[#allocation2 + $0x28] sm:$0xff]  ;;  %v2724_v4 = vld [vmem:[#allocation2 + $0xa0] sm:$0xff] }
 0x1cb   :  { %2759 = vst.msk [vmem:[#allocation2 + $0x48] sm:$0xff] %vm326_vm5, %v2736_v61  ;;  %3216 = vst.msk [vmem:[#allocation2 + $0x20] sm:$0xff] %vm326_vm5, %v3193_v43  ;;  %v3194_v7 = vadd.f32 %v3171_v42, %v7813_v55  ;;  %v2717_v55 = vld [vmem:[#allocation2 + $0x68] sm:$0xff] }
 0x1cc   :  { %3219 = vst.msk [vmem:[#allocation2 + $0x38] sm:$0xff] %vm326_vm5, %v3196_v12  ;;  %v2725_v61 = vld [vmem:[#allocation2 + $0xa8] sm:$0xff] }
 0x1cd   :  { %3217 = vst.msk [vmem:[#allocation2 + $0x28] sm:$0xff] %vm326_vm5, %v3194_v7  ;;  %v6268_v44 = vpop.f32.mrb[108].mxu0 }
 0x1ce   :  { %v2741_v39 = vadd.f32 %v6268_v44, %v2718_v15  ;;  %v2658_v6 = vpop.f32.mrb[109].mxu0  ;;  %v3546_v15 = vld [vmem:[#allocation2 + $0x10] sm:$0xff] }
 0x1cf   :  { %v2739_v8 = vadd.f32 %v2716_v5, %v2658_v6  ;;  %v6269_v41 = vpop.f32.mrb[110].mxu0  ;;  %v3176_v49 = vld [vmem:[#allocation2 + $0x50] sm:$0xff]  ;;  %v3544_v6 = vld [vmem:[#allocation2] sm:$0xff] }
 0x1d0   :  { %2764 = vst.msk [vmem:[#allocation2 + $0x70] sm:$0xff] %vm326_vm5, %v2741_v39  ;;  %v2742_v31 = vadd.f32 %v6269_v41, %v2719_v9  ;;  %v3199_v32 = vadd.f32 %v7822_v28, %v3176_v49  ;;  %v2661_v26 = vpop.f32.mrb[111].mxu0  ;;  %v3174_v23 = vld [vmem:[#allocation2 + $0x40] sm:$0xff] }
 0x1d1   :  { %2762 = vst.msk [vmem:[#allocation2 + $0x60] sm:$0xff] %vm326_vm5, %v2739_v8  ;;  %v2740_v45 = vadd.f32 %v2717_v55, %v2661_v26  ;;  %v3197_v11 = vadd.f32 %v3174_v23, %v7827_v29  ;;  %v3177_v47 = vld [vmem:[#allocation2 + $0x58] sm:$0xff]  ;;  %v2722_v29 = vld [vmem:[#allocation2 + $0x90] sm:$0xff] }
 0x1d2   :  { %2765 = vst.msk [vmem:[#allocation2 + $0x78] sm:$0xff] %vm326_vm5, %v2742_v31  ;;  %3222 = vst.msk [vmem:[#allocation2 + $0x50] sm:$0xff] %vm326_vm5, %v3199_v32  ;;  %v3200_v52 = vadd.f32 %v7830_v53, %v3177_v47  ;;  %v3175_v24 = vld [vmem:[#allocation2 + $0x48] sm:$0xff] }
 0x1d3   :  { %2763 = vst.msk [vmem:[#allocation2 + $0x68] sm:$0xff] %vm326_vm5, %v2740_v45  ;;  %3220 = vst.msk [vmem:[#allocation2 + $0x40] sm:$0xff] %vm326_vm5, %v3197_v11  ;;  %v3198_v28 = vadd.f32 %v3175_v24, %v7833_v54  ;;  %v2721_v54 = vld [vmem:[#allocation2 + $0x88] sm:$0xff]  ;;  %v3550_v11 = vld [vmem:[#allocation2 + $0x30] sm:$0xff] }
 0x1d4   :  { %3223 = vst.msk [vmem:[#allocation2 + $0x58] sm:$0xff] %vm326_vm5, %v3200_v52  ;;  %v3545_v32 = vld [vmem:[#allocation2 + $0x8] sm:$0xff]  ;;  %v3548_v24 = vld [vmem:[#allocation2 + $0x20] sm:$0xff] }
 0x1d5   :  { %3221 = vst.msk [vmem:[#allocation2 + $0x48] sm:$0xff] %vm326_vm5, %v3198_v28  ;;  %v6272_v34 = vpop.f32.mrb[112].mxu0 }
 0x1d6   :  { %v2745_v19 = vadd.f32 %v6272_v34, %v2722_v29  ;;  %v2674_v25 = vpop.f32.mrb[113].mxu0  ;;  %v3551_v34 = vld [vmem:[#allocation2 + $0x38] sm:$0xff] }
 0x1d7   :  { %v2743_v48 = vadd.f32 %v2720_v21, %v2674_v25  ;;  %v6273_v36 = vpop.f32.mrb[114].mxu0  ;;  %v3180_v53 = vld [vmem:[#allocation2 + $0x70] sm:$0xff]  ;;  %v3549_v21 = vld [vmem:[#allocation2 + $0x28] sm:$0xff] }
 0x1d8   :  { %2768 = vst.msk [vmem:[#allocation2 + $0x90] sm:$0xff] %vm326_vm5, %v2745_v19  ;;  %v2746_v50 = vadd.f32 %v6273_v36, %v2723_v37  ;;  %v3203_v58 = vadd.f32 %v7842_v63, %v3180_v53  ;;  %v2677_v10 = vpop.f32.mrb[115].mxu0  ;;  %v3178_v57 = vld [vmem:[#allocation2 + $0x60] sm:$0xff] }
 0x1d9   :  { %2766 = vst.msk [vmem:[#allocation2 + $0x80] sm:$0xff] %vm326_vm5, %v2743_v48  ;;  %v2744_v20 = vadd.f32 %v2721_v54, %v2677_v10  ;;  %v3201_v59 = vadd.f32 %v3178_v57, %v7847_v1  ;;  %v3181_v46 = vld [vmem:[#allocation2 + $0x78] sm:$0xff]  ;;  %v2726_v1 = vld [vmem:[#allocation2 + $0xb0] sm:$0x3] }
 0x1da   :  { %2769 = vst.msk [vmem:[#allocation2 + $0x98] sm:$0xff] %vm326_vm5, %v2746_v50  ;;  %3226 = vst.msk [vmem:[#allocation2 + $0x70] sm:$0xff] %vm326_vm5, %v3203_v58  ;;  %v3204_v3 = vadd.f32 %v7850_v13, %v3181_v46  ;;  %v3179_v30 = vld [vmem:[#allocation2 + $0x68] sm:$0xff]  ;;  %v3554_v53 = vld [vmem:[#allocation2 + $0x50] sm:$0xff] }
 0x1db   :  { %2767 = vst.msk [vmem:[#allocation2 + $0x88] sm:$0xff] %vm326_vm5, %v2744_v20  ;;  %3224 = vst.msk [vmem:[#allocation2 + $0x60] sm:$0xff] %vm326_vm5, %v3201_v59  ;;  %v3202_v63 = vadd.f32 %v3179_v30, %v7853_v18  ;;  %v3552_v10 = vld [vmem:[#allocation2 + $0x40] sm:$0xff]  ;;  %v3555_v20 = vld [vmem:[#allocation2 + $0x58] sm:$0xff] }
 0x1dc   :  { %3227 = vst.msk [vmem:[#allocation2 + $0x78] sm:$0xff] %vm326_vm5, %v3204_v3  ;;  %v3553_v30 = vld [vmem:[#allocation2 + $0x48] sm:$0xff] }
 0x1dd   :  { %3225 = vst.msk [vmem:[#allocation2 + $0x68] sm:$0xff] %vm326_vm5, %v3202_v63  ;;  %v6276_v35 = vpop.f32.mrb[116].mxu0 }
 0x1de   :  { %v2749_v62 = vadd.f32 %v6276_v35, %v2726_v1  ;;  %v2690_v22 = vpop.f32.mrb[117].mxu0 }
 0x1df   :  { %v2747_v56 = vadd.f32 %v2724_v4, %v2690_v22  ;;  %v6277_v33 = vpop.f32.mrb[118].mxu0  ;;  %v3184_v17 = vld [vmem:[#allocation2 + $0x90] sm:$0xff] }
 0x1e0   :  { %2772 = vst.msk [vmem:[#allocation2 + $0xb0] sm:$0x3] %vm349_vm7, %v2749_v62  ;;  %v3207_v13 = vadd.f32 %v7862_v38, %v3184_v17  ;;  %v2693_v2 = vpop.f32.mrb[119].mxu0  ;;  %v3182_v43 = vld [vmem:[#allocation2 + $0x80] sm:$0xff] }
 0x1e1   :  { %2770 = vst.msk [vmem:[#allocation2 + $0xa0] sm:$0xff] %vm326_vm5, %v2747_v56  ;;  %v2748_v18 = vadd.f32 %v2725_v61, %v2693_v2  ;;  %v3205_v60 = vadd.f32 %v3182_v43, %v7867_v40  ;;  %v3185_v12 = vld [vmem:[#allocation2 + $0x98] sm:$0xff]  ;;  %v3558_v17 = vld [vmem:[#allocation2 + $0x70] sm:$0xff] }
 0x1e2   :  { %3230 = vst.msk [vmem:[#allocation2 + $0x90] sm:$0xff] %vm326_vm5, %v3207_v13  ;;  %v3208_v42 = vadd.f32 %v7870_v51, %v3185_v12  ;;  %v3183_v7 = vld [vmem:[#allocation2 + $0x88] sm:$0xff]  ;;  %v3547_v51 = vld [vmem:[#allocation2 + $0x18] sm:$0xff] }
 0x1e3   :  { %2771 = vst.msk [vmem:[#allocation2 + $0xa8] sm:$0xff] %vm326_vm5, %v2748_v18  ;;  %3228 = vst.msk [vmem:[#allocation2 + $0x80] sm:$0xff] %vm326_vm5, %v3205_v60  ;;  %v3206_v38 = vadd.f32 %v3183_v7, %v7873_v0  ;;  %v3556_v18 = vld [vmem:[#allocation2 + $0x60] sm:$0xff] }
 0x1e4   :  { %3231 = vst.msk [vmem:[#allocation2 + $0x98] sm:$0xff] %vm326_vm5, %v3208_v42  ;;  %v3559_v42 = vld [vmem:[#allocation2 + $0x78] sm:$0xff] }
 0x1e5   :  { %3229 = vst.msk [vmem:[#allocation2 + $0x88] sm:$0xff] %vm326_vm5, %v3206_v38  ;;  %v6336_v44 = vpop.f32.mrb[120].mxu0 }
 0x1e6   :  { %v3569_v39 = vadd.f32 %v6336_v44, %v3546_v15  ;;  %v3450_v40 = vpop.f32.mrb[121].mxu0 }
 0x1e7   :  { %v3567_v5 = vadd.f32 %v3544_v6, %v3450_v40  ;;  %v3188_v8 = vld [vmem:[#allocation2 + $0xb0] sm:$0x3]  ;;  %v6337_v41 = vpop.f32.mrb[122].mxu0 }
 0x1e8   :  { %3592 = vst.msk [vmem:[#allocation2 + $0x10] sm:$0xff] %vm326_vm5, %v3569_v39  ;;  %v3211_v9 = vadd.f32 %v7882_v14, %v3188_v8  ;;  %v3570_v49 = vadd.f32 %v6337_v41, %v3547_v51  ;;  %v3186_v31 = vld [vmem:[#allocation2 + $0xa0] sm:$0xff]  ;;  %v3453_v0 = vpop.f32.mrb[123].mxu0  ;;  %v3557_v39 = vld [vmem:[#allocation2 + $0x68] sm:$0xff] }
 0x1e9   :  { %3590 = vst.msk [vmem:[#allocation2] sm:$0xff] %vm326_vm5, %v3567_v5  ;;  %v3209_v26 = vadd.f32 %v3186_v31, %v7887_v16  ;;  %v3568_v55 = vadd.f32 %v3545_v32, %v3453_v0  ;;  %v3562_v31 = vld [vmem:[#allocation2 + $0x90] sm:$0xff] }
 0x1ea   :  { %3234 = vst.msk [vmem:[#allocation2 + $0xb0] sm:$0x3] %vm349_vm7, %v3211_v9  ;;  %v3187_v23 = vld [vmem:[#allocation2 + $0xa8] sm:$0xff]  ;;  %v3560_v0 = vld [vmem:[#allocation2 + $0x80] sm:$0xff] }
 0x1eb   :  { %3593 = vst.msk [vmem:[#allocation2 + $0x18] sm:$0xff] %vm326_vm5, %v3570_v49  ;;  %3232 = vst.msk [vmem:[#allocation2 + $0xa0] sm:$0xff] %vm326_vm5, %v3209_v26  ;;  %v3210_v14 = vadd.f32 %v3187_v23, %v7891_v27 }
 0x1ec   :  { %3591 = vst.msk [vmem:[#allocation2 + $0x8] sm:$0xff] %vm326_vm5, %v3568_v55 }
 0x1ed   :  { %3233 = vst.msk [vmem:[#allocation2 + $0xa8] sm:$0xff] %vm326_vm5, %v3210_v14  ;;  %v6340_v45 = vpop.f32.mrb[124].mxu0  ;;  %v3563_v14 = vld [vmem:[#allocation2 + $0x98] sm:$0xff] }
 0x1ee   :  { %v3573_v47 = vadd.f32 %v6340_v45, %v3550_v11  ;;  %v3466_v52 = vpop.f32.mrb[125].mxu0  ;;  %v3561_v45 = vld [vmem:[#allocation2 + $0x88] sm:$0xff] }
 0x1ef   :  { %v3571_v16 = vadd.f32 %v3548_v24, %v3466_v52  ;;  %v6341_v28 = vpop.f32.mrb[126].mxu0  ;;  %v6781_v52 = vld [vmem:[%s8527_s4 + $0x20] sm:$0xff]  }
 0x1f0   :  { %v3613_v29 = vld [vmem:[#allocation2] sm:$0xff]  ;;  %3596 = vst.msk [vmem:[#allocation2 + $0x30] sm:$0xff] %vm326_vm5, %v3573_v47  ;;  %v3574_v19 = vadd.f32 %v6341_v28, %v3551_v34  ;;  %v3469_v25 = vpop.f32.mrb[127].mxu0  ;;  %6358 = vmatprep.subr.bf16.mxu1 %v6781_v52 }
 0x1f1   :  { %3614 = vst.msk [vmem:[#allocation3] sm:$0xff] %vm326_vm5, %v3613_v29  ;;  %3594 = vst.msk [vmem:[#allocation2 + $0x20] sm:$0xff] %vm326_vm5, %v3571_v16  ;;  %v3572_v27 = vadd.f32 %v3549_v21, %v3469_v25  ;;  %v6782_v25 = vld [vmem:[%s8527_s4 + $0x28] sm:$0xff]   ;;  %6359 = vmatpush3.bf16.msra.mxu1 %v6781_v52 }
 0x1f2   :  { %v3617_v48 = vld [vmem:[#allocation2 + $0x14] sm:$0xff]  ;;  %3597 = vst.msk [vmem:[#allocation2 + $0x38] sm:$0xff] %vm326_vm5, %v3574_v19  ;;  %6360 = vmatprep.subr.bf16.mxu1 %v6782_v25 }
 0x1f3   :  { %3618 = vst.msk [vmem:[#allocation3 + $0x10] sm:$0xff] %vm326_vm5, %v3617_v48  ;;  %v3615_v36 = vld [vmem:[#allocation2 + $0xa] sm:$0xff]  ;;  %3595 = vst.msk [vmem:[#allocation2 + $0x28] sm:$0xff] %vm326_vm5, %v3572_v27 }
 0x1f4   :  { %3616 = vst.msk [vmem:[#allocation3 + $0x8] sm:$0xff] %vm326_vm5, %v3615_v36 }
 0x1f5   :  { %v6344_v37 = vpop.f32.mrb[128].mxu0  ;;  %6361 = vmatpush3.bf16.msra.mxu1 %v6782_v25 }
 0x1f6   :  { %v3577_v50 = vadd.f32 %v6344_v37, %v3554_v53  ;;  %v3482_v58 = vpop.f32.mrb[129].mxu0  ;;  %v6825_v37 = vmov 0.0  }
 0x1f7   :  { %v3575_v54 = vadd.f32 %v3552_v10, %v3482_v58  ;;  %v6345_v57 = vpop.f32.mrb[130].mxu0  ;;  %3865 = vst.msk [vmem:[#allocation4] sm:$0xff] %vm326_vm5, %v6825_v37  ;;  %3866 = vst.msk [vmem:[#allocation4 + $0x8] sm:$0xff] %vm326_vm5, %v6825_v37  ;;  %v3566_v58 = vld [vmem:[#allocation2 + $0xb0] sm:$0x3] }
 0x1f8   :  { %v3619_v59 = vld [vmem:[#allocation2 + $0x1e] sm:$0xff]  ;;  %3600 = vst.msk [vmem:[#allocation2 + $0x50] sm:$0xff] %vm326_vm5, %v3577_v50  ;;  %v3578_v46 = vadd.f32 %v6345_v57, %v3555_v20  ;;  %v3485_v3 = vpop.f32.mrb[131].mxu0  ;;  %3867 = vst.msk [vmem:[#allocation4 + $0x10] sm:$0xff] %vm326_vm5, %v6825_v37  ;;  %v6783_v50 = vld [vmem:[%s8527_s4 + $0x30] sm:$0xff]  }
 0x1f9   :  { %3620 = vst.msk [vmem:[#allocation3 + $0x18] sm:$0xff] %vm326_vm5, %v3619_v59  ;;  %v3623_v63 = vld [vmem:[#allocation2 + $0x32] sm:$0xff]  ;;  %3598 = vst.msk [vmem:[#allocation2 + $0x40] sm:$0xff] %vm326_vm5, %v3575_v54  ;;  %v3576_v35 = vadd.f32 %v3553_v30, %v3485_v3  ;;  %v3564_v57 = vld [vmem:[#allocation2 + $0xa0] sm:$0xff]  ;;  %6362 = vmatprep.subr.bf16.mxu1 %v6783_v50 }
 0x1fa   :  { %v7993_v1 = vld [vmem:[#allocation3] sm:$0xff]  ;;  %3624 = vst.msk [vmem:[#allocation3 + $0x28] sm:$0xff] %vm326_vm5, %v3623_v63  ;;  %v3621_v22 = vld [vmem:[#allocation2 + $0x28] sm:$0xff]  ;;  %3601 = vst.msk [vmem:[#allocation2 + $0x58] sm:$0xff] %vm326_vm5, %v3578_v46  ;;  %6363 = vmatpush3.bf16.msra.mxu1 %v6783_v50 }
 0x1fb   :  { %v7995_v62 = vld [vmem:[#allocation3 + $0x8] sm:$0xff]  ;;  %3622 = vst.msk [vmem:[#allocation3 + $0x20] sm:$0xff] %vm326_vm5, %v3621_v22  ;;  %3599 = vst.msk [vmem:[#allocation2 + $0x48] sm:$0xff] %vm326_vm5, %v3576_v35  ;;  %v3661_v56 = vsel %vm326_vm5, %v7993_v1, 0.0  ;;  %v8005_v13 = vld [vmem:[#allocation3 + $0x10] sm:$0xff] }
 0x1fc   :  { %v3662_v4 = vsel %vm326_vm5, %v7995_v62, 0.0  ;;  %v3664_v40 = vsel %vm326_vm5, %v8005_v13, 0.0  ;;  %3868 = vst.msk [vmem:[#allocation4 + $0x18] sm:$0xff] %vm326_vm5, %v6825_v37  ;;  %3869 = vst.msk [vmem:[#allocation4 + $0x20] sm:$0xff] %vm326_vm5, %v6825_v37  ;;  %v6784_v35 = vld [vmem:[%s8527_s4 + $0x38] sm:$0xff]  }
 0x1fd   :  { %v6348_v33 = vpop.f32.mrb[132].mxu0  ;;  %v3663_v2 = vadd.f32 %v3662_v4, %v3661_v56  ;;  %3870 = vst.msk [vmem:[#allocation4 + $0x28] sm:$0xff] %vm326_vm5, %v6825_v37  ;;  %3871 = vst.msk [vmem:[#allocation4 + $0x30] sm:$0xff] %vm326_vm5, %v6825_v37  ;;  %v3565_v4 = vld [vmem:[#allocation2 + $0xa8] sm:$0xff]  ;;  %6364 = vmatprep.subr.bf16.mxu1 %v6784_v35 }
 0x1fe   :  { %v3581_v61 = vadd.f32 %v6348_v33, %v3558_v17  ;;  %v3498_v43 = vpop.f32.mrb[133].mxu0  ;;  %3872 = vst.msk [vmem:[#allocation4 + $0x38] sm:$0xff] %vm326_vm5, %v6825_v37  ;;  %3873 = vst.msk [vmem:[#allocation4 + $0x40] sm:$0xff] %vm326_vm5, %v6825_v37  ;;  %6365 = vmatpush3.bf16.msra.mxu1 %v6784_v35 }
 0x1ff   :  { %v3579_v60 = vadd.f32 %v3556_v18, %v3498_v43  ;;  %v6349_v12 = vpop.f32.mrb[134].mxu0  ;;  %v3665_v51 = vadd.f32 %v3664_v40, %v3663_v2 }
 0x200   :  { %v8007_v7 = vld [vmem:[#allocation3 + $0x18] sm:$0xff]  ;;  %v3625_v38 = vld [vmem:[#allocation2 + $0x3c] sm:$0xff]  ;;  %3604 = vst.msk [vmem:[#allocation2 + $0x70] sm:$0xff] %vm326_vm5, %v3581_v61  ;;  %v3582_v44 = vadd.f32 %v6349_v12, %v3559_v42  ;;  %v3501_v15 = vpop.f32.mrb[135].mxu0 }
 0x201   :  { %v3666_v6 = vsel %vm326_vm5, %v8007_v7, 0.0  ;;  %3626 = vst.msk [vmem:[#allocation3 + $0x30] sm:$0xff] %vm326_vm5, %v3625_v38  ;;  %3602 = vst.msk [vmem:[#allocation2 + $0x60] sm:$0xff] %vm326_vm5, %v3579_v60  ;;  %v3580_v5 = vadd.f32 %v3557_v39, %v3501_v15  ;;  %v8023_v26 = vld [vmem:[#allocation3 + $0x28] sm:$0xff] }
 0x202   :  { %v8016_v8 = vld [vmem:[#allocation3 + $0x20] sm:$0xff]  ;;  %v3627_v41 = vld [vmem:[#allocation2 + $0x46] sm:$0xff]  ;;  %3605 = vst.msk [vmem:[#allocation2 + $0x78] sm:$0xff] %vm326_vm5, %v3582_v44  ;;  %v3667_v9 = vadd.f32 %v3666_v6, %v3665_v51  ;;  %v3670_v36 = vsel %vm326_vm5, %v8023_v26, 0.0 }
 0x203   :  { %3628 = vst.msk [vmem:[#allocation3 + $0x38] sm:$0xff] %vm326_vm5, %v3627_v41  ;;  %3603 = vst.msk [vmem:[#allocation2 + $0x68] sm:$0xff] %vm326_vm5, %v3580_v5  ;;  %v3668_v32 = vsel %vm326_vm5, %v8016_v8, 0.0 }
 0x204   :  { %v3669_v34 = vadd.f32 %v3668_v32, %v3667_v9 }
 0x205   :  { %v6352_v49 = vpop.f32.mrb[136].mxu0 }
 0x206   :  { %v3585_v55 = vadd.f32 %v6352_v49, %v3562_v31  ;;  %v3514_v23 = vpop.f32.mrb[137].mxu0  ;;  %v3671_v10 = vadd.f32 %v3670_v36, %v3669_v34 }
 0x207   :  { %v3583_v11 = vadd.f32 %v3560_v0, %v3514_v23  ;;  %v6353_v47 = vpop.f32.mrb[138].mxu0 }
 0x208   :  { %v8028_v24 = vld [vmem:[#allocation3 + $0x30] sm:$0xff]  ;;  %3608 = vst.msk [vmem:[#allocation2 + $0x90] sm:$0xff] %vm326_vm5, %v3585_v55  ;;  %v3586_v16 = vadd.f32 %v6353_v47, %v3563_v14  ;;  %v3517_v28 = vpop.f32.mrb[139].mxu0  ;;  %v8092_v55 = vld [vmem:[%s8527_s4] sm:$0xff]  }
 0x209   :  { %v3633_v29 = vld [vmem:[#allocation2 + $0x78] sm:$0xff]  ;;  %3606 = vst.msk [vmem:[#allocation2 + $0x80] sm:$0xff] %vm326_vm5, %v3583_v11  ;;  %v3584_v19 = vadd.f32 %v3561_v45, %v3517_v28  ;;  %v3672_v53 = vsel %vm326_vm5, %v8028_v24, 0.0  ;;  %6374 = vmatprep.subr.bf16.mxu1 %v8092_v55 }
 0x20a   :  { %3634 = vst.msk [vmem:[#allocation3 + $0x50] sm:$0xff] %vm326_vm5, %v3633_v29  ;;  %v3629_v21 = vld [vmem:[#allocation2 + $0x64] sm:$0xff]  ;;  %v3631_v48 = vld [vmem:[#allocation2 + $0x6e] sm:$0xff]  ;;  %3609 = vst.msk [vmem:[#allocation2 + $0x98] sm:$0xff] %vm326_vm5, %v3586_v16  ;;  %v3673_v46 = vadd.f32 %v3672_v53, %v3671_v10 }
 0x20b   :  { %v8037_v27 = vld [vmem:[#allocation3 + $0x38] sm:$0xff]  ;;  %3630 = vst.msk [vmem:[#allocation3 + $0x40] sm:$0xff] %vm326_vm5, %v3629_v21  ;;  %3632 = vst.msk [vmem:[#allocation3 + $0x48] sm:$0xff] %vm326_vm5, %v3631_v48 }
 0x20c   :  { %3607 = vst.msk [vmem:[#allocation2 + $0x88] sm:$0xff] %vm326_vm5, %v3584_v19  ;;  %v3674_v3 = vsel %vm326_vm5, %v8037_v27, 0.0 }
 0x20d   :  { %v6356_v54 = vpop.f32.mrb[140].mxu0  ;;  %v3675_v43 = vadd.f32 %v3674_v3, %v3673_v46 }
 0x20e   :  { %v3589_v20 = vadd.f32 %v6356_v54, %v3566_v58  ;;  %v3530_v59 = vpop.f32.mrb[141].mxu0 }
 0x20f   :  { %v3587_v30 = vadd.f32 %v3564_v57, %v3530_v59  ;;  %v6357_v63 = vpop.f32.mrb[142].mxu0 }
 0x210   :  { %3612 = vst.msk [vmem:[#allocation2 + $0xb0] sm:$0x3] %vm349_vm7, %v3589_v20  ;;  %v3533_v22 = vpop.f32.mrb[143].mxu0 }
 0x211   :  { %v3639_v56 = vld [vmem:[#allocation2 + $0x96] sm:$0xff]  ;;  %3610 = vst.msk [vmem:[#allocation2 + $0xa0] sm:$0xff] %vm326_vm5, %v3587_v30  ;;  %v3588_v33 = vadd.f32 %v3565_v4, %v3533_v22  ;;  %v8075_v12 = vld [vmem:[#allocation3 + $0x50] sm:$0xff] }
 0x212   :  { %3640 = vst.msk [vmem:[#allocation3 + $0x68] sm:$0xff] %vm326_vm5, %v3639_v56  ;;  %v8066_v61 = vld [vmem:[#allocation3 + $0x40] sm:$0xff]  ;;  %v8071_v18 = vld [vmem:[#allocation3 + $0x48] sm:$0xff]  ;;  %v3680_v39 = vsel %vm326_vm5, %v8075_v12, 0.0 }
 0x213   :  { %v3635_v17 = vld [vmem:[#allocation2 + $0x82] sm:$0xff]  ;;  %v3637_v2 = vld [vmem:[#allocation2 + $0x8c] sm:$0xff]  ;;  %3611 = vst.msk [vmem:[#allocation2 + $0xa8] sm:$0xff] %vm326_vm5, %v3588_v33  ;;  %v3676_v60 = vsel %vm326_vm5, %v8066_v61, 0.0  ;;  %v3678_v38 = vsel %vm326_vm5, %v8071_v18, 0.0 }
 0x214   :  { %3636 = vst.msk [vmem:[#allocation3 + $0x58] sm:$0xff] %vm326_vm5, %v3635_v17  ;;  %3638 = vst.msk [vmem:[#allocation3 + $0x60] sm:$0xff] %vm326_vm5, %v3637_v2  ;;  %v3677_v42 = vadd.f32 %v3676_v60, %v3675_v43 }
 0x216   :  { %v3679_v44 = vadd.f32 %v3678_v38, %v3677_v42 }
 0x218   :  { %v3641_v15 = vld [vmem:[#allocation2 + $0xa0] sm:$0xff]  ;;  %v3681_v51 = vadd.f32 %v3680_v39, %v3679_v44 }
 0x219   :  { %3642 = vst.msk [vmem:[#allocation3 + $0x70] sm:$0xff] %vm326_vm5, %v3641_v15  ;;  %v8082_v41 = vld [vmem:[#allocation3 + $0x68] sm:$0xff] }
 0x21a   :  { %v3643_v40 = vld [vmem:[#allocation2 + $0xaa] sm:$0xff]  ;;  %v3686_v32 = vsel %vm326_vm5, %v8082_v41, 0.0 }
 0x21b   :  { %v3656_v6 = vld [vmem:[#allocation3 + $0x58] sm:$0xff]  ;;  %v3657_v5 = vld [vmem:[#allocation3 + $0x60] sm:$0xff]  ;;  %3644 = vst.msk [vmem:[#allocation3 + $0x78] sm:$0xff] %vm326_vm5, %v3643_v40 }
 0x21c   :  { %v3682_v9 = vsel %vm326_vm5, %v3656_v6, 0.0  ;;  %v3684_v49 = vsel %vm326_vm5, %v3657_v5, 0.0 }
 0x21d   :  { %v3683_v31 = vadd.f32 %v3682_v9, %v3681_v51 }
 0x21f   :  { %v3685_v0 = vadd.f32 %v3684_v49, %v3683_v31 }
 0x220   :  { %v3659_v23 = vld [vmem:[#allocation3 + $0x70] sm:$0xff] }
 0x221   :  { %v3687_v14 = vadd.f32 %v3686_v32, %v3685_v0  ;;  %v3688_v45 = vsel %vm326_vm5, %v3659_v23, 0.0 }
 0x222   :  { %v3660_v11 = vld [vmem:[#allocation3 + $0x78] sm:$0xff] }
 0x223   :  { %v3689_v47 = vadd.f32 %v3688_v45, %v3687_v14  ;;  %v3690_v52 = vsel %vm326_vm5, %v3660_v11, 0.0 }
 0x225   :  { %v3691_v16 = vadd.f32 %v3690_v52, %v3689_v47 }
 0x227   :  { %v3692_v28 = vrot.slane %v3691_v16, 4 }
 0x229   :  { %v3693_v34 = vadd.f32 %v3692_v28, %v3691_v16 }
 0x22b   :  { %v3694_v29 = vrot.slane %v3693_v34, 2 }
 0x22d   :  { %v3695_v19 = vadd.f32 %v3694_v29, %v3693_v34 }
 0x22f   :  { %v3696_v25 = vrot.slane %v3695_v19, 1 }
 0x231   :  { %v3697_v21 = vadd.f32 %v3696_v25, %v3695_v19 }
 0x233   :  { %v3698_v48 = vmul.f32 0.0078125, %v3697_v21 }
 0x235   :  { %v8098_v36 = vsub.f32 %v7993_v1, %v3698_v48  ;;  %v8101_v37 = vsub.f32 %v7995_v62, %v3698_v48  ;;  %v8104_v53 = vsub.f32 %v8005_v13, %v3698_v48  ;;  %v8107_v50 = vsub.f32 %v8007_v7, %v3698_v48 }
 0x236   :  { %v8114_v54 = vsub.f32 %v8016_v8, %v3698_v48  ;;  %v8119_v62 = vsub.f32 %v8023_v26, %v3698_v48  ;;  %v8126_v59 = vsub.f32 %v8028_v24, %v3698_v48  ;;  %v8132_v26 = vsub.f32 %v8037_v27, %v3698_v48 }
 0x237   :  { %v3715_v58 = vmul.f32 %v8098_v36, %v8098_v36  ;;  %v3716_v10 = vmul.f32 %v8101_v37, %v8101_v37  ;;  %v3717_v1 = vmul.f32 %v8104_v53, %v8104_v53  ;;  %v3718_v13 = vmul.f32 %v8107_v50, %v8107_v50 }
 0x238   :  { %v3719_v8 = vmul.f32 %v8114_v54, %v8114_v54  ;;  %v3720_v30 = vmul.f32 %v8119_v62, %v8119_v62  ;;  %v8138_v22 = vsub.f32 %v8066_v61, %v3698_v48  ;;  %v3721_v24 = vmul.f32 %v8126_v59, %v8126_v59 }
 0x239   :  { %v3731_v7 = vsel %vm326_vm5, %v3715_v58, 0.0  ;;  %v3732_v57 = vsel %vm326_vm5, %v3716_v10, 0.0  ;;  %v3734_v46 = vsel %vm326_vm5, %v3717_v1, 0.0  ;;  %v3736_v63 = vsel %vm326_vm5, %v3718_v13, 0.0 }
 0x23a   :  { %v3733_v20 = vadd.f32 %v3732_v57, %v3731_v7  ;;  %v3738_v4 = vsel %vm326_vm5, %v3719_v8, 0.0  ;;  %v3708_v33 = vsub.f32 %v8071_v18, %v3698_v48  ;;  %v3722_v27 = vmul.f32 %v8132_v26, %v8132_v26 }
 0x23b   :  { %v3740_v17 = vsel %vm326_vm5, %v3720_v30, 0.0  ;;  %v3709_v43 = vsub.f32 %v8075_v12, %v3698_v48  ;;  %v3723_v61 = vmul.f32 %v8138_v22, %v8138_v22  ;;  %v3742_v60 = vsel %vm326_vm5, %v3721_v24, 0.0 }
 0x23c   :  { %v3735_v3 = vadd.f32 %v3734_v46, %v3733_v20  ;;  %v3710_v38 = vsub.f32 %v3656_v6, %v3698_v48  ;;  %v3724_v44 = vmul.f32 %v3708_v33, %v3708_v33  ;;  %v3744_v15 = vsel %vm326_vm5, %v3722_v27, 0.0 }
 0x23d   :  { %v3711_v18 = vsub.f32 %v3657_v5, %v3698_v48  ;;  %v3725_v40 = vmul.f32 %v3709_v43, %v3709_v43  ;;  %v3746_v51 = vsel %vm326_vm5, %v3723_v61, 0.0  ;;  %v3712_v49 = vsub.f32 %v8082_v41, %v3698_v48 }
 0x23e   :  { %v3737_v35 = vadd.f32 %v3736_v63, %v3735_v3  ;;  %v3726_v31 = vmul.f32 %v3710_v38, %v3710_v38  ;;  %v3748_v12 = vsel %vm326_vm5, %v3724_v44, 0.0  ;;  %v3713_v32 = vsub.f32 %v3659_v23, %v3698_v48 }
 0x23f   :  { %v3727_v14 = vmul.f32 %v3711_v18, %v3711_v18  ;;  %v3750_v45 = vsel %vm326_vm5, %v3725_v40, 0.0  ;;  %v3714_v47 = vsub.f32 %v3660_v11, %v3698_v48  ;;  %v3728_v52 = vmul.f32 %v3712_v49, %v3712_v49 }
 0x240   :  { %v3739_v56 = vadd.f32 %v3738_v4, %v3737_v35  ;;  %v3752_v16 = vsel %vm326_vm5, %v3726_v31, 0.0  ;;  %v3729_v28 = vmul.f32 %v3713_v32, %v3713_v32 }
 0x241   :  { %v3754_v34 = vsel %vm326_vm5, %v3727_v14, 0.0  ;;  %v3730_v19 = vmul.f32 %v3714_v47, %v3714_v47  ;;  %v3756_v41 = vsel %vm326_vm5, %v3728_v52, 0.0 }
 0x242   :  { %v3741_v2 = vadd.f32 %v3740_v17, %v3739_v56  ;;  %v3758_v21 = vsel %vm326_vm5, %v3729_v28, 0.0  ;;  %v5627_v17 = vld [vmem:[%s8528_s2] ss:$0 sm:$0xff] }
 0x243   :  { %v3760_v58 = vsel %vm326_vm5, %v3730_v19, 0.0 }
 0x244   :  { %v3743_v42 = vadd.f32 %v3742_v60, %v3741_v2 }
 0x246   :  { %v3745_v39 = vadd.f32 %v3744_v15, %v3743_v42 }
 0x248   :  { %v3747_v9 = vadd.f32 %v3746_v51, %v3745_v39  ;;  %v5628_v51 = vld [vmem:[%s8529_s3] ss:$0 sm:$0xff] }
 0x24a   :  { %v3749_v0 = vadd.f32 %v3748_v12, %v3747_v9 }
 0x24c   :  { %v3751_v6 = vadd.f32 %v3750_v45, %v3749_v0 }
 0x24e   :  { %v3753_v5 = vadd.f32 %v3752_v16, %v3751_v6 }
 0x250   :  { %v3755_v29 = vadd.f32 %v3754_v34, %v3753_v5 }
 0x252   :  { %v3757_v25 = vadd.f32 %v3756_v41, %v3755_v29 }
 0x254   :  { %v3759_v23 = vadd.f32 %v3758_v21, %v3757_v25 }
 0x256   :  { %v3761_v10 = vadd.f32 %v3760_v58, %v3759_v23 }
 0x258   :  { %v3762_v1 = vrot.slane %v3761_v10, 4 }
 0x25a   :  { %v3763_v11 = vadd.f32 %v3762_v1, %v3761_v10 }
 0x25c   :  { %v3764_v48 = vrot.slane %v3763_v11, 2 }
 0x25e   :  { %v3765_v13 = vadd.f32 %v3764_v48, %v3763_v11 }
 0x260   :  { %v3766_v7 = vrot.slane %v3765_v13, 1 }
 0x262   :  { %v3767_v57 = vadd.f32 %v3766_v7, %v3765_v13 }
 0x264   :  { %v3768_v20 = vmul.f32 0.0078125, %v3767_v57 }
 0x266   :  { %v3769_v8 = vadd.f32 1e-05, %v3768_v20 }
 0x268   :  { %6817 = vrsqrt.f32 %v3769_v8 }
 0x272   :  { %v6818_v46 = vpop.eup %6817 }
 0x273   :  { %v3771_v3 = vmul.f32 %v6818_v46, %v8098_v36  ;;  %v3772_v30 = vmul.f32 %v6818_v46, %v8101_v37  ;;  %v3773_v63 = vmul.f32 %v6818_v46, %v8104_v53  ;;  %v3774_v35 = vmul.f32 %v6818_v46, %v8107_v50 }
 0x274   :  { %v3775_v24 = vmul.f32 %v6818_v46, %v8114_v54  ;;  %v3776_v4 = vmul.f32 %v6818_v46, %v8119_v62  ;;  %v3777_v56 = vmul.f32 %v6818_v46, %v8126_v59  ;;  %v3778_v27 = vmul.f32 %v6818_v46, %v8132_v26 }
 0x275   :  { %v3779_v36 = vmul.f32 %v6818_v46, %v8138_v22  ;;  %v3780_v2 = vmul.f32 %v6818_v46, %v3708_v33  ;;  %v3781_v37 = vmul.f32 %v6818_v46, %v3709_v43  ;;  %v3782_v61 = vmul.f32 %v6818_v46, %v3710_v38 }
 0x276   :  { %v3783_v53 = vmul.f32 %v6818_v46, %v3711_v18  ;;  %v3784_v60 = vmul.f32 %v6818_v46, %v3712_v49  ;;  %v3785_v50 = vmul.f32 %v6818_v46, %v3713_v32  ;;  %v3786_v42 = vmul.f32 %v6818_v46, %v3714_v47 }
 0x277   :  { %v3794_v54 = vmul.f32 %v5627_v17, %v3771_v3  ;;  %v3795_v44 = vmul.f32 %v5627_v17, %v3772_v30  ;;  %v3796_v62 = vmul.f32 %v5627_v17, %v3773_v63  ;;  %v3797_v15 = vmul.f32 %v5627_v17, %v3774_v35 }
 0x278   :  { %v3798_v59 = vmul.f32 %v5627_v17, %v3775_v24  ;;  %v3799_v39 = vmul.f32 %v5627_v17, %v3776_v4  ;;  %v3800_v26 = vmul.f32 %v5627_v17, %v3777_v56  ;;  %v3801_v40 = vmul.f32 %v5627_v17, %v3778_v27 }
 0x279   :  { %v3802_v22 = vmul.f32 %v5627_v17, %v3779_v36  ;;  %v3803_v33 = vmul.f32 %v5627_v17, %v3780_v2  ;;  %v3804_v43 = vmul.f32 %v5627_v17, %v3781_v37  ;;  %v3805_v38 = vmul.f32 %v5627_v17, %v3782_v61 }
 0x27a   :  { %v3806_v18 = vmul.f32 %v5627_v17, %v3783_v53  ;;  %v3807_v9 = vmul.f32 %v5627_v17, %v3784_v60  ;;  %v3808_v49 = vmul.f32 %v5627_v17, %v3785_v50  ;;  %v3809_v31 = vmul.f32 %v5627_v17, %v3786_v42 }
 0x27b   :  { %v3819_v12 = vadd.f32 %v5628_v51, %v3796_v62  ;;  %v3820_v0 = vadd.f32 %v5628_v51, %v3797_v15  ;;  %v3821_v32 = vadd.f32 %v5628_v51, %v3798_v59  ;;  %v3822_v14 = vadd.f32 %v5628_v51, %v3799_v39 }
 0x27c   :  { %v3823_v45 = vadd.f32 %v5628_v51, %v3800_v26  ;;  %v3824_v6 = vadd.f32 %v5628_v51, %v3801_v40  ;;  %v3825_v47 = vadd.f32 %v5628_v51, %v3802_v22  ;;  %v3826_v52 = vadd.f32 %v5628_v51, %v3803_v33 }
 0x27d   :  { %v3827_v16 = vadd.f32 %v5628_v51, %v3804_v43  ;;  %v3828_v5 = vadd.f32 %v5628_v51, %v3805_v38  ;;  %v3829_v28 = vadd.f32 %v5628_v51, %v3806_v18  ;;  %v3830_v34 = vadd.f32 %v5628_v51, %v3807_v9 }
 0x27e   :  { %v3831_v29 = vadd.f32 %v5628_v51, %v3808_v49  ;;  %v3832_v19 = vadd.f32 %v5628_v51, %v3809_v31  ;;  %v3835_v41 = vmax.f32 %v3819_v12, 0.0  ;;  %v3836_v25 = vmax.f32 %v3820_v0, 0.0 }
 0x27f   :  { %v3837_v21 = vmax.f32 %v3821_v32, 0.0  ;;  %v3838_v23 = vmax.f32 %v3822_v14, 0.0  ;;  %v3839_v58 = vmax.f32 %v3823_v45, 0.0  ;;  %v3840_v10 = vmax.f32 %v3824_v6, 0.0 }
 0x280   :  { %v3841_v1 = vmax.f32 %v3825_v47, 0.0  ;;  %v3842_v11 = vmax.f32 %v3826_v52, 0.0  ;;  %v3843_v48 = vmax.f32 %v3827_v16, 0.0  ;;  %v3844_v13 = vmax.f32 %v3828_v5, 0.0  ;;  %3851 = vst.msk [vmem:[#allocation3 + $0x10] sm:$0xff] %vm326_vm5, %v3835_v41  ;;  %3852 = vst.msk [vmem:[#allocation3 + $0x18] sm:$0xff] %vm326_vm5, %v3836_v25 }
 0x281   :  { %v3845_v7 = vmax.f32 %v3829_v28, 0.0  ;;  %v3846_v57 = vmax.f32 %v3830_v34, 0.0  ;;  %v3847_v20 = vmax.f32 %v3831_v29, 0.0  ;;  %v3848_v8 = vmax.f32 %v3832_v19, 0.0  ;;  %3856 = vst.msk [vmem:[#allocation3 + $0x38] sm:$0xff] %vm326_vm5, %v3840_v10  ;;  %3853 = vst.msk [vmem:[#allocation3 + $0x20] sm:$0xff] %vm326_vm5, %v3837_v21 }
 0x282   :  { %3854 = vst.msk [vmem:[#allocation3 + $0x28] sm:$0xff] %vm326_vm5, %v3838_v23  ;;  %3855 = vst.msk [vmem:[#allocation3 + $0x30] sm:$0xff] %vm326_vm5, %v3839_v58  ;;  %v3817_v46 = vadd.f32 %v5628_v51, %v3794_v54  ;;  %v3818_v3 = vadd.f32 %v5628_v51, %v3795_v44 }
 0x283   :  { %3857 = vst.msk [vmem:[#allocation3 + $0x40] sm:$0xff] %vm326_vm5, %v3841_v1  ;;  %3858 = vst.msk [vmem:[#allocation3 + $0x48] sm:$0xff] %vm326_vm5, %v3842_v11 }
 0x284   :  { %3859 = vst.msk [vmem:[#allocation3 + $0x50] sm:$0xff] %vm326_vm5, %v3843_v48  ;;  %3860 = vst.msk [vmem:[#allocation3 + $0x58] sm:$0xff] %vm326_vm5, %v3844_v13  ;;  %v3833_v30 = vmax.f32 %v3817_v46, 0.0  ;;  %v3834_v63 = vmax.f32 %v3818_v3, 0.0 }
 0x285   :  { %3861 = vst.msk [vmem:[#allocation3 + $0x60] sm:$0xff] %vm326_vm5, %v3845_v7  ;;  %3862 = vst.msk [vmem:[#allocation3 + $0x68] sm:$0xff] %vm326_vm5, %v3846_v57 }
 0x286   :  { %3863 = vst.msk [vmem:[#allocation3 + $0x70] sm:$0xff] %vm326_vm5, %v3847_v20  ;;  %3864 = vst.msk [vmem:[#allocation3 + $0x78] sm:$0xff] %vm326_vm5, %v3848_v8 }
 0x287   :  { %3849 = vst.msk [vmem:[#allocation3] sm:$0xff] %vm326_vm5, %v3833_v30  ;;  %3850 = vst.msk [vmem:[#allocation3 + $0x8] sm:$0xff] %vm326_vm5, %v3834_v63  ;;  %v3887_v35 = vld [vmem:[#allocation3 + $0x10] ss:$2 sm:$0xf]  ;;  %v3994_v63 = vld [vmem:[#allocation4 + $0x21] sm:$0xff] }
 0x288   :  { %v3889_v24 = vld [vmem:[#allocation3 + $0x11] ss:$2 sm:$0xf]  ;;  %v3891_v4 = vld [vmem:[#allocation3 + $0x18] ss:$2 sm:$0xf] }
 0x289   :  { %v3893_v56 = vld [vmem:[#allocation3 + $0x19] ss:$2 sm:$0xf]  ;;  %v3894_v27 = vmax.f32 %v3887_v35, %v3889_v24  ;;  %v3899_v36 = vld [vmem:[#allocation3 + $0x20] ss:$2 sm:$0xf] }
 0x28a   :  { %v3895_v17 = vmax.f32 %v3891_v4, %v3893_v56  ;;  %v3901_v2 = vld [vmem:[#allocation3 + $0x21] ss:$2 sm:$0xf]  ;;  %v3903_v37 = vld [vmem:[#allocation3 + $0x28] ss:$2 sm:$0xf] }
 0x28b   :  { %v3905_v61 = vld [vmem:[#allocation3 + $0x29] ss:$2 sm:$0xf]  ;;  %v3906_v53 = vmax.f32 %v3899_v36, %v3901_v2  ;;  %v3911_v42 = vld [vmem:[#allocation3 + $0x30] ss:$2 sm:$0xf] }
 0x28c   :  { %v3896_v60 = vmax.f32 %v3894_v27, %v3895_v17  ;;  %v3907_v50 = vmax.f32 %v3903_v37, %v3905_v61  ;;  %v3913_v54 = vld [vmem:[#allocation3 + $0x31] ss:$2 sm:$0xf]  ;;  %v3915_v44 = vld [vmem:[#allocation3 + $0x38] ss:$2 sm:$0xf] }
 0x28d   :  { %v3917_v62 = vld [vmem:[#allocation3 + $0x39] ss:$2 sm:$0xf]  ;;  %v3918_v15 = vmax.f32 %v3911_v42, %v3913_v54  ;;  %v3923_v18 = vld [vmem:[#allocation3 + $0x40] ss:$2 sm:$0xf] }
 0x28e   :  { %v3874_v59 = vld [vmem:[#allocation3] ss:$2 sm:$0xf]  ;;  %v3876_v39 = vld [vmem:[#allocation3 + $0x1] ss:$2 sm:$0xf]  ;;  %v3908_v26 = vmax.f32 %v3906_v53, %v3907_v50  ;;  %v3919_v40 = vmax.f32 %v3915_v44, %v3917_v62 }
 0x28f   :  { %3897 = vst.msk [vmem:[#allocation4 + $0xd] sm:$0xf] %vm3884_vm8, %v3896_v60  ;;  %v3878_v51 = vld [vmem:[#allocation3 + $0x8] ss:$2 sm:$0xf]  ;;  %v3881_v33 = vmax.f32 %v3874_v59, %v3876_v39  ;;  %v8205_v56 = vld [vmem:[#allocation4 + $0x1e] sm:$0xff] }
 0x290   :  { %v3880_v22 = vld [vmem:[#allocation3 + $0x9] ss:$2 sm:$0xf]  ;;  %3909 = vst.msk [vmem:[#allocation4 + $0x13] sm:$0xf] %vm3884_vm8, %v3908_v26  ;;  %v3920_v38 = vmax.f32 %v3918_v15, %v3919_v40  ;;  %v6786_v17 = vld [vmem:[%s8527_s4 + $0x8] sm:$0xff]  }
 0x291   :  { %v3882_v43 = vmax.f32 %v3878_v51, %v3880_v22  ;;  %v3925_v9 = vld [vmem:[#allocation3 + $0x41] ss:$2 sm:$0xf]  ;;  %v3927_v49 = vld [vmem:[#allocation3 + $0x48] ss:$2 sm:$0xf] }
 0x292   :  { %v3929_v31 = vld [vmem:[#allocation3 + $0x49] ss:$2 sm:$0xf]  ;;  %v3930_v12 = vmax.f32 %v3923_v18, %v3925_v9  ;;  %3921 = vst.msk [vmem:[#allocation4 + $0x19] sm:$0xf] %vm3884_vm8, %v3920_v38  ;;  %v6787_v61 = vld [vmem:[%s8527_s4 + $0x10] sm:$0xff]  }
 0x293   :  { %v3883_v0 = vmax.f32 %v3881_v33, %v3882_v43  ;;  %v3931_v32 = vmax.f32 %v3927_v49, %v3929_v31  ;;  %v3935_v14 = vld [vmem:[#allocation3 + $0x50] ss:$2 sm:$0xf]  ;;  %v3937_v45 = vld [vmem:[#allocation3 + $0x51] ss:$2 sm:$0xf] }
 0x294   :  { %v3939_v6 = vld [vmem:[#allocation3 + $0x58] ss:$2 sm:$0xf]  ;;  %v3941_v47 = vld [vmem:[#allocation3 + $0x59] ss:$2 sm:$0xf]  ;;  %v3942_v52 = vmax.f32 %v3935_v14, %v3937_v45 }
 0x295   :  { %3885 = vst.msk [vmem:[#allocation4 + $0x7] sm:$0xf] %vm3884_vm8, %v3883_v0  ;;  %v3932_v16 = vmax.f32 %v3930_v12, %v3931_v32  ;;  %v3943_v5 = vmax.f32 %v3939_v6, %v3941_v47  ;;  %v3947_v28 = vld [vmem:[#allocation3 + $0x60] ss:$2 sm:$0xf]  ;;  %v6789_v39 = vld [vmem:[%s8527_s4 + $0x40] sm:$0xff]  }
 0x296   :  { %v3949_v34 = vld [vmem:[#allocation3 + $0x61] ss:$2 sm:$0xf]  ;;  %v3951_v29 = vld [vmem:[#allocation3 + $0x68] ss:$2 sm:$0xf] }
 0x297   :  { %v3953_v19 = vld [vmem:[#allocation3 + $0x69] ss:$2 sm:$0xf]  ;;  %v3954_v41 = vmax.f32 %v3947_v28, %v3949_v34  ;;  %3933 = vst.msk [vmem:[#allocation4 + $0x2b] sm:$0xf] %vm3884_vm8, %v3932_v16  ;;  %v3944_v25 = vmax.f32 %v3942_v52, %v3943_v5  ;;  %v3992_v10 = vld [vmem:[#allocation4 + $0x11] sm:$0xff] }
 0x298   :  { %v3955_v21 = vmax.f32 %v3951_v29, %v3953_v19  ;;  %v3959_v23 = vld [vmem:[#allocation3 + $0x70] ss:$2 sm:$0xf]  ;;  %v3961_v58 = vld [vmem:[#allocation3 + $0x71] ss:$2 sm:$0xf] }
 0x299   :  { %v8197_v1 = vld [vmem:[#allocation4 + $0xe] sm:$0xff]  ;;  %v3966_v11 = vmax.f32 %v3959_v23, %v3961_v58  ;;  %3945 = vst.msk [vmem:[#allocation4 + $0x31] sm:$0xf] %vm3884_vm8, %v3944_v25  ;;  %v3963_v13 = vld [vmem:[#allocation3 + $0x78] ss:$2 sm:$0xf] }
 0x29a   :  { %v3956_v48 = vmax.f32 %v3954_v41, %v3955_v21  ;;  %v3965_v7 = vld [vmem:[#allocation3 + $0x79] ss:$2 sm:$0xf]  ;;  %v8239_v26 = vld [vmem:[#allocation4 + $0x10] sm:$0xff]  ;;  %v8243_v51 = vld [vmem:[#allocation4 + $0x20] sm:$0xff] }
 0x29b   :  { %v3993_v57 = vld [vmem:[#allocation4 + $0x19] sm:$0xff]  ;;  %v3967_v20 = vmax.f32 %v3963_v13, %v3965_v7  ;;  %v6790_v43 = vld [vmem:[%s8527_s4 + $0x48] sm:$0xff]   ;;  %v6793_v45 = vld [vmem:[%s8527_s4 + $0x60] sm:$0xff]  }
 0x29c   :  { %3957 = vst.msk [vmem:[#allocation4 + $0x37] sm:$0xf] %vm3884_vm8, %v3956_v48  ;;  %v8201_v8 = vld [vmem:[#allocation4 + $0x16] sm:$0xff]  ;;  %v3990_v46 = vld [vmem:[#allocation4 + $0x1] sm:$0xff]  ;;  %v3991_v3 = vld [vmem:[#allocation4 + $0x9] sm:$0xff]  ;;  %v3999_v30 = vpack.c.bf16 %v3993_v57, %v3992_v10 }
 0x29d   :  { %v3968_v35 = vmax.f32 %v3966_v11, %v3967_v20  ;;  %v4980_v24 = vpack.c.bf16 %v8201_v8, %v8197_v1  ;;  %v3998_v4 = vpack.c.bf16 %v3991_v3, %v3990_v46  ;;  %v3970_v42 = vld [vmem:[#allocation4] sm:$0xff]  ;;  %v8224_v54 = vld [vmem:[#allocation4 + $0x8] sm:$0xff]  ;;  %v8241_v40 = vld [vmem:[#allocation4 + $0x18] sm:$0xff]  ;;  %v4346_v11 = vpack.c.bf16 %v8205_v56, %v8201_v8 }
 0x29e   :  { %v3995_v27 = vld [vmem:[#allocation4 + $0x29] sm:$0xff]  ;;  %v3978_v59 = vpack.c.bf16 %v8224_v54, %v3970_v42  ;;  %v3979_v33 = vpack.c.bf16 %v8241_v40, %v8239_v26  ;;  %v6791_v18 = vld [vmem:[%s8527_s4 + $0x50] sm:$0xff]   ;;  %v6792_v32 = vld [vmem:[%s8527_s4 + $0x58] sm:$0xff]  }
 0x29f   :  { %3969 = vst.msk [vmem:[#allocation4 + $0x3d] sm:$0xf] %vm3884_vm8, %v3968_v35  ;;  %6366 = vmatprep.mubr.msk.bf16.mxu1 %vm326_vm5, %v3998_v4  ;;  %v4000_v36 = vpack.c.bf16 %v3995_v27, %v3994_v63  ;;  %v8212_v2 = vld [vmem:[#allocation4 + $0x26] sm:$0xff]  ;;  %v4212_v6 = vld [vmem:[#allocation4 + $0x12] sm:$0xff]  ;;  %v4213_v47 = vld [vmem:[#allocation4 + $0x1a] sm:$0xff] }
 0x2a0   :  { %6367 = vmatmul.mubr.msk.bf16.vlgmr.msra.gmra.mrb[72].mxu1 %vm326_vm5, %v3999_v30  ;;  %v4981_v37 = vpack.c.bf16 %v8212_v2, %v8205_v56  ;;  %v8222_v50 = vld [vmem:[#allocation4 + $0x2e] sm:$0xff]  ;;  %v4210_v31 = vld [vmem:[#allocation4 + $0x2] sm:$0xff]  ;;  %v4219_v5 = vpack.c.bf16 %v4213_v47, %v4212_v6  ;;  %v6795_v29 = vld [vmem:[%s8527_s4 + $0x70] sm:$0xff]  }
 0x2a1   :  { %6370 = vmatprep.mubr.msk.bf16.mxu1 %vm326_vm5, %v4000_v36  ;;  %6375 = vmatpush3.bf16.msra.mxu1 %v8092_v55  ;;  %v6788_v55 = vld [vmem:[%s8527_s4 + $0x18] sm:$0xff]   ;;  %v8245_v22 = vld [vmem:[#allocation4 + $0x28] sm:$0xff]  ;;  %v6794_v28 = vld [vmem:[%s8527_s4 + $0x68] sm:$0xff]   ;;  %v4347_v13 = vpack.c.bf16 %v8222_v50, %v8212_v2 }
 0x2a2   :  { %6376 = vmatprep.subr.bf16.mxu1 %v6786_v17  ;;  %v3980_v38 = vpack.c.bf16 %v8245_v22, %v8243_v51  ;;  %v4211_v12 = vld [vmem:[#allocation4 + $0xa] sm:$0xff]  ;;  %v4214_v52 = vld [vmem:[#allocation4 + $0x22] sm:$0xff]  ;;  %v6799_v7 = vld [vmem:[%s8527_s4 + $0x90] sm:$0xff]  }
 0x2a3   :  { %v3996_v53 = vld [vmem:[#allocation4 + $0x31] sm:$0xff]  ;;  %v3997_v60 = vld [vmem:[#allocation4 + $0x39] sm:$0x3]  ;;  %v4218_v14 = vpack.c.bf16 %v4211_v12, %v4210_v31  ;;  %v4337_v25 = vld [vmem:[#allocation4 + $0x6] sm:$0xff] }
 0x2a4   :  { %v4001_v62 = vpack.c.bf16 %v3997_v60, %v3996_v53  ;;  %v8259_v9 = vld [vmem:[#allocation4 + $0x30] sm:$0xff]  ;;  %v3977_v49 = vld [vmem:[#allocation4 + $0x38] sm:$0x3]  ;;  %v4217_v41 = vld [vmem:[#allocation4 + $0x3a] sm:$0x3]  ;;  %v4345_v58 = vpack.c.bf16 %v8197_v1, %v4337_v25 }
 0x2a5   :  { %6377 = vmatpush3.bf16.msra.mxu1 %v6786_v17  ;;  %v3981_v0 = vpack.c.bf16 %v3977_v49, %v8259_v9  ;;  %v4215_v16 = vld [vmem:[#allocation4 + $0x2a] sm:$0xff]  ;;  %v4216_v19 = vld [vmem:[#allocation4 + $0x32] sm:$0xff]  ;;  %v6796_v23 = vld [vmem:[%s8527_s4 + $0x78] sm:$0xff]  }
 0x2a6   :  { %v8226_v44 = vld [vmem:[#allocation4 + $0x36] sm:$0xff]  ;;  %6378 = vmatprep.subr.bf16.mxu1 %v6787_v61  ;;  %v4220_v34 = vpack.c.bf16 %v4215_v16, %v4214_v52  ;;  %v4221_v21 = vpack.c.bf16 %v4217_v41, %v4216_v19  ;;  %v6797_v10 = vld [vmem:[%s8527_s4 + $0x80] sm:$0xff]   ;;  %v4344_v57 = vld [vmem:[#allocation4 + $0x3e] sm:$0x3] }
 0x2a7   :  { %v4982_v15 = vpack.c.bf16 %v8226_v44, %v8222_v50  ;;  %v6798_v48 = vld [vmem:[%s8527_s4 + $0x88] sm:$0xff]   ;;  %v4464_v20 = vld [vmem:[#allocation4 + $0x7] sm:$0xff]  ;;  %v4348_v3 = vpack.c.bf16 %v4344_v57, %v8226_v44  ;;  %v4467_v27 = vld [vmem:[#allocation4 + $0x1f] sm:$0xff] }
 0x2a8   :  { %6371 = vmatmul.mubr.msk.bf16.gmra.mrb[76].mxu1 %vm326_vm5, %v4001_v62  ;;  %v4465_v46 = vld [vmem:[#allocation4 + $0xf] sm:$0xff]  ;;  %v6800_v30 = vld [vmem:[%s8527_s4 + $0x98] sm:$0xff]   ;;  %v4466_v4 = vld [vmem:[#allocation4 + $0x17] sm:$0xff] }
 0x2a9   :  { %6379 = vmatpush3.bf16.msra.mxu1 %v6787_v61  ;;  %6382 = vmatprep.mubr.msk.bf16.mxu1 %vm326_vm5, %v3978_v59  ;;  %v4472_v63 = vpack.c.bf16 %v4465_v46, %v4464_v20  ;;  %v6801_v35 = vld [vmem:[%s8527_s4 + $0xa0] sm:$0xff]   ;;  %v4473_v61 = vpack.c.bf16 %v4467_v27, %v4466_v4  ;;  %v6802_v53 = vld [vmem:[%s8527_s4 + $0xa8] sm:$0xff]   ;;  %v6803_v42 = vld [vmem:[%s8527_s4 + $0xb0] sm:$0xff]  }
 0x2aa   :  { %6380 = vmatprep.subr.bf16.mxu1 %v6788_v55  ;;  %v4468_v17 = vld [vmem:[#allocation4 + $0x27] sm:$0xff]  ;;  %v4469_v36 = vld [vmem:[#allocation4 + $0x2f] sm:$0xff]  ;;  %v4470_v62 = vld [vmem:[#allocation4 + $0x37] sm:$0xff] }
 0x2ab   :  { %v4474_v60 = vpack.c.bf16 %v4469_v36, %v4468_v17  ;;  %v4597_v49 = vld [vmem:[#allocation4 + $0x38] sm:$0xff]  ;;  %v6810_v52 = vld [vmem:[%s8527_s4 + $0xe8] sm:$0xff]   ;;  %v6812_v25 = vld [vmem:[%s8527_s4 + $0xf8] sm:$0xff]  }
 0x2ac   :  { %v4719_v31 = vld [vmem:[#allocation4 + $0x14] sm:$0xff]  ;;  %v4851_v46 = vld [vmem:[#allocation4 + $0x3d] sm:$0xff]  ;;  %v4979_v4 = vld [vmem:[#allocation4 + $0x46] sm:$0x3] }
 0x2ad   :  { %6381 = vmatpush3.bf16.msra.mxu1 %v6788_v55  ;;  %v4471_v55 = vld [vmem:[#allocation4 + $0x3f] sm:$0x3]  ;;  %v4723_v6 = vld [vmem:[#allocation4 + $0x34] sm:$0xff]  ;;  %v5310_v1 = vld [vmem:[%s8530_s7 + $0x80] sm:$0xff] }
 0x2ae   :  { %6390 = vmatprep.subr.bf16.mxu1 %v6789_v39  ;;  %v4475_v59 = vpack.c.bf16 %v4471_v55, %v4470_v62  ;;  %v4846_v19 = vld [vmem:[#allocation4 + $0x15] sm:$0xff]  ;;  %v5313_v50 = vld [vmem:[%s8530_s7 + $0x98] sm:$0xff]  ;;  %v5298_v62 = vld [vmem:[%s8530_s7 + $0x20] sm:$0xff] }
 0x2af   :  { %v6815_v20 = vld [vmem:[%s8527_s4 + $0x110] sm:$0xff]   ;;  %v5311_v8 = vld [vmem:[%s8530_s7 + $0x88] sm:$0xff]  ;;  %v5297_v36 = vld [vmem:[%s8530_s7 + $0x18] sm:$0xff] }
 0x2b0   :  { %6383 = vmatmul.mubr.msk.bf16.vlgmr.msra.gmra.mrb[72].mxu1 %vm326_vm5, %v3979_v33  ;;  %v4599_v33 = vpack.c.bf16 %v8239_v26, %v8224_v54  ;;  %v4601_v54 = vpack.c.bf16 %v8259_v9, %v8245_v22  ;;  %v6807_v26 = vld [vmem:[%s8527_s4 + $0xd0] sm:$0xff]   ;;  %v6808_v22 = vld [vmem:[%s8527_s4 + $0xd8] sm:$0xff]   ;;  %v6502_v56 = vpack.c.bf16 %v5311_v8, %v5310_v1  ;;  %v5295_v2 = vld [vmem:[%s8530_s7 + $0x8] sm:$0xff] }
 0x2b1   :  { %6386 = vmatprep.mubr.msk.bf16.mxu1 %vm326_vm5, %v3980_v38  ;;  %6391 = vmatpush3.bf16.msra.mxu1 %v6789_v39  ;;  %v6804_v39 = vld [vmem:[%s8527_s4 + $0xb8] sm:$0xff]   ;;  %v4600_v38 = vpack.c.bf16 %v8243_v51, %v8241_v40  ;;  %v4718_v51 = vld [vmem:[#allocation4 + $0xc] sm:$0xff]  ;;  %v5296_v17 = vld [vmem:[%s8530_s7 + $0x10] sm:$0xff] }
 0x2b2   :  { %6392 = vmatprep.subr.bf16.mxu1 %v6790_v43  ;;  %v4598_v40 = vld [vmem:[#allocation4 + $0x40] sm:$0x3]  ;;  %v4726_v9 = vpack.c.bf16 %v4719_v31, %v4718_v51  ;;  %6503 = vmatprep.subr.bf16.mxu0 %v6502_v56  ;;  %v5299_v55 = vld [vmem:[%s8530_s7 + $0x28] sm:$0xff]  ;;  %v5302_v51 = vld [vmem:[%s8530_s7 + $0x40] sm:$0xff] }
 0x2b3   :  { %v4602_v12 = vpack.c.bf16 %v4598_v40, %v4597_v49  ;;  %v5303_v31 = vld [vmem:[%s8530_s7 + $0x48] sm:$0xff] }
 0x2b5   :  { %6393 = vmatpush3.bf16.msra.mxu1 %v6790_v43  ;;  %v6805_v43 = vld [vmem:[%s8527_s4 + $0xc0] sm:$0xff]  }
 0x2b6   :  { %6394 = vmatprep.subr.bf16.mxu1 %v6791_v18 }
 0x2b8   :  { %6387 = vmatmul.mubr.msk.bf16.gmra.mrb[76].mxu1 %vm326_vm5, %v3981_v0  ;;  %v6809_v0 = vld [vmem:[%s8527_s4 + $0xe0] sm:$0xff]  }
 0x2b9   :  { %6395 = vmatpush3.bf16.msra.mxu1 %v6791_v18  ;;  %6398 = vmatprep.mubr.msk.bf16.mxu1 %vm326_vm5, %v4218_v14  ;;  %v6806_v18 = vld [vmem:[%s8527_s4 + $0xc8] sm:$0xff]   ;;  %v4721_v14 = vld [vmem:[#allocation4 + $0x24] sm:$0xff] }
 0x2ba   :  { %6396 = vmatprep.subr.bf16.mxu1 %v6792_v32 }
 0x2bd   :  { %6397 = vmatpush3.bf16.msra.mxu1 %v6792_v32  ;;  %v4720_v32 = vld [vmem:[#allocation4 + $0x1c] sm:$0xff] }
 0x2be   :  { %6406 = vmatprep.subr.bf16.mxu1 %v6793_v45  ;;  %v4727_v47 = vpack.c.bf16 %v4721_v14, %v4720_v32  ;;  %v5304_v32 = vld [vmem:[%s8530_s7 + $0x50] sm:$0xff]  ;;  %v5305_v14 = vld [vmem:[%s8530_s7 + $0x58] sm:$0xff] }
 0x2c0   :  { %6399 = vmatmul.mubr.msk.bf16.vlgmr.msra.gmra.mrb[72].mxu1 %vm326_vm5, %v4219_v5  ;;  %v6811_v5 = vld [vmem:[%s8527_s4 + $0xf0] sm:$0xff]  }
 0x2c1   :  { %6402 = vmatprep.mubr.msk.bf16.mxu1 %vm326_vm5, %v4220_v34  ;;  %6407 = vmatpush3.bf16.msra.mxu1 %v6793_v45  ;;  %v4722_v45 = vld [vmem:[#allocation4 + $0x2c] sm:$0xff]  ;;  %v4725_v34 = vld [vmem:[#allocation4 + $0x44] sm:$0x3] }
 0x2c2   :  { %6408 = vmatprep.subr.bf16.mxu1 %v6794_v28  ;;  %v4728_v16 = vpack.c.bf16 %v4723_v6, %v4722_v45 }
 0x2c5   :  { %6409 = vmatpush3.bf16.msra.mxu1 %v6794_v28  ;;  %v4724_v28 = vld [vmem:[#allocation4 + $0x3c] sm:$0xff] }
 0x2c6   :  { %6410 = vmatprep.subr.bf16.mxu1 %v6795_v29  ;;  %v4729_v41 = vpack.c.bf16 %v4725_v34, %v4724_v28 }
 0x2c8   :  { %6403 = vmatmul.mubr.msk.bf16.gmra.mrb[76].mxu1 %vm326_vm5, %v4221_v21 }
 0x2c9   :  { %6411 = vmatpush3.bf16.msra.mxu1 %v6795_v29  ;;  %6414 = vmatprep.mubr.msk.bf16.mxu1 %vm326_vm5, %v4345_v58  ;;  %v4845_v29 = vld [vmem:[#allocation4 + $0xd] sm:$0xff]  ;;  %v4847_v58 = vld [vmem:[#allocation4 + $0x1d] sm:$0xff] }
 0x2ca   :  { %6412 = vmatprep.subr.bf16.mxu1 %v6796_v23  ;;  %v4853_v21 = vpack.c.bf16 %v4846_v19, %v4845_v29 }
 0x2cd   :  { %6413 = vmatpush3.bf16.msra.mxu1 %v6796_v23  ;;  %v6813_v23 = vld [vmem:[%s8527_s4 + $0x100] sm:$0xff]  }
 0x2ce   :  { %6422 = vmatprep.subr.bf16.mxu1 %v6797_v10 }
 0x2d0   :  { %6415 = vmatmul.mubr.msk.bf16.vlgmr.msra.gmra.mrb[72].mxu1 %vm326_vm5, %v4346_v11  ;;  %v4849_v11 = vld [vmem:[#allocation4 + $0x2d] sm:$0xff] }
 0x2d1   :  { %6418 = vmatprep.mubr.msk.bf16.mxu1 %vm326_vm5, %v4347_v13  ;;  %6423 = vmatpush3.bf16.msra.mxu1 %v6797_v10  ;;  %v4848_v10 = vld [vmem:[#allocation4 + $0x25] sm:$0xff] }
 0x2d2   :  { %6424 = vmatprep.subr.bf16.mxu1 %v6798_v48  ;;  %v4854_v13 = vpack.c.bf16 %v4848_v10, %v4847_v58 }
 0x2d5   :  { %6425 = vmatpush3.bf16.msra.mxu1 %v6798_v48  ;;  %v4850_v48 = vld [vmem:[#allocation4 + $0x35] sm:$0xff] }
 0x2d6   :  { %6426 = vmatprep.subr.bf16.mxu1 %v6799_v7  ;;  %v4855_v57 = vpack.c.bf16 %v4850_v48, %v4849_v11 }
 0x2d8   :  { %6419 = vmatmul.mubr.msk.bf16.gmra.mrb[76].mxu1 %vm326_vm5, %v4348_v3  ;;  %v4852_v3 = vld [vmem:[#allocation4 + $0x45] sm:$0x3] }
 0x2d9   :  { %6427 = vmatpush3.bf16.msra.mxu1 %v6799_v7  ;;  %6430 = vmatprep.mubr.msk.bf16.mxu1 %vm326_vm5, %v4472_v63  ;;  %v6814_v7 = vld [vmem:[%s8527_s4 + $0x108] sm:$0xff]   ;;  %v6816_v63 = vld [vmem:[%s8527_s4 + $0x118] sm:$0xff]  }
 0x2da   :  { %6428 = vmatprep.subr.bf16.mxu1 %v6800_v30 }
 0x2dd   :  { %6429 = vmatpush3.bf16.msra.mxu1 %v6800_v30  ;;  %v4856_v30 = vpack.c.bf16 %v4852_v3, %v4851_v46 }
 0x2de   :  { %6438 = vmatprep.subr.bf16.mxu1 %v6801_v35 }
 0x2e0   :  { %6431 = vmatmul.mubr.msk.bf16.vlgmr.msra.gmra.mrb[72].mxu1 %vm326_vm5, %v4473_v61  ;;  %v5314_v61 = vld [vmem:[%s8530_s7 + $0xa0] sm:$0xff] }
 0x2e1   :  { %6434 = vmatprep.mubr.msk.bf16.mxu1 %vm326_vm5, %v4474_v60  ;;  %6439 = vmatpush3.bf16.msra.mxu1 %v6801_v35  ;;  %v4978_v35 = vld [vmem:[#allocation4 + $0x3e] sm:$0xff]  ;;  %v6508_v60 = vpack.c.bf16 %v5297_v36, %v5296_v17 }
 0x2e2   :  { %6440 = vmatprep.subr.bf16.mxu1 %v6802_v53  ;;  %v4983_v27 = vpack.c.bf16 %v4979_v4, %v4978_v35 }
 0x2e5   :  { %6441 = vmatpush3.bf16.msra.mxu1 %v6802_v53  ;;  %v5315_v53 = vld [vmem:[%s8530_s7 + $0xa8] sm:$0xff] }
 0x2e6   :  { %6442 = vmatprep.subr.bf16.mxu1 %v6803_v42 }
 0x2e8   :  { %6435 = vmatmul.mubr.msk.bf16.gmra.mrb[76].mxu1 %vm326_vm5, %v4475_v59  ;;  %v5316_v59 = vld [vmem:[%s8530_s7 + $0xb0] sm:$0xff] }
 0x2e9   :  { %6443 = vmatpush3.bf16.msra.mxu1 %v6803_v42  ;;  %6446 = vmatprep.mubr.msk.bf16.mxu1 %vm326_vm5, %v4599_v33  ;;  %v6510_v42 = vpack.c.bf16 %v5315_v53, %v5314_v61  ;;  %v6512_v33 = vpack.c.bf16 %v5299_v55, %v5298_v62 }
 0x2ea   :  { %6444 = vmatprep.subr.bf16.mxu1 %v6804_v39 }
 0x2ed   :  { %6445 = vmatpush3.bf16.msra.mxu1 %v6804_v39  ;;  %v5317_v39 = vld [vmem:[%s8530_s7 + $0xb8] sm:$0xff] }
 0x2ee   :  { %6454 = vmatprep.subr.bf16.mxu1 %v6805_v43 }
 0x2f0   :  { %6447 = vmatmul.mubr.msk.bf16.vlgmr.msra.gmra.mrb[72].mxu1 %vm326_vm5, %v4600_v38  ;;  %v5300_v38 = vld [vmem:[%s8530_s7 + $0x30] sm:$0xff] }
 0x2f1   :  { %6450 = vmatprep.mubr.msk.bf16.mxu1 %vm326_vm5, %v4601_v54  ;;  %6455 = vmatpush3.bf16.msra.mxu1 %v6805_v43  ;;  %v6514_v43 = vpack.c.bf16 %v5317_v39, %v5316_v59  ;;  %v5318_v54 = vld [vmem:[%s8530_s7 + $0xc0] sm:$0xff] }
 0x2f2   :  { %6456 = vmatprep.subr.bf16.mxu1 %v6806_v18 }
 0x2f5   :  { %6457 = vmatpush3.bf16.msra.mxu1 %v6806_v18  ;;  %v5301_v18 = vld [vmem:[%s8530_s7 + $0x38] sm:$0xff] }
 0x2f6   :  { %6458 = vmatprep.subr.bf16.mxu1 %v6807_v26  ;;  %v6516_v49 = vpack.c.bf16 %v5301_v18, %v5300_v38  ;;  %v5701_v18 = vld [vmem:[%s8531_s5] ss:$0 sm:$0xff] }
 0x2f8   :  { %6451 = vmatmul.mubr.msk.bf16.gmra.mrb[76].mxu1 %vm326_vm5, %v4602_v12  ;;  %v5320_v12 = vld [vmem:[%s8530_s7 + $0xd0] sm:$0xff] }
 0x2f9   :  { %6459 = vmatpush3.bf16.msra.mxu1 %v6807_v26  ;;  %6462 = vmatprep.mubr.msk.bf16.mxu1 %vm326_vm5, %v4726_v9  ;;  %v5319_v26 = vld [vmem:[%s8530_s7 + $0xc8] sm:$0xff]  ;;  %v6520_v9 = vpack.c.bf16 %v5303_v31, %v5302_v51  ;;  %v5702_v51 = vld [vmem:[%s8532_s6] ss:$0 sm:$0xff] }
 0x2fa   :  { %6460 = vmatprep.subr.bf16.mxu1 %v6808_v22  ;;  %v6518_v40 = vpack.c.bf16 %v5319_v26, %v5318_v54 }
 0x2fd   :  { %6461 = vmatpush3.bf16.msra.mxu1 %v6808_v22  ;;  %v5321_v22 = vld [vmem:[%s8530_s7 + $0xd8] sm:$0xff] }
 0x2fe   :  { %6470 = vmatprep.subr.bf16.mxu1 %v6809_v0 }
 0x300   :  { %6463 = vmatmul.mubr.msk.bf16.vlgmr.msra.gmra.mrb[72].mxu1 %vm326_vm5, %v4727_v47  ;;  %v6524_v47 = vpack.c.bf16 %v5305_v14, %v5304_v32 }
 0x301   :  { %6466 = vmatprep.mubr.msk.bf16.mxu1 %vm326_vm5, %v4728_v16  ;;  %6471 = vmatpush3.bf16.msra.mxu1 %v6809_v0  ;;  %v6522_v0 = vpack.c.bf16 %v5321_v22, %v5320_v12 }
 0x302   :  { %6472 = vmatprep.subr.bf16.mxu1 %v6810_v52 }
 0x305   :  { %6473 = vmatpush3.bf16.msra.mxu1 %v6810_v52 }
 0x306   :  { %6474 = vmatprep.subr.bf16.mxu1 %v6811_v5 }
 0x308   :  { %6467 = vmatmul.mubr.msk.bf16.gmra.mrb[76].mxu1 %vm326_vm5, %v4729_v41 }
 0x309   :  { %6475 = vmatpush3.bf16.msra.mxu1 %v6811_v5  ;;  %6478 = vmatprep.mubr.msk.bf16.mxu1 %vm326_vm5, %v4853_v21 }
 0x30a   :  { %6476 = vmatprep.subr.bf16.mxu1 %v6812_v25 }
 0x30d   :  { %6477 = vmatpush3.bf16.msra.mxu1 %v6812_v25 }
 0x30e   :  { %6486 = vmatprep.subr.bf16.mxu1 %v6813_v23 }
 0x310   :  { %6479 = vmatmul.mubr.msk.bf16.vlgmr.msra.gmra.mrb[72].mxu1 %vm326_vm5, %v4854_v13 }
 0x311   :  { %6482 = vmatprep.mubr.msk.bf16.mxu1 %vm326_vm5, %v4855_v57  ;;  %6487 = vmatpush3.bf16.msra.mxu1 %v6813_v23 }
 0x312   :  { %6488 = vmatprep.subr.bf16.mxu1 %v6814_v7 }
 0x315   :  { %6489 = vmatpush3.bf16.msra.mxu1 %v6814_v7 }
 0x316   :  { %6490 = vmatprep.subr.bf16.mxu1 %v6815_v20 }
 0x318   :  { %6483 = vmatmul.mubr.msk.bf16.gmra.mrb[76].mxu1 %vm326_vm5, %v4856_v30 }
 0x319   :  { %6491 = vmatpush3.bf16.msra.mxu1 %v6815_v20  ;;  %6494 = vmatprep.mubr.msk.bf16.mxu1 %vm326_vm5, %v4980_v24  ;;  %v5294_v24 = vld [vmem:[%s8530_s7] sm:$0xff] }
 0x31a   :  { %6492 = vmatprep.subr.bf16.mxu1 %v6816_v63  ;;  %v6504_v44 = vpack.c.bf16 %v5295_v2, %v5294_v24 }
 0x31c   :  { %6505 = vmatpush3.bf16.msra.mxu0 %v6504_v44 }
 0x31d   :  { %6493 = vmatpush3.bf16.msra.mxu1 %v6816_v63 }
 0x320   :  { %6495 = vmatmul.mubr.msk.bf16.vlgmr.msra.gmra.mrb[72].mxu1 %vm326_vm5, %v4981_v37  ;;  %v5312_v37 = vld [vmem:[%s8530_s7 + $0x90] sm:$0xff] }
 0x321   :  { %6498 = vmatprep.mubr.msk.bf16.mxu1 %vm326_vm5, %v4982_v15  ;;  %v6506_v15 = vpack.c.bf16 %v5313_v50, %v5312_v37 }
 0x323   :  { %6507 = vmatprep.subr.bf16.mxu0 %v6506_v15 }
 0x324   :  { %6509 = vmatpush3.bf16.msra.mxu0 %v6508_v60 }
 0x325   :  { %6511 = vmatprep.subr.bf16.mxu0 %v6510_v42 }
 0x328   :  { %6499 = vmatmul.mubr.msk.bf16.gmra.mrb[76].mxu1 %vm326_vm5, %v4983_v27  ;;  %6513 = vmatpush3.bf16.msra.mxu0 %v6512_v33 }
 0x329   :  { %6515 = vmatprep.subr.bf16.mxu0 %v6514_v43 }
 0x32c   :  { %6517 = vmatpush3.bf16.msra.mxu0 %v6516_v49 }
 0x32d   :  { %6519 = vmatprep.subr.bf16.mxu0 %v6518_v40 }
 0x330   :  { %6521 = vmatpush3.bf16.msra.mxu0 %v6520_v9 }
 0x331   :  { %6523 = vmatprep.subr.bf16.mxu0 %v6522_v0 }
 0x334   :  { %6525 = vmatpush3.bf16.msra.mxu0 %v6524_v47 }
 0x3f3   :  { %v6496_v45 = vpop.f32.mrb[72].mxu1 }
 0x3f4   :  { %5106 = vst.msk [vmem:[#allocation5 + $0xa] sm:$0x3c] %vm5105_vm9, %v6496_v45  ;;  %v5062_v6 = vpop.f32.mrb[73].mxu1 }
 0x3f5   :  { %5099 = vst.msk [vmem:[#allocation5] sm:$0xf] %vm3884_vm8, %v5062_v6  ;;  %v6497_v52 = vpop.f32.mrb[74].mxu1 }
 0x3f6   :  { %5101 = vst.msk [vmem:[#allocation5 - $0x2] sm:$0xc0] %vm5100_vm10, %v5062_v6  ;;  %v5065_v16 = vpop.f32.mrb[75].mxu1 }
 0x3f7   :  { %5102 = vst.msk [vmem:[#allocation5 + $0x6] sm:$0x3] %vm349_vm7, %v5065_v16 }
 0x3f8   :  { %5104 = vst.msk [vmem:[#allocation5 + $0x4] sm:$0xf0] %vm5103_vm11, %v5065_v16 }
 0x3fb   :  { %v6500_v5 = vpop.f32.mrb[76].mxu1 }
 0x3fc   :  { %5109 = vst.msk [vmem:[#allocation5 + $0x18] sm:$0xf] %vm3884_vm8, %v6500_v5  ;;  %v5077_v28 = vpop.f32.mrb[77].mxu1 }
 0x3fd   :  { %5110 = vst.msk [vmem:[#allocation5 + $0x16] sm:$0xc0] %vm5100_vm10, %v6500_v5  ;;  %v6501_v34 = vpop.f32.mrb[78].mxu1  ;;  %v6826_v5 = vmov 1983009808  }
 0x3fe   :  { %5107 = vst.msk [vmem:[#allocation5 + $0xc] sm:$0xf0] %vm5103_vm11, %v5077_v28  ;;  %v5080_v29 = vpop.f32.mrb[79].mxu1  ;;  %v5112_v19 = vld [vmem:[#allocation5] sm:$0xff]  ;;  %v5202_v28 = vunpack.c.l.s4 %v6826_v5 }
 0x3ff   :  { %5111 = vst.msk [vmem:[#allocation5 + $0x1e] sm:$0x3] %vm349_vm7, %v6501_v34  ;;  %v5113_v41 = vld [vmem:[#allocation5 + $0x8] sm:$0xff]  ;;  %v5116_v25 = vsel %vm326_vm5, %v5112_v19, 0.0  ;;  %v5204_v34 = vlaneseq }
 0x400   :  { %5108 = vst.msk [vmem:[#allocation5 + $0x12] sm:$0x3c] %vm5105_vm9, %v5080_v29  ;;  %v5117_v21 = vsel %vm326_vm5, %v5113_v41, 0.0  ;;  %v5203_v29 = vunpack.c.0.s8 %v5202_v28 }
 0x401   :  { %v5118_v10 = vadd.f32 %v5117_v21, %v5116_v25  ;;  %v5323_v25 = vld [vmem:[%s8530_s7 + $0xe8] sm:$0xff] }
 0x406   :  { %v5115_v58 = vld [vmem:[#allocation5 + $0x18] sm:$0xff] }
 0x407   :  { %v5114_v23 = vld [vmem:[#allocation5 + $0x10] sm:$0xff]  ;;  %v5121_v13 = vsel %vm326_vm5, %v5115_v58, 0.0 }
 0x408   :  { %v5119_v11 = vsel %vm326_vm5, %v5114_v23, 0.0 }
 0x409   :  { %v5120_v48 = vadd.f32 %v5119_v11, %v5118_v10 }
 0x40b   :  { %v5122_v7 = vadd.f32 %v5121_v13, %v5120_v48 }
 0x40d   :  { %v5123_v57 = vrot.slane %v5122_v7, 4 }
 0x40f   :  { %v5124_v20 = vadd.f32 %v5123_v57, %v5122_v7 }
 0x411   :  { %v5125_v46 = vrot.slane %v5124_v20, 2 }
 0x413   :  { %v5126_v3 = vadd.f32 %v5125_v46, %v5124_v20 }
 0x415   :  { %v5127_v30 = vrot.slane %v5126_v3, 1 }
 0x417   :  { %v5128_v63 = vadd.f32 %v5127_v30, %v5126_v3 }
 0x419   :  { %v5129_v35 = vmul.f32 0.03125, %v5128_v63 }
 0x41b   :  { %v5130_v4 = vsub.f32 %v5112_v19, %v5129_v35  ;;  %v5131_v27 = vsub.f32 %v5113_v41, %v5129_v35  ;;  %v5132_v1 = vsub.f32 %v5114_v23, %v5129_v35  ;;  %v5133_v8 = vsub.f32 %v5115_v58, %v5129_v35  ;;  %v5322_v41 = vld [vmem:[%s8530_s7 + $0xe0] sm:$0xff] }
 0x41c   :  { %v5205_v19 = vshrl.u32 %v5204_v34, 7  ;;  %v6526_v58 = vpack.c.bf16 %v5323_v25, %v5322_v41  ;;  %v5709_v34 = vld [vmem:[%s8535_s9] ss:$0 sm:$0xff] }
 0x41d   :  { %v5134_v24 = vmul.f32 %v5130_v4, %v5130_v4  ;;  %v5135_v56 = vmul.f32 %v5131_v27, %v5131_v27  ;;  %v5136_v2 = vmul.f32 %v5132_v1, %v5132_v1  ;;  %v5137_v37 = vmul.f32 %v5133_v8, %v5133_v8 }
 0x41e   :  { %v5206_v13 = vsub.s32 %v5203_v29, %v5205_v19  ;;  %6527 = vmatprep.subr.bf16.mxu0 %v6526_v58 }
 0x41f   :  { %v5138_v50 = vsel %vm326_vm5, %v5134_v24, 0.0  ;;  %v5139_v44 = vsel %vm326_vm5, %v5135_v56, 0.0  ;;  %v5141_v17 = vsel %vm326_vm5, %v5136_v2, 0.0  ;;  %v5143_v61 = vsel %vm326_vm5, %v5137_v37, 0.0 }
 0x420   :  { %v5140_v15 = vadd.f32 %v5139_v44, %v5138_v50 }
 0x422   :  { %v5142_v36 = vadd.f32 %v5141_v17, %v5140_v15 }
 0x424   :  { %v5144_v53 = vadd.f32 %v5143_v61, %v5142_v36 }
 0x426   :  { %v5145_v60 = vrot.slane %v5144_v53, 4 }
 0x428   :  { %v5146_v42 = vadd.f32 %v5145_v60, %v5144_v53 }
 0x42a   :  { %v5147_v62 = vrot.slane %v5146_v42, 2 }
 0x42c   :  { %v5148_v55 = vadd.f32 %v5147_v62, %v5146_v42  ;;  %v5306_v62 = vld [vmem:[%s8530_s7 + $0x60] sm:$0xff] }
 0x42e   :  { %v5149_v59 = vrot.slane %v5148_v55, 1 }
 0x430   :  { %v5150_v39 = vadd.f32 %v5149_v59, %v5148_v55  ;;  %v5307_v55 = vld [vmem:[%s8530_s7 + $0x68] sm:$0xff]  ;;  %v5324_v59 = vld [vmem:[%s8530_s7 + $0xf0] sm:$0xff] }
 0x432   :  { %v5151_v33 = vmul.f32 0.03125, %v5150_v39  ;;  %v6528_v39 = vpack.c.bf16 %v5307_v55, %v5306_v62 }
 0x434   :  { %v5152_v43 = vadd.f32 1e-05, %v5151_v33  ;;  %v5325_v33 = vld [vmem:[%s8530_s7 + $0xf8] sm:$0xff]  ;;  %6529 = vmatpush3.bf16.msra.mxu0 %v6528_v39 }
 0x436   :  { %6819 = vrsqrt.f32 %v5152_v43  ;;  %v5308_v43 = vld [vmem:[%s8530_s7 + $0x70] sm:$0xff] }
 0x440   :  { %v6820_v38 = vpop.eup %6819 }
 0x441   :  { %v5154_v54 = vmul.f32 %v6820_v38, %v5130_v4  ;;  %v5155_v26 = vmul.f32 %v6820_v38, %v5131_v27  ;;  %v5156_v49 = vmul.f32 %v6820_v38, %v5132_v1  ;;  %v5157_v40 = vmul.f32 %v6820_v38, %v5133_v8  ;;  %v5309_v38 = vld [vmem:[%s8530_s7 + $0x78] sm:$0xff] }
 0x443   :  { %v5165_v31 = vmul.f32 %v5701_v18, %v5154_v54  ;;  %v5166_v12 = vmul.f32 %v5701_v18, %v5155_v26  ;;  %v5167_v22 = vmul.f32 %v5701_v18, %v5156_v49  ;;  %v5168_v9 = vmul.f32 %v5701_v18, %v5157_v40 }
 0x444   :  { %v6530_v49 = vpack.c.bf16 %v5325_v33, %v5324_v59  ;;  %v6532_v40 = vpack.c.bf16 %v5309_v38, %v5308_v43 }
 0x445   :  { %v5176_v0 = vadd.f32 %v5702_v51, %v5165_v31  ;;  %v5177_v32 = vadd.f32 %v5702_v51, %v5166_v12  ;;  %v5178_v14 = vadd.f32 %v5702_v51, %v5167_v22  ;;  %v5179_v45 = vadd.f32 %v5702_v51, %v5168_v9 }
 0x446   :  { %6531 = vmatprep.subr.bf16.mxu0 %v6530_v49 }
 0x447   :  { %v5180_v6 = vmax.f32 %v5176_v0, 0.0  ;;  %v5181_v47 = vmax.f32 %v5177_v32, 0.0  ;;  %v5182_v52 = vmax.f32 %v5178_v14, 0.0  ;;  %v5183_v16 = vmax.f32 %v5179_v45, 0.0  ;;  %6533 = vmatpush3.bf16.msra.mxu0 %v6532_v40 }
 0x449   :  { %5184 = vst.msk [vmem:[#allocation5] sm:$0xff] %vm326_vm5, %v5180_v6  ;;  %5185 = vst.msk [vmem:[#allocation5 + $0x8] sm:$0xff] %vm326_vm5, %v5181_v47  ;;  %v16_v6 = vstv %s8533_s10 }
 0x44a   :  { %5186 = vst.msk [vmem:[#allocation5 + $0x10] sm:$0xff] %vm326_vm5, %v5182_v52  ;;  %5187 = vst.msk [vmem:[#allocation5 + $0x18] sm:$0xff] %vm326_vm5, %v5183_v16  ;;  %v5707_v52 = vld [vmem:[%s8534_s8] ss:$0 sm:$0xff] }
 0x44b   :  { %17 = vst [vmem:[#allocation7] sm:$0x1] %v16_v6 }
 0x450   :  { %v5188_v57 = vld [vmem:[#allocation5] ss:$2 sm:$0x3]  ;;  %v5190_v20 = vld [vmem:[#allocation5 + $0x1] ss:$2 sm:$0x3] }
 0x451   :  { %v5242_v21 = vld [vmem:[#allocation5 + $0x10] ss:$2 sm:$0x3]  ;;  %v5244_v23 = vld [vmem:[#allocation5 + $0x11] ss:$2 sm:$0x3]  ;;  %v5195_v30 = vmax.f32 %v5188_v57, %v5190_v20 }
 0x452   :  { %v5246_v10 = vld [vmem:[#allocation5 + $0x14] ss:$2 sm:$0x3]  ;;  %v5248_v11 = vld [vmem:[#allocation5 + $0x15] ss:$2 sm:$0x3]  ;;  %v5249_v48 = vmax.f32 %v5242_v21, %v5244_v23 }
 0x453   :  { %v5250_v7 = vmax.f32 %v5246_v10, %v5248_v11  ;;  %v5192_v46 = vld [vmem:[#allocation5 + $0x4] ss:$2 sm:$0x3]  ;;  %v5194_v3 = vld [vmem:[#allocation5 + $0x5] ss:$2 sm:$0x3] }
 0x454   :  { %v5196_v35 = vmax.f32 %v5192_v46, %v5194_v3  ;;  %v5268_v4 = vld [vmem:[#allocation5 + $0x18] ss:$2 sm:$0x3]  ;;  %v5270_v27 = vld [vmem:[#allocation5 + $0x19] ss:$2 sm:$0x3] }
 0x455   :  { %v5251_v63 = vmax.f32 %v5249_v48, %v5250_v7  ;;  %v5272_v1 = vld [vmem:[#allocation5 + $0x1c] ss:$2 sm:$0x3]  ;;  %v5274_v8 = vld [vmem:[#allocation5 + $0x1d] ss:$2 sm:$0x3]  ;;  %v5275_v24 = vmax.f32 %v5268_v4, %v5270_v27 }
 0x456   :  { %v5197_v2 = vmax.f32 %v5195_v30, %v5196_v35  ;;  %v5276_v37 = vmax.f32 %v5272_v1, %v5274_v8  ;;  %v5216_v50 = vld [vmem:[#allocation5 + $0x8] ss:$2 sm:$0x3]  ;;  %v5218_v44 = vld [vmem:[#allocation5 + $0x9] ss:$2 sm:$0x3] }
 0x457   :  { %v5260_v56 = vrot.slane %v5251_v63, %v5206_v13  ;;  %5252 = vst.msk [vmem:[#allocation6 + $0x1] sm:$0x1] %vm5198_vm12, %v5251_v63  ;;  %v5220_v15 = vld [vmem:[#allocation5 + $0xc] ss:$2 sm:$0x3]  ;;  %v5223_v36 = vmax.f32 %v5216_v50, %v5218_v44 }
 0x458   :  { %v5222_v17 = vld [vmem:[#allocation5 + $0xd] ss:$2 sm:$0x3]  ;;  %v5207_v53 = vrot.slane %v5197_v2, %v5206_v13  ;;  %v5277_v60 = vmax.f32 %v5275_v24, %v5276_v37  ;;  %5199 = vst.msk [vmem:[#allocation6] sm:$0x1] %vm5198_vm12, %v5197_v2 }
 0x459   :  { %v5705_v61 = vrot.slane %v5260_v56, 9  ;;  %v5224_v42 = vmax.f32 %v5220_v15, %v5222_v17  ;;  %v5710_v25 = vld [vmem:[#allocation7] ss:$0 sm:$0xff] }
 0x45a   :  { %v5703_v18 = vrot.slane %v5207_v53, 9  ;;  %v5286_v54 = vrot.slane %v5277_v60, %v5206_v13  ;;  %5278 = vst.msk [vmem:[#allocation6 + $0x3] sm:$0x1] %vm5198_vm12, %v5277_v60 }
 0x45b   :  { %5263 = vrot.lane.b32.xlu1 %v5705_v61, %s6827_s14  ;;  %v5225_v26 = vmax.f32 %v5223_v36, %v5224_v42 }
 0x45c   :  { %5210 = vrot.lane.b32.xlu0 %v5703_v18, %s6827_s14  ;;  %v5706_v51 = vrot.slane %v5286_v54, 9 }
 0x45d   :  { %v5234_v31 = vrot.slane %v5225_v26, %v5206_v13  ;;  %5226 = vst.msk [vmem:[#allocation6 + $0x2] sm:$0x1] %vm5198_vm12, %v5225_v26 }
 0x45f   :  { %5289 = vrot.lane.b32.xlu1 %v5706_v51, %s6827_s14  ;;  %v5704_v12 = vrot.slane %v5234_v31, 9 }
 0x461   :  { %5237 = vrot.lane.b32.xlu0 %v5704_v12, %s6827_s14 }
 0x4cd   :  { %v5264_v22 = vpop.permute.xlu1 %5263 }
 0x4ce   :  { %5266 = vst.msk [vmem:[#allocation6 + $0x1] sm:$0x1] %vm5213_vm13, %v5264_v22  ;;  %v5211_v9 = vpop.permute.xlu0 %5210 }
 0x4cf   :  { %5214 = vst.msk [vmem:[#allocation6] sm:$0x1] %vm5213_vm13, %v5211_v9 }
 0x4d1   :  { %v5290_v0 = vpop.permute.xlu1 %5289 }
 0x4d2   :  { %5292 = vst.msk [vmem:[#allocation6 + $0x3] sm:$0x1] %vm5213_vm13, %v5290_v0 }
 0x4d3   :  { %v5238_v32 = vpop.permute.xlu0 %5237 }
 0x4d4   :  { %5240 = vst.msk [vmem:[#allocation6 + $0x2] sm:$0x1] %vm5213_vm13, %v5238_v32 }
 0x4db   :  { %v5708_v14 = vld.sshfl [vmem:[#allocation6] sm:$0x33 pattern:$0x76325410] }
 0x4dc   :  { %v5341_v45 = vcombine.high %v5708_v14, %v5708_v14 }
 0x4de   :  { %5408 = vmatprep.mubr.f32.mxu0 %v5341_v45 }
 0x4df   :  { %5409 = vmatmul.mubr.f32.vlgmr.msra.gmra.mrb[144].mxu0 %v5708_v14 }
 0x5b2   :  { %v5995_v47 = vpop.f32.mrb[144].mxu0 }
 0x5b3   :  { %v5996_v16 = vpop.f32.mrb[145].mxu0 }
 0x5b4   :  { %v5997_v5 = vadd.f32 %v5996_v16, %v5995_v47 }
 0x5b6   :  { %v5411_v28 = vadd.f32 %v5997_v5, %v5707_v52 }
 0x5b8   :  { %v5414_v29 = vmax.f32 %v5411_v28, 0.0 }
 0x5ba   :  { %v5422_v19 = vmul.f32 %v5709_v34, %v5414_v29 }
 0x5bc   :  { %v5424_v41 = vsel %vm5423_vm14, %v5422_v19, 0.0 }
 0x5bd   :  { %5425 = vadd.xlane.f32.xlu0 %v5424_v41 }
 0x64a   :  { %v5426_v21 = vpop.xlane.xlu0 %5425 }
 0x64b   :  { %v5434_v23 = vadd.f32 %v5710_v25, %v5426_v21 }
 0x64d   :  { %v5435_v58 = vsub.f32 0.0, %v5434_v23 }
 0x64f   :  { %v5436_v10 = vmul.f32 1.442695, %v5435_v58 }
 0x651   :  { %6821 = vpow2.f32 %v5436_v10 }
 0x65b   :  { %v6822_v11 = vpop.eup %6821 }
 0x65c   :  { %v5438_v48 = vadd.f32 1.0, %v6822_v11 }
 0x65e   :  { %6823 = vrcp.f32 %v5438_v48 }
 0x668   :  { %v6824_v13 = vpop.eup %6823 }
 0x669   :  { %5442 = vst.msk [vmem:[%s8536_s11] sm:$0x3] %vm5441_vm15, %v6824_v13 }

</bundles_post_ra>
